<compile_context>
chip_gen: v7x
topology: tpu7x:2x2x1
jax: 0.10.0
libtpu: 0.0.40
codegen_flags: <defaults>
</compile_context>

<pallas_src>
import numpy as np
import jax
import jax.numpy as jnp
from jax.experimental import pallas as pl
from jax.experimental.pallas import tpu as pltpu

_SQRT2_INV = 0.7071067811865476
_LANE = 128


def _gelu(x):
    # exact (erf-based) GELU, matching torch.nn.functional.gelu default
    return 0.5 * x * (1.0 + jax.lax.erf(x * _SQRT2_INV))


def _round_up(n, m):
    return ((n + m - 1) // m) * m


def _pad2(a, rows, cols):
    r, c = a.shape
    return jnp.pad(a, ((0, rows - r), (0, cols - c)))


def _bf16_dot(a, b):
    return jnp.dot(a.astype(jnp.bfloat16), b.astype(jnp.bfloat16),
                   preferred_element_type=jnp.float32)


# ---------------------------------------------------------------------------
# Fused encoder kernel (one grid step = one batch element)
#   refs: x, w_in, b_in, [w1,b1,w2,b2,(wp,bp)] per block, o, buf0, buf1
#   buf0: activation carried between blocks (rows [halo, halo+T) are live,
#         halo rows stay zero -> conv "same" padding for free)
#   buf1: intermediate conv1 output inside a block
# ---------------------------------------------------------------------------
def _make_encoder_kernel(T, halo, hp, block_meta):
    n_blocks = len(block_meta)

    def kernel(*refs):
        it = iter(refs)
        x_ref = next(it)
        w_in = next(it)
        b_in = next(it)
        blk_refs = []
        for meta in block_meta:
            n = 6 if meta["has_proj"] else 4
            blk_refs.append([next(it) for _ in range(n)])
        o_ref = next(it)
        buf0 = next(it)
        buf1 = next(it)

        # zero scratch once per step: halo rows (and padded lanes) read as 0
        buf0[...] = jnp.zeros(buf0.shape, jnp.float32)
        buf1[...] = jnp.zeros(buf1.shape, jnp.float32)

        # ---- masked input Linear (fused: no HBM round trip for hidden act) ----
        x = x_ref[0]                                          # (T, Cip) f32
        nan_row = jnp.max(jnp.where(x != x, 1.0, 0.0), axis=-1, keepdims=True)
        xc = jnp.where(nan_row > 0.0, 0.0, x)
        h = _bf16_dot(xc, w_in[...]) + b_in[...]
        h = jnp.where(nan_row > 0.0, 0.0, h)                  # (T, Hp)
        buf0[halo:halo + T, :hp] = h

        def dconv(src, d, cin, w_ref, b_ref):
            # gelu once over the padded window, then 3 shifted views -> one
            # lane-dense (T, 3*cin) x (3*cin, cout) MXU matmul
            g = _gelu(src[halo - d:halo + T + d, :cin])       # (T+2d, cin)
            cc = jnp.concatenate([g[0:T], g[d:d + T], g[2 * d:2 * d + T]],
                                 axis=-1)                     # (T, 3*cin)
            return _bf16_dot(cc, w_ref[...]) + b_ref[...]

        cin = hp
        for bi, (meta, brefs) in enumerate(zip(block_meta, blk_refs)):
            d = meta["dilation"]
            cout = meta["cout"]
            if meta["has_proj"]:
                w1, b1, w2, b2, wp, bp = brefs
            else:
                w1, b1, w2, b2 = brefs

            xin = buf0[halo:halo + T, :cin]                   # residual (f32)
            h1 = dconv(buf0, d, cin, w1, b1)                  # conv1
            buf1[halo:halo + T, :cout] = h1
            y = dconv(buf1, d, cout, w2, b2)                  # conv2
            if meta["has_proj"]:
                y = y + (_bf16_dot(xin, wp[...]) + bp[...])
            else:
                y = y + xin                                   # cin == cout here

            if bi == n_blocks - 1:
                o_ref[0] = y
            else:
                buf0[halo:halo + T, :cout] = y
            cin = cout

    return kernel


# ---------------------------------------------------------------------------
# Wrapper: pad channels to lane multiples, flatten conv taps, one pallas_call
# ---------------------------------------------------------------------------
def ts_encoder_forward(x, params):
    """Eval-mode TSEncoder forward (mask='all_true', dropout=identity)."""
    B, T, Ci = x.shape
    H = params["w_in"].shape[1]
    Cip = _round_up(Ci, _LANE)
    Hp = _round_up(H, _LANE)

    blocks = params["blocks"]
    block_meta = []
    padded_blocks = []
    cin_real, cinp = H, Hp
    cmax = Hp
    d_max = 1
    for blk in blocks:
        d = blk["dilation"]
        cout_real = blk["w1"].shape[2]
        coutp = _round_up(cout_real, _LANE)
        cmax = max(cmax, coutp)
        d_max = max(d_max, d)
        has_proj = "wp" in blk
        # conv weights (3, cin, cout) -> (3*cinp, coutp), tap-major, zero-padded
        w1f = jnp.concatenate([_pad2(blk["w1"][k], cinp, coutp) for k in range(3)], axis=0)
        w2f = jnp.concatenate([_pad2(blk["w2"][k], coutp, coutp) for k in range(3)], axis=0)
        entry = [w1f, _pad2(blk["b1"], 1, coutp), w2f, _pad2(blk["b2"], 1, coutp)]
        if has_proj:
            entry += [_pad2(blk["wp"], cinp, coutp), _pad2(blk["bp"], 1, coutp)]
        padded_blocks.append(entry)
        block_meta.append(dict(dilation=d, cout=coutp, has_proj=has_proj))
        cin_real, cinp = cout_real, coutp
    out_real, out_pad = cin_real, cinp

    halo = _round_up(max(d_max, 8), 8)          # sublane-aligned halo >= d_max
    rows = T + 2 * halo

    xp = jnp.pad(x.astype(jnp.float32), ((0, 0), (0, 0), (0, Cip - Ci)))
    w_in_p = _pad2(params["w_in"], Cip, Hp)
    b_in_p = _pad2(params["b_in"], 1, Hp)

    inputs = [xp, w_in_p, b_in_p]
    in_specs = [
        pl.BlockSpec((1, T, Cip), lambda b: (b, 0, 0)),
        pl.BlockSpec((Cip, Hp), lambda b: (0, 0)),
        pl.BlockSpec((1, Hp), lambda b: (0, 0)),
    ]
    for entry in padded_blocks:
        for a in entry:
            inputs.append(a)
            in_specs.append(pl.BlockSpec(a.shape, lambda b: (0, 0)))

    kernel = _make_encoder_kernel(T=T, halo=halo, hp=Hp, block_meta=block_meta)

    out = pl.pallas_call(
        kernel,
        out_shape=jax.ShapeDtypeStruct((B, T, out_pad), jnp.float32),
        grid=(B,),
        in_specs=in_specs,
        out_specs=pl.BlockSpec((1, T, out_pad), lambda b: (b, 0, 0)),
        scratch_shapes=[pltpu.VMEM((rows, cmax), jnp.float32),
                        pltpu.VMEM((rows, cmax), jnp.float32)],
        compiler_params=pltpu.CompilerParams(dimension_semantics=("parallel",)),
    )(*inputs)
    return out[:, :, :out_real]


# ---------------------------------------------------------------------------
# Deterministic synthetic parameters (shapes per TSEncoder.__init__)
# ---------------------------------------------------------------------------
def init_params(key, input_dims, hidden_dims, output_dims, depth):
    keys = jax.random.split(key, 8 + 6 * (depth + 1))
    it = iter(range(len(keys)))

    def nrm(shape, scale):
        return jax.random.normal(keys[next(it)], shape, jnp.float32) * scale

    params = {
        "w_in": nrm((input_dims, hidden_dims), 1.0 / np.sqrt(input_dims)),
        "b_in": nrm((1, hidden_dims), 0.1),
        "blocks": [],
    }
    channels = [hidden_dims] * depth + [output_dims]
    in_ch = hidden_dims
    for i, out_ch in enumerate(channels):
        final = i == len(channels) - 1
        blk = {
            "dilation": 2 ** i,
            "w1": nrm((3, in_ch, out_ch), 1.0 / np.sqrt(3 * in_ch)),
            "b1": nrm((1, out_ch), 0.05),
            "w2": nrm((3, out_ch, out_ch), 1.0 / np.sqrt(3 * out_ch)),
            "b2": nrm((1, out_ch), 0.05),
        }
        if in_ch != out_ch or final:   # 1x1 projection when needed / final
            blk["wp"] = nrm((in_ch, out_ch), 1.0 / np.sqrt(in_ch))
            blk["bp"] = nrm((1, out_ch), 0.05)
        params["blocks"].append(blk)
        in_ch = out_ch
    return params


# ---------------------------------------------------------------------------
# Pure-JAX reference (same bf16-operand / f32-accum matmul precision)
# ---------------------------------------------------------------------------
def ref_forward(x, params):
    def mm(a, b):
        return jnp.einsum("btc,cd->btd", a.astype(jnp.bfloat16),
                          b.astype(jnp.bfloat16),
                          preferred_element_type=jnp.float32)

    nan_any = jnp.any(jnp.isnan(x), axis=-1, keepdims=True)          # (B,T,1)
    xc = jnp.where(nan_any, 0.0, x)
    h = mm(xc, params["w_in"]) + params["b_in"]
    h = jnp.where(nan_any, 0.0, h)
    for blk in params["blocks"]:
        d = blk["dilation"]
        T = h.shape[1]

        def dconv(z, w, b):
            zp = jnp.pad(z, ((0, 0), (d, d), (0, 0)))
            return sum(mm(zp[:, k * d:k * d + T, :], w[k]) for k in range(3)) + b

        res = (mm(h, blk["wp"]) + blk["bp"]) if "wp" in blk else h
        y = dconv(_gelu(h), blk["w1"], blk["b1"])
        y = dconv(_gelu(y), blk["w2"], blk["b2"])
        h = y + res
    return h


if __name__ == "__main__":
    B, T = 2, 16
    input_dims, hidden_dims, output_dims, depth = 4, 32, 32, 3

    key = jax.random.PRNGKey(0)
    kx, kp = jax.random.split(key)
    x = jax.random.normal(kx, (B, T, input_dims), jnp.float32)
    x = x.at[0, 3, 1].set(jnp.nan)       # exercise the nan_mask path

    params = init_params(kp, input_dims, hidden_dims, output_dims, depth)

    out = jax.block_until_ready(ts_encoder_forward(x, params))
    assert out.shape == (B, T, output_dims)

    ref = jax.block_until_ready(ref_forward(x, params))
    np.testing.assert_allclose(np.asarray(out), np.asarray(ref),
                               rtol=1e-2, atol=1e-2)
    print("KERNEL_OK")
</pallas_src>

<mosaic_0001>
module attributes {stable_mosaic.version = 11 : i64} {
  func.func @kernel(%arg0: i32, %arg1: memref<1x16x128xf32, #tpu.memory_space<vmem>>, %arg2: memref<128x128xf32, #tpu.memory_space<vmem>>, %arg3: memref<1x128xf32, #tpu.memory_space<vmem>>, %arg4: memref<384x128xf32, #tpu.memory_space<vmem>>, %arg5: memref<1x128xf32, #tpu.memory_space<vmem>>, %arg6: memref<384x128xf32, #tpu.memory_space<vmem>>, %arg7: memref<1x128xf32, #tpu.memory_space<vmem>>, %arg8: memref<384x128xf32, #tpu.memory_space<vmem>>, %arg9: memref<1x128xf32, #tpu.memory_space<vmem>>, %arg10: memref<384x128xf32, #tpu.memory_space<vmem>>, %arg11: memref<1x128xf32, #tpu.memory_space<vmem>>, %arg12: memref<384x128xf32, #tpu.memory_space<vmem>>, %arg13: memref<1x128xf32, #tpu.memory_space<vmem>>, %arg14: memref<384x128xf32, #tpu.memory_space<vmem>>, %arg15: memref<1x128xf32, #tpu.memory_space<vmem>>, %arg16: memref<384x128xf32, #tpu.memory_space<vmem>>, %arg17: memref<1x128xf32, #tpu.memory_space<vmem>>, %arg18: memref<384x128xf32, #tpu.memory_space<vmem>>, %arg19: memref<1x128xf32, #tpu.memory_space<vmem>>, %arg20: memref<128x128xf32, #tpu.memory_space<vmem>>, %arg21: memref<1x128xf32, #tpu.memory_space<vmem>>, %arg22: memref<1x16x128xf32, #tpu.memory_space<vmem>>, %arg23: memref<32x128xf32, #tpu.memory_space<vmem>>, %arg24: memref<32x128xf32, #tpu.memory_space<vmem>>) attributes {dimension_semantics = [#tpu.dimension_semantics<parallel>], iteration_bounds = array<i64: 2>, scalar_prefetch = 0 : i64, scratch_operands = 2 : i64, tpu.core_type = #tpu.core_type<tc>, window_params = [{transform_indices = @transform_0, window_bounds = array<i64: 1, 16, 128>}, {pipeline_mode = #tpu.pipeline_mode<synchronous>, transform_indices = @transform_1, window_bounds = array<i64: 128, 128>}, {pipeline_mode = #tpu.pipeline_mode<synchronous>, transform_indices = @transform_2, window_bounds = array<i64: 1, 128>}, {pipeline_mode = #tpu.pipeline_mode<synchronous>, transform_indices = @transform_3, window_bounds = array<i64: 384, 128>}, {pipeline_mode = #tpu.pipeline_mode<synchronous>, transform_indices = @transform_4, window_bounds = array<i64: 1, 128>}, {pipeline_mode = #tpu.pipeline_mode<synchronous>, transform_indices = @transform_5, window_bounds = array<i64: 384, 128>}, {pipeline_mode = #tpu.pipeline_mode<synchronous>, transform_indices = @transform_6, window_bounds = array<i64: 1, 128>}, {pipeline_mode = #tpu.pipeline_mode<synchronous>, transform_indices = @transform_7, window_bounds = array<i64: 384, 128>}, {pipeline_mode = #tpu.pipeline_mode<synchronous>, transform_indices = @transform_8, window_bounds = array<i64: 1, 128>}, {pipeline_mode = #tpu.pipeline_mode<synchronous>, transform_indices = @transform_9, window_bounds = array<i64: 384, 128>}, {pipeline_mode = #tpu.pipeline_mode<synchronous>, transform_indices = @transform_10, window_bounds = array<i64: 1, 128>}, {pipeline_mode = #tpu.pipeline_mode<synchronous>, transform_indices = @transform_11, window_bounds = array<i64: 384, 128>}, {pipeline_mode = #tpu.pipeline_mode<synchronous>, transform_indices = @transform_12, window_bounds = array<i64: 1, 128>}, {pipeline_mode = #tpu.pipeline_mode<synchronous>, transform_indices = @transform_13, window_bounds = array<i64: 384, 128>}, {pipeline_mode = #tpu.pipeline_mode<synchronous>, transform_indices = @transform_14, window_bounds = array<i64: 1, 128>}, {pipeline_mode = #tpu.pipeline_mode<synchronous>, transform_indices = @transform_15, window_bounds = array<i64: 384, 128>}, {pipeline_mode = #tpu.pipeline_mode<synchronous>, transform_indices = @transform_16, window_bounds = array<i64: 1, 128>}, {pipeline_mode = #tpu.pipeline_mode<synchronous>, transform_indices = @transform_17, window_bounds = array<i64: 384, 128>}, {pipeline_mode = #tpu.pipeline_mode<synchronous>, transform_indices = @transform_18, window_bounds = array<i64: 1, 128>}, {pipeline_mode = #tpu.pipeline_mode<synchronous>, transform_indices = @transform_19, window_bounds = array<i64: 128, 128>}, {pipeline_mode = #tpu.pipeline_mode<synchronous>, transform_indices = @transform_20, window_bounds = array<i64: 1, 128>}, {transform_indices = @transform_21, window_bounds = array<i64: 1, 16, 128>}]} {
    %cst = arith.constant 0.000000e+00 : f32
    %0 = vector.broadcast %cst : f32 to vector<32x128xf32>
    %c0 = arith.constant 0 : index
    %c0_0 = arith.constant 0 : index
    %1 = vector.load %arg23[%c0, %c0_0] : memref<32x128xf32, #tpu.memory_space<vmem>>, vector<32x128xf32>
    tpu.vector_store %arg23[%c0, %c0_0], %0 {strides = array<i32>} : memref<32x128xf32, #tpu.memory_space<vmem>>, vector<32x128xf32>,
    %cst_1 = arith.constant 0.000000e+00 : f32
    %2 = vector.broadcast %cst_1 : f32 to vector<32x128xf32>
    %c0_2 = arith.constant 0 : index
    %c0_3 = arith.constant 0 : index
    %3 = vector.load %arg24[%c0_2, %c0_3] : memref<32x128xf32, #tpu.memory_space<vmem>>, vector<32x128xf32>
    tpu.vector_store %arg24[%c0_2, %c0_3], %2 {strides = array<i32>} : memref<32x128xf32, #tpu.memory_space<vmem>>, vector<32x128xf32>,
    %c0_4 = arith.constant 0 : index
    %c0_5 = arith.constant 0 : index
    %c0_6 = arith.constant 0 : index
    %4 = vector.load %arg1[%c0_4, %c0_5, %c0_6] : memref<1x16x128xf32, #tpu.memory_space<vmem>>, vector<1x16x128xf32>
    %5 = vector.shape_cast %4 : vector<1x16x128xf32> to vector<16x128xf32>
    %6 = arith.cmpf one, %5, %5 : vector<16x128xf32>
    %cst_7 = arith.constant 1.000000e+00 : f32
    %cst_8 = arith.constant 0.000000e+00 : f32
    %7 = vector.broadcast %cst_7 : f32 to vector<16x128xf32>
    %8 = vector.broadcast %cst_8 : f32 to vector<16x128xf32>
    %9 = arith.select %6, %7, %8 : vector<16x128xi1>, vector<16x128xf32>
    %cst_9 = arith.constant dense<0xFF800000> : vector<16xf32>
    %10 = vector.multi_reduction <maximumf>, %9, %cst_9 [1] : vector<16x128xf32> to vector<16xf32>
    %11 = vector.shape_cast %10 : vector<16xf32> to vector<16x1xf32>
    %cst_10 = arith.constant 0.000000e+00 : f32
    %12 = vector.broadcast %cst_10 : f32 to vector<16x1xf32>
    %13 = arith.cmpf ogt, %11, %12 : vector<16x1xf32>
    %cst_11 = arith.constant 0.000000e+00 : f32
    %14 = vector.shape_cast %13 : vector<16x1xi1> to vector<16x1xi1>
    %15 = vector.broadcast %14 : vector<16x1xi1> to vector<16x128xi1>
    %16 = vector.broadcast %cst_11 : f32 to vector<16x128xf32>
    %17 = arith.select %15, %16, %5 : vector<16x128xi1>, vector<16x128xf32>
    %c0_12 = arith.constant 0 : index
    %c0_13 = arith.constant 0 : index
    %18 = vector.load %arg2[%c0_12, %c0_13] : memref<128x128xf32, #tpu.memory_space<vmem>>, vector<128x128xf32>
    %19 = arith.truncf %17 : vector<16x128xf32> to vector<16x128xbf16>
    %20 = arith.truncf %18 : vector<128x128xf32> to vector<128x128xbf16>
    %cst_14 = arith.constant dense<0.000000e+00> : vector<16x128xf32>
    %21 = tpu.matmul %19, %20, %cst_14 {dimension_numbers = #tpu.dot_dimension_numbers<[1], [0], [0], [1], [0, 0, 1, 1], [], []>} : vector<16x128xbf16>, vector<128x128xbf16>, vector<16x128xf32> -> vector<16x128xf32>
    %c0_15 = arith.constant 0 : index
    %c0_16 = arith.constant 0 : index
    %22 = vector.load %arg3[%c0_15, %c0_16] : memref<1x128xf32, #tpu.memory_space<vmem>>, vector<1x128xf32>
    %23 = vector.broadcast %22 : vector<1x128xf32> to vector<16x128xf32>
    %24 = arith.addf %21, %23 : vector<16x128xf32>
    %cst_17 = arith.constant 0.000000e+00 : f32
    %25 = vector.broadcast %cst_17 : f32 to vector<16x1xf32>
    %26 = arith.cmpf ogt, %11, %25 : vector<16x1xf32>
    %cst_18 = arith.constant 0.000000e+00 : f32
    %27 = vector.shape_cast %26 : vector<16x1xi1> to vector<16x1xi1>
    %28 = vector.broadcast %27 : vector<16x1xi1> to vector<16x128xi1>
    %29 = vector.broadcast %cst_18 : f32 to vector<16x128xf32>
    %30 = arith.select %28, %29, %24 : vector<16x128xi1>, vector<16x128xf32>
    %c8 = arith.constant 8 : index
    %c0_19 = arith.constant 0 : index
    %31 = vector.load %arg23[%c8, %c0_19] : memref<32x128xf32, #tpu.memory_space<vmem>>, vector<16x128xf32>
    tpu.vector_store %arg23[%c8, %c0_19], %30 {strides = array<i32>} : memref<32x128xf32, #tpu.memory_space<vmem>>, vector<16x128xf32>,
    %c8_20 = arith.constant 8 : index
    %c0_21 = arith.constant 0 : index
    %32 = vector.load %arg23[%c8_20, %c0_21] : memref<32x128xf32, #tpu.memory_space<vmem>>, vector<16x128xf32>
    %c7 = arith.constant 7 : index
    %c0_22 = arith.constant 0 : index
    %33 = vector.load %arg23[%c7, %c0_22] : memref<32x128xf32, #tpu.memory_space<vmem>>, vector<18x128xf32>
    %cst_23 = arith.constant 5.000000e-01 : f32
    %34 = vector.broadcast %cst_23 : f32 to vector<18x128xf32>
    %35 = arith.mulf %34, %33 : vector<18x128xf32>
    %cst_24 = arith.constant 0.707106769 : f32
    %36 = vector.broadcast %cst_24 : f32 to vector<18x128xf32>
    %37 = arith.mulf %33, %36 : vector<18x128xf32>
    %38 = math.erf %37 : vector<18x128xf32>
    %cst_25 = arith.constant 1.000000e+00 : f32
    %39 = vector.broadcast %cst_25 : f32 to vector<18x128xf32>
    %40 = arith.addf %39, %38 : vector<18x128xf32>
    %41 = arith.mulf %35, %40 : vector<18x128xf32>
    %42 = vector.extract_strided_slice %41 {offsets = [0, 0], sizes = [16, 128], strides = [1, 1]} : vector<18x128xf32> to vector<16x128xf32>
    %43 = vector.extract_strided_slice %41 {offsets = [1, 0], sizes = [16, 128], strides = [1, 1]} : vector<18x128xf32> to vector<16x128xf32>
    %44 = vector.extract_strided_slice %41 {offsets = [2, 0], sizes = [16, 128], strides = [1, 1]} : vector<18x128xf32> to vector<16x128xf32>
    %45 = tpu.concatenate %42, %43, %44 in 1 : vector<16x128xf32>, vector<16x128xf32>, vector<16x128xf32> -> vector<16x384xf32>
    %c0_26 = arith.constant 0 : index
    %c0_27 = arith.constant 0 : index
    %46 = vector.load %arg4[%c0_26, %c0_27] : memref<384x128xf32, #tpu.memory_space<vmem>>, vector<384x128xf32>
    %47 = arith.truncf %45 : vector<16x384xf32> to vector<16x384xbf16>
    %48 = arith.truncf %46 : vector<384x128xf32> to vector<384x128xbf16>
    %cst_28 = arith.constant dense<0.000000e+00> : vector<16x128xf32>
    %49 = tpu.matmul %47, %48, %cst_28 {dimension_numbers = #tpu.dot_dimension_numbers<[1], [0], [0], [1], [0, 0, 1, 1], [], []>} : vector<16x384xbf16>, vector<384x128xbf16>, vector<16x128xf32> -> vector<16x128xf32>
    %c0_29 = arith.constant 0 : index
    %c0_30 = arith.constant 0 : index
    %50 = vector.load %arg5[%c0_29, %c0_30] : memref<1x128xf32, #tpu.memory_space<vmem>>, vector<1x128xf32>
    %51 = vector.broadcast %50 : vector<1x128xf32> to vector<16x128xf32>
    %52 = arith.addf %49, %51 : vector<16x128xf32>
    %c8_31 = arith.constant 8 : index
    %c0_32 = arith.constant 0 : index
    %53 = vector.load %arg24[%c8_31, %c0_32] : memref<32x128xf32, #tpu.memory_space<vmem>>, vector<16x128xf32>
    tpu.vector_store %arg24[%c8_31, %c0_32], %52 {strides = array<i32>} : memref<32x128xf32, #tpu.memory_space<vmem>>, vector<16x128xf32>,
    %c7_33 = arith.constant 7 : index
    %c0_34 = arith.constant 0 : index
    %54 = vector.load %arg24[%c7_33, %c0_34] : memref<32x128xf32, #tpu.memory_space<vmem>>, vector<18x128xf32>
    %cst_35 = arith.constant 5.000000e-01 : f32
    %55 = vector.broadcast %cst_35 : f32 to vector<18x128xf32>
    %56 = arith.mulf %55, %54 : vector<18x128xf32>
    %cst_36 = arith.constant 0.707106769 : f32
    %57 = vector.broadcast %cst_36 : f32 to vector<18x128xf32>
    %58 = arith.mulf %54, %57 : vector<18x128xf32>
    %59 = math.erf %58 : vector<18x128xf32>
    %cst_37 = arith.constant 1.000000e+00 : f32
    %60 = vector.broadcast %cst_37 : f32 to vector<18x128xf32>
    %61 = arith.addf %60, %59 : vector<18x128xf32>
    %62 = arith.mulf %56, %61 : vector<18x128xf32>
    %63 = vector.extract_strided_slice %62 {offsets = [0, 0], sizes = [16, 128], strides = [1, 1]} : vector<18x128xf32> to vector<16x128xf32>
    %64 = vector.extract_strided_slice %62 {offsets = [1, 0], sizes = [16, 128], strides = [1, 1]} : vector<18x128xf32> to vector<16x128xf32>
    %65 = vector.extract_strided_slice %62 {offsets = [2, 0], sizes = [16, 128], strides = [1, 1]} : vector<18x128xf32> to vector<16x128xf32>
    %66 = tpu.concatenate %63, %64, %65 in 1 : vector<16x128xf32>, vector<16x128xf32>, vector<16x128xf32> -> vector<16x384xf32>
    %c0_38 = arith.constant 0 : index
    %c0_39 = arith.constant 0 : index
    %67 = vector.load %arg6[%c0_38, %c0_39] : memref<384x128xf32, #tpu.memory_space<vmem>>, vector<384x128xf32>
    %68 = arith.truncf %66 : vector<16x384xf32> to vector<16x384xbf16>
    %69 = arith.truncf %67 : vector<384x128xf32> to vector<384x128xbf16>
    %cst_40 = arith.constant dense<0.000000e+00> : vector<16x128xf32>
    %70 = tpu.matmul %68, %69, %cst_40 {dimension_numbers = #tpu.dot_dimension_numbers<[1], [0], [0], [1], [0, 0, 1, 1], [], []>} : vector<16x384xbf16>, vector<384x128xbf16>, vector<16x128xf32> -> vector<16x128xf32>
    %c0_41 = arith.constant 0 : index
    %c0_42 = arith.constant 0 : index
    %71 = vector.load %arg7[%c0_41, %c0_42] : memref<1x128xf32, #tpu.memory_space<vmem>>, vector<1x128xf32>
    %72 = vector.broadcast %71 : vector<1x128xf32> to vector<16x128xf32>
    %73 = arith.addf %70, %72 : vector<16x128xf32>
    %74 = arith.addf %73, %32 : vector<16x128xf32>
    %c8_43 = arith.constant 8 : index
    %c0_44 = arith.constant 0 : index
    %75 = vector.load %arg23[%c8_43, %c0_44] : memref<32x128xf32, #tpu.memory_space<vmem>>, vector<16x128xf32>
    tpu.vector_store %arg23[%c8_43, %c0_44], %74 {strides = array<i32>} : memref<32x128xf32, #tpu.memory_space<vmem>>, vector<16x128xf32>,
    %c8_45 = arith.constant 8 : index
    %c0_46 = arith.constant 0 : index
    %76 = vector.load %arg23[%c8_45, %c0_46] : memref<32x128xf32, #tpu.memory_space<vmem>>, vector<16x128xf32>
    %c6 = arith.constant 6 : index
    %c0_47 = arith.constant 0 : index
    %77 = vector.load %arg23[%c6, %c0_47] : memref<32x128xf32, #tpu.memory_space<vmem>>, vector<20x128xf32>
    %cst_48 = arith.constant 5.000000e-01 : f32
    %78 = vector.broadcast %cst_48 : f32 to vector<20x128xf32>
    %79 = arith.mulf %78, %77 : vector<20x128xf32>
    %cst_49 = arith.constant 0.707106769 : f32
    %80 = vector.broadcast %cst_49 : f32 to vector<20x128xf32>
    %81 = arith.mulf %77, %80 : vector<20x128xf32>
    %82 = math.erf %81 : vector<20x128xf32>
    %cst_50 = arith.constant 1.000000e+00 : f32
    %83 = vector.broadcast %cst_50 : f32 to vector<20x128xf32>
    %84 = arith.addf %83, %82 : vector<20x128xf32>
    %85 = arith.mulf %79, %84 : vector<20x128xf32>
    %86 = vector.extract_strided_slice %85 {offsets = [0, 0], sizes = [16, 128], strides = [1, 1]} : vector<20x128xf32> to vector<16x128xf32>
    %87 = vector.extract_strided_slice %85 {offsets = [2, 0], sizes = [16, 128], strides = [1, 1]} : vector<20x128xf32> to vector<16x128xf32>
    %88 = vector.extract_strided_slice %85 {offsets = [4, 0], sizes = [16, 128], strides = [1, 1]} : vector<20x128xf32> to vector<16x128xf32>
    %89 = tpu.concatenate %86, %87, %88 in 1 : vector<16x128xf32>, vector<16x128xf32>, vector<16x128xf32> -> vector<16x384xf32>
    %c0_51 = arith.constant 0 : index
    %c0_52 = arith.constant 0 : index
    %90 = vector.load %arg8[%c0_51, %c0_52] : memref<384x128xf32, #tpu.memory_space<vmem>>, vector<384x128xf32>
    %91 = arith.truncf %89 : vector<16x384xf32> to vector<16x384xbf16>
    %92 = arith.truncf %90 : vector<384x128xf32> to vector<384x128xbf16>
    %cst_53 = arith.constant dense<0.000000e+00> : vector<16x128xf32>
    %93 = tpu.matmul %91, %92, %cst_53 {dimension_numbers = #tpu.dot_dimension_numbers<[1], [0], [0], [1], [0, 0, 1, 1], [], []>} : vector<16x384xbf16>, vector<384x128xbf16>, vector<16x128xf32> -> vector<16x128xf32>
    %c0_54 = arith.constant 0 : index
    %c0_55 = arith.constant 0 : index
    %94 = vector.load %arg9[%c0_54, %c0_55] : memref<1x128xf32, #tpu.memory_space<vmem>>, vector<1x128xf32>
    %95 = vector.broadcast %94 : vector<1x128xf32> to vector<16x128xf32>
    %96 = arith.addf %93, %95 : vector<16x128xf32>
    %c8_56 = arith.constant 8 : index
    %c0_57 = arith.constant 0 : index
    %97 = vector.load %arg24[%c8_56, %c0_57] : memref<32x128xf32, #tpu.memory_space<vmem>>, vector<16x128xf32>
    tpu.vector_store %arg24[%c8_56, %c0_57], %96 {strides = array<i32>} : memref<32x128xf32, #tpu.memory_space<vmem>>, vector<16x128xf32>,
    %c6_58 = arith.constant 6 : index
    %c0_59 = arith.constant 0 : index
    %98 = vector.load %arg24[%c6_58, %c0_59] : memref<32x128xf32, #tpu.memory_space<vmem>>, vector<20x128xf32>
    %cst_60 = arith.constant 5.000000e-01 : f32
    %99 = vector.broadcast %cst_60 : f32 to vector<20x128xf32>
    %100 = arith.mulf %99, %98 : vector<20x128xf32>
    %cst_61 = arith.constant 0.707106769 : f32
    %101 = vector.broadcast %cst_61 : f32 to vector<20x128xf32>
    %102 = arith.mulf %98, %101 : vector<20x128xf32>
    %103 = math.erf %102 : vector<20x128xf32>
    %cst_62 = arith.constant 1.000000e+00 : f32
    %104 = vector.broadcast %cst_62 : f32 to vector<20x128xf32>
    %105 = arith.addf %104, %103 : vector<20x128xf32>
    %106 = arith.mulf %100, %105 : vector<20x128xf32>
    %107 = vector.extract_strided_slice %106 {offsets = [0, 0], sizes = [16, 128], strides = [1, 1]} : vector<20x128xf32> to vector<16x128xf32>
    %108 = vector.extract_strided_slice %106 {offsets = [2, 0], sizes = [16, 128], strides = [1, 1]} : vector<20x128xf32> to vector<16x128xf32>
    %109 = vector.extract_strided_slice %106 {offsets = [4, 0], sizes = [16, 128], strides = [1, 1]} : vector<20x128xf32> to vector<16x128xf32>
    %110 = tpu.concatenate %107, %108, %109 in 1 : vector<16x128xf32>, vector<16x128xf32>, vector<16x128xf32> -> vector<16x384xf32>
    %c0_63 = arith.constant 0 : index
    %c0_64 = arith.constant 0 : index
    %111 = vector.load %arg10[%c0_63, %c0_64] : memref<384x128xf32, #tpu.memory_space<vmem>>, vector<384x128xf32>
    %112 = arith.truncf %110 : vector<16x384xf32> to vector<16x384xbf16>
    %113 = arith.truncf %111 : vector<384x128xf32> to vector<384x128xbf16>
    %cst_65 = arith.constant dense<0.000000e+00> : vector<16x128xf32>
    %114 = tpu.matmul %112, %113, %cst_65 {dimension_numbers = #tpu.dot_dimension_numbers<[1], [0], [0], [1], [0, 0, 1, 1], [], []>} : vector<16x384xbf16>, vector<384x128xbf16>, vector<16x128xf32> -> vector<16x128xf32>
    %c0_66 = arith.constant 0 : index
    %c0_67 = arith.constant 0 : index
    %115 = vector.load %arg11[%c0_66, %c0_67] : memref<1x128xf32, #tpu.memory_space<vmem>>, vector<1x128xf32>
    %116 = vector.broadcast %115 : vector<1x128xf32> to vector<16x128xf32>
    %117 = arith.addf %114, %116 : vector<16x128xf32>
    %118 = arith.addf %117, %76 : vector<16x128xf32>
    %c8_68 = arith.constant 8 : index
    %c0_69 = arith.constant 0 : index
    %119 = vector.load %arg23[%c8_68, %c0_69] : memref<32x128xf32, #tpu.memory_space<vmem>>, vector<16x128xf32>
    tpu.vector_store %arg23[%c8_68, %c0_69], %118 {strides = array<i32>} : memref<32x128xf32, #tpu.memory_space<vmem>>, vector<16x128xf32>,
    %c8_70 = arith.constant 8 : index
    %c0_71 = arith.constant 0 : index
    %120 = vector.load %arg23[%c8_70, %c0_71] : memref<32x128xf32, #tpu.memory_space<vmem>>, vector<16x128xf32>
    %c4 = arith.constant 4 : index
    %c0_72 = arith.constant 0 : index
    %121 = vector.load %arg23[%c4, %c0_72] : memref<32x128xf32, #tpu.memory_space<vmem>>, vector<24x128xf32>
    %cst_73 = arith.constant 5.000000e-01 : f32
    %122 = vector.broadcast %cst_73 : f32 to vector<24x128xf32>
    %123 = arith.mulf %122, %121 : vector<24x128xf32>
    %cst_74 = arith.constant 0.707106769 : f32
    %124 = vector.broadcast %cst_74 : f32 to vector<24x128xf32>
    %125 = arith.mulf %121, %124 : vector<24x128xf32>
    %126 = math.erf %125 : vector<24x128xf32>
    %cst_75 = arith.constant 1.000000e+00 : f32
    %127 = vector.broadcast %cst_75 : f32 to vector<24x128xf32>
    %128 = arith.addf %127, %126 : vector<24x128xf32>
    %129 = arith.mulf %123, %128 : vector<24x128xf32>
    %130 = vector.extract_strided_slice %129 {offsets = [0, 0], sizes = [16, 128], strides = [1, 1]} : vector<24x128xf32> to vector<16x128xf32>
    %131 = vector.extract_strided_slice %129 {offsets = [4, 0], sizes = [16, 128], strides = [1, 1]} : vector<24x128xf32> to vector<16x128xf32>
    %132 = vector.extract_strided_slice %129 {offsets = [8, 0], sizes = [16, 128], strides = [1, 1]} : vector<24x128xf32> to vector<16x128xf32>
    %133 = tpu.concatenate %130, %131, %132 in 1 : vector<16x128xf32>, vector<16x128xf32>, vector<16x128xf32> -> vector<16x384xf32>
    %c0_76 = arith.constant 0 : index
    %c0_77 = arith.constant 0 : index
    %134 = vector.load %arg12[%c0_76, %c0_77] : memref<384x128xf32, #tpu.memory_space<vmem>>, vector<384x128xf32>
    %135 = arith.truncf %133 : vector<16x384xf32> to vector<16x384xbf16>
    %136 = arith.truncf %134 : vector<384x128xf32> to vector<384x128xbf16>
    %cst_78 = arith.constant dense<0.000000e+00> : vector<16x128xf32>
    %137 = tpu.matmul %135, %136, %cst_78 {dimension_numbers = #tpu.dot_dimension_numbers<[1], [0], [0], [1], [0, 0, 1, 1], [], []>} : vector<16x384xbf16>, vector<384x128xbf16>, vector<16x128xf32> -> vector<16x128xf32>
    %c0_79 = arith.constant 0 : index
    %c0_80 = arith.constant 0 : index
    %138 = vector.load %arg13[%c0_79, %c0_80] : memref<1x128xf32, #tpu.memory_space<vmem>>, vector<1x128xf32>
    %139 = vector.broadcast %138 : vector<1x128xf32> to vector<16x128xf32>
    %140 = arith.addf %137, %139 : vector<16x128xf32>
    %c8_81 = arith.constant 8 : index
    %c0_82 = arith.constant 0 : index
    %141 = vector.load %arg24[%c8_81, %c0_82] : memref<32x128xf32, #tpu.memory_space<vmem>>, vector<16x128xf32>
    tpu.vector_store %arg24[%c8_81, %c0_82], %140 {strides = array<i32>} : memref<32x128xf32, #tpu.memory_space<vmem>>, vector<16x128xf32>,
    %c4_83 = arith.constant 4 : index
    %c0_84 = arith.constant 0 : index
    %142 = vector.load %arg24[%c4_83, %c0_84] : memref<32x128xf32, #tpu.memory_space<vmem>>, vector<24x128xf32>
    %cst_85 = arith.constant 5.000000e-01 : f32
    %143 = vector.broadcast %cst_85 : f32 to vector<24x128xf32>
    %144 = arith.mulf %143, %142 : vector<24x128xf32>
    %cst_86 = arith.constant 0.707106769 : f32
    %145 = vector.broadcast %cst_86 : f32 to vector<24x128xf32>
    %146 = arith.mulf %142, %145 : vector<24x128xf32>
    %147 = math.erf %146 : vector<24x128xf32>
    %cst_87 = arith.constant 1.000000e+00 : f32
    %148 = vector.broadcast %cst_87 : f32 to vector<24x128xf32>
    %149 = arith.addf %148, %147 : vector<24x128xf32>
    %150 = arith.mulf %144, %149 : vector<24x128xf32>
    %151 = vector.extract_strided_slice %150 {offsets = [0, 0], sizes = [16, 128], strides = [1, 1]} : vector<24x128xf32> to vector<16x128xf32>
    %152 = vector.extract_strided_slice %150 {offsets = [4, 0], sizes = [16, 128], strides = [1, 1]} : vector<24x128xf32> to vector<16x128xf32>
    %153 = vector.extract_strided_slice %150 {offsets = [8, 0], sizes = [16, 128], strides = [1, 1]} : vector<24x128xf32> to vector<16x128xf32>
    %154 = tpu.concatenate %151, %152, %153 in 1 : vector<16x128xf32>, vector<16x128xf32>, vector<16x128xf32> -> vector<16x384xf32>
    %c0_88 = arith.constant 0 : index
    %c0_89 = arith.constant 0 : index
    %155 = vector.load %arg14[%c0_88, %c0_89] : memref<384x128xf32, #tpu.memory_space<vmem>>, vector<384x128xf32>
    %156 = arith.truncf %154 : vector<16x384xf32> to vector<16x384xbf16>
    %157 = arith.truncf %155 : vector<384x128xf32> to vector<384x128xbf16>
    %cst_90 = arith.constant dense<0.000000e+00> : vector<16x128xf32>
    %158 = tpu.matmul %156, %157, %cst_90 {dimension_numbers = #tpu.dot_dimension_numbers<[1], [0], [0], [1], [0, 0, 1, 1], [], []>} : vector<16x384xbf16>, vector<384x128xbf16>, vector<16x128xf32> -> vector<16x128xf32>
    %c0_91 = arith.constant 0 : index
    %c0_92 = arith.constant 0 : index
    %159 = vector.load %arg15[%c0_91, %c0_92] : memref<1x128xf32, #tpu.memory_space<vmem>>, vector<1x128xf32>
    %160 = vector.broadcast %159 : vector<1x128xf32> to vector<16x128xf32>
    %161 = arith.addf %158, %160 : vector<16x128xf32>
    %162 = arith.addf %161, %120 : vector<16x128xf32>
    %c8_93 = arith.constant 8 : index
    %c0_94 = arith.constant 0 : index
    %163 = vector.load %arg23[%c8_93, %c0_94] : memref<32x128xf32, #tpu.memory_space<vmem>>, vector<16x128xf32>
    tpu.vector_store %arg23[%c8_93, %c0_94], %162 {strides = array<i32>} : memref<32x128xf32, #tpu.memory_space<vmem>>, vector<16x128xf32>,
    %c8_95 = arith.constant 8 : index
    %c0_96 = arith.constant 0 : index
    %164 = vector.load %arg23[%c8_95, %c0_96] : memref<32x128xf32, #tpu.memory_space<vmem>>, vector<16x128xf32>
    %c0_97 = arith.constant 0 : index
    %c0_98 = arith.constant 0 : index
    %165 = vector.load %arg23[%c0_97, %c0_98] : memref<32x128xf32, #tpu.memory_space<vmem>>, vector<32x128xf32>
    %cst_99 = arith.constant 5.000000e-01 : f32
    %166 = vector.broadcast %cst_99 : f32 to vector<32x128xf32>
    %167 = arith.mulf %166, %165 : vector<32x128xf32>
    %cst_100 = arith.constant 0.707106769 : f32
    %168 = vector.broadcast %cst_100 : f32 to vector<32x128xf32>
    %169 = arith.mulf %165, %168 : vector<32x128xf32>
    %170 = math.erf %169 : vector<32x128xf32>
    %cst_101 = arith.constant 1.000000e+00 : f32
    %171 = vector.broadcast %cst_101 : f32 to vector<32x128xf32>
    %172 = arith.addf %171, %170 : vector<32x128xf32>
    %173 = arith.mulf %167, %172 : vector<32x128xf32>
    %174 = vector.extract_strided_slice %173 {offsets = [0, 0], sizes = [16, 128], strides = [1, 1]} : vector<32x128xf32> to vector<16x128xf32>
    %175 = vector.extract_strided_slice %173 {offsets = [8, 0], sizes = [16, 128], strides = [1, 1]} : vector<32x128xf32> to vector<16x128xf32>
    %176 = vector.extract_strided_slice %173 {offsets = [16, 0], sizes = [16, 128], strides = [1, 1]} : vector<32x128xf32> to vector<16x128xf32>
    %177 = tpu.concatenate %174, %175, %176 in 1 : vector<16x128xf32>, vector<16x128xf32>, vector<16x128xf32> -> vector<16x384xf32>
    %c0_102 = arith.constant 0 : index
    %c0_103 = arith.constant 0 : index
    %178 = vector.load %arg16[%c0_102, %c0_103] : memref<384x128xf32, #tpu.memory_space<vmem>>, vector<384x128xf32>
    %179 = arith.truncf %177 : vector<16x384xf32> to vector<16x384xbf16>
    %180 = arith.truncf %178 : vector<384x128xf32> to vector<384x128xbf16>
    %cst_104 = arith.constant dense<0.000000e+00> : vector<16x128xf32>
    %181 = tpu.matmul %179, %180, %cst_104 {dimension_numbers = #tpu.dot_dimension_numbers<[1], [0], [0], [1], [0, 0, 1, 1], [], []>} : vector<16x384xbf16>, vector<384x128xbf16>, vector<16x128xf32> -> vector<16x128xf32>
    %c0_105 = arith.constant 0 : index
    %c0_106 = arith.constant 0 : index
    %182 = vector.load %arg17[%c0_105, %c0_106] : memref<1x128xf32, #tpu.memory_space<vmem>>, vector<1x128xf32>
    %183 = vector.broadcast %182 : vector<1x128xf32> to vector<16x128xf32>
    %184 = arith.addf %181, %183 : vector<16x128xf32>
    %c8_107 = arith.constant 8 : index
    %c0_108 = arith.constant 0 : index
    %185 = vector.load %arg24[%c8_107, %c0_108] : memref<32x128xf32, #tpu.memory_space<vmem>>, vector<16x128xf32>
    tpu.vector_store %arg24[%c8_107, %c0_108], %184 {strides = array<i32>} : memref<32x128xf32, #tpu.memory_space<vmem>>, vector<16x128xf32>,
    %c0_109 = arith.constant 0 : index
    %c0_110 = arith.constant 0 : index
    %186 = vector.load %arg24[%c0_109, %c0_110] : memref<32x128xf32, #tpu.memory_space<vmem>>, vector<32x128xf32>
    %cst_111 = arith.constant 5.000000e-01 : f32
    %187 = vector.broadcast %cst_111 : f32 to vector<32x128xf32>
    %188 = arith.mulf %187, %186 : vector<32x128xf32>
    %cst_112 = arith.constant 0.707106769 : f32
    %189 = vector.broadcast %cst_112 : f32 to vector<32x128xf32>
    %190 = arith.mulf %186, %189 : vector<32x128xf32>
    %191 = math.erf %190 : vector<32x128xf32>
    %cst_113 = arith.constant 1.000000e+00 : f32
    %192 = vector.broadcast %cst_113 : f32 to vector<32x128xf32>
    %193 = arith.addf %192, %191 : vector<32x128xf32>
    %194 = arith.mulf %188, %193 : vector<32x128xf32>
    %195 = vector.extract_strided_slice %194 {offsets = [0, 0], sizes = [16, 128], strides = [1, 1]} : vector<32x128xf32> to vector<16x128xf32>
    %196 = vector.extract_strided_slice %194 {offsets = [8, 0], sizes = [16, 128], strides = [1, 1]} : vector<32x128xf32> to vector<16x128xf32>
    %197 = vector.extract_strided_slice %194 {offsets = [16, 0], sizes = [16, 128], strides = [1, 1]} : vector<32x128xf32> to vector<16x128xf32>
    %198 = tpu.concatenate %195, %196, %197 in 1 : vector<16x128xf32>, vector<16x128xf32>, vector<16x128xf32> -> vector<16x384xf32>
    %c0_114 = arith.constant 0 : index
    %c0_115 = arith.constant 0 : index
    %199 = vector.load %arg18[%c0_114, %c0_115] : memref<384x128xf32, #tpu.memory_space<vmem>>, vector<384x128xf32>
    %200 = arith.truncf %198 : vector<16x384xf32> to vector<16x384xbf16>
    %201 = arith.truncf %199 : vector<384x128xf32> to vector<384x128xbf16>
    %cst_116 = arith.constant dense<0.000000e+00> : vector<16x128xf32>
    %202 = tpu.matmul %200, %201, %cst_116 {dimension_numbers = #tpu.dot_dimension_numbers<[1], [0], [0], [1], [0, 0, 1, 1], [], []>} : vector<16x384xbf16>, vector<384x128xbf16>, vector<16x128xf32> -> vector<16x128xf32>
    %c0_117 = arith.constant 0 : index
    %c0_118 = arith.constant 0 : index
    %203 = vector.load %arg19[%c0_117, %c0_118] : memref<1x128xf32, #tpu.memory_space<vmem>>, vector<1x128xf32>
    %204 = vector.broadcast %203 : vector<1x128xf32> to vector<16x128xf32>
    %205 = arith.addf %202, %204 : vector<16x128xf32>
    %c0_119 = arith.constant 0 : index
    %c0_120 = arith.constant 0 : index
    %206 = vector.load %arg20[%c0_119, %c0_120] : memref<128x128xf32, #tpu.memory_space<vmem>>, vector<128x128xf32>
    %207 = arith.truncf %164 : vector<16x128xf32> to vector<16x128xbf16>
    %208 = arith.truncf %206 : vector<128x128xf32> to vector<128x128xbf16>
    %cst_121 = arith.constant dense<0.000000e+00> : vector<16x128xf32>
    %209 = tpu.matmul %207, %208, %cst_121 {dimension_numbers = #tpu.dot_dimension_numbers<[1], [0], [0], [1], [0, 0, 1, 1], [], []>} : vector<16x128xbf16>, vector<128x128xbf16>, vector<16x128xf32> -> vector<16x128xf32>
    %c0_122 = arith.constant 0 : index
    %c0_123 = arith.constant 0 : index
    %210 = vector.load %arg21[%c0_122, %c0_123] : memref<1x128xf32, #tpu.memory_space<vmem>>, vector<1x128xf32>
    %211 = vector.broadcast %210 : vector<1x128xf32> to vector<16x128xf32>
    %212 = arith.addf %209, %211 : vector<16x128xf32>
    %213 = arith.addf %205, %212 : vector<16x128xf32>
    %c0_124 = arith.constant 0 : index
    %c0_125 = arith.constant 0 : index
    %c0_126 = arith.constant 0 : index
    %214 = vector.load %arg22[%c0_124, %c0_125, %c0_126] : memref<1x16x128xf32, #tpu.memory_space<vmem>>, vector<1x16x128xf32>
    %215 = vector.shape_cast %214 : vector<1x16x128xf32> to vector<16x128xf32>
    %216 = vector.shape_cast %213 : vector<16x128xf32> to vector<1x16x128xf32>
    tpu.vector_store %arg22[%c0_124, %c0_125, %c0_126], %216 {strides = array<i32>} : memref<1x16x128xf32, #tpu.memory_space<vmem>>, vector<1x16x128xf32>,
    return
  }
  func.func @transform_0(%arg0: i32) -> (i32, i32, i32) {
    %c0_i32 = arith.constant 0 : i32
    %c0_i32_0 = arith.constant 0 : i32
    %c0_i32_1 = arith.constant 0 : i32
    return %arg0, %c0_i32, %c0_i32_0 : i32, i32, i32
  }
  func.func @transform_1(%arg0: i32) -> (i32, i32) {
    %c0_i32 = arith.constant 0 : i32
    %c0_i32_0 = arith.constant 0 : i32
    %c0_i32_1 = arith.constant 0 : i32
    return %c0_i32, %c0_i32_0 : i32, i32
  }
  func.func @transform_2(%arg0: i32) -> (i32, i32) {
    %c0_i32 = arith.constant 0 : i32
    %c0_i32_0 = arith.constant 0 : i32
    %c0_i32_1 = arith.constant 0 : i32
    return %c0_i32, %c0_i32_0 : i32, i32
  }
  func.func @transform_3(%arg0: i32) -> (i32, i32) {
    %c0_i32 = arith.constant 0 : i32
    %c0_i32_0 = arith.constant 0 : i32
    %c0_i32_1 = arith.constant 0 : i32
    return %c0_i32, %c0_i32_0 : i32, i32
  }
  func.func @transform_4(%arg0: i32) -> (i32, i32) {
    %c0_i32 = arith.constant 0 : i32
    %c0_i32_0 = arith.constant 0 : i32
    %c0_i32_1 = arith.constant 0 : i32
    return %c0_i32, %c0_i32_0 : i32, i32
  }
  func.func @transform_5(%arg0: i32) -> (i32, i32) {
    %c0_i32 = arith.constant 0 : i32
    %c0_i32_0 = arith.constant 0 : i32
    %c0_i32_1 = arith.constant 0 : i32
    return %c0_i32, %c0_i32_0 : i32, i32
  }
  func.func @transform_6(%arg0: i32) -> (i32, i32) {
    %c0_i32 = arith.constant 0 : i32
    %c0_i32_0 = arith.constant 0 : i32
    %c0_i32_1 = arith.constant 0 : i32
    return %c0_i32, %c0_i32_0 : i32, i32
  }
  func.func @transform_7(%arg0: i32) -> (i32, i32) {
    %c0_i32 = arith.constant 0 : i32
    %c0_i32_0 = arith.constant 0 : i32
    %c0_i32_1 = arith.constant 0 : i32
    return %c0_i32, %c0_i32_0 : i32, i32
  }
  func.func @transform_8(%arg0: i32) -> (i32, i32) {
    %c0_i32 = arith.constant 0 : i32
    %c0_i32_0 = arith.constant 0 : i32
    %c0_i32_1 = arith.constant 0 : i32
    return %c0_i32, %c0_i32_0 : i32, i32
  }
  func.func @transform_9(%arg0: i32) -> (i32, i32) {
    %c0_i32 = arith.constant 0 : i32
    %c0_i32_0 = arith.constant 0 : i32
    %c0_i32_1 = arith.constant 0 : i32
    return %c0_i32, %c0_i32_0 : i32, i32
  }
  func.func @transform_10(%arg0: i32) -> (i32, i32) {
    %c0_i32 = arith.constant 0 : i32
    %c0_i32_0 = arith.constant 0 : i32
    %c0_i32_1 = arith.constant 0 : i32
    return %c0_i32, %c0_i32_0 : i32, i32
  }
  func.func @transform_11(%arg0: i32) -> (i32, i32) {
    %c0_i32 = arith.constant 0 : i32
    %c0_i32_0 = arith.constant 0 : i32
    %c0_i32_1 = arith.constant 0 : i32
    return %c0_i32, %c0_i32_0 : i32, i32
  }
  func.func @transform_12(%arg0: i32) -> (i32, i32) {
    %c0_i32 = arith.constant 0 : i32
    %c0_i32_0 = arith.constant 0 : i32
    %c0_i32_1 = arith.constant 0 : i32
    return %c0_i32, %c0_i32_0 : i32, i32
  }
  func.func @transform_13(%arg0: i32) -> (i32, i32) {
    %c0_i32 = arith.constant 0 : i32
    %c0_i32_0 = arith.constant 0 : i32
    %c0_i32_1 = arith.constant 0 : i32
    return %c0_i32, %c0_i32_0 : i32, i32
  }
  func.func @transform_14(%arg0: i32) -> (i32, i32) {
    %c0_i32 = arith.constant 0 : i32
    %c0_i32_0 = arith.constant 0 : i32
    %c0_i32_1 = arith.constant 0 : i32
    return %c0_i32, %c0_i32_0 : i32, i32
  }
  func.func @transform_15(%arg0: i32) -> (i32, i32) {
    %c0_i32 = arith.constant 0 : i32
    %c0_i32_0 = arith.constant 0 : i32
    %c0_i32_1 = arith.constant 0 : i32
    return %c0_i32, %c0_i32_0 : i32, i32
  }
  func.func @transform_16(%arg0: i32) -> (i32, i32) {
    %c0_i32 = arith.constant 0 : i32
    %c0_i32_0 = arith.constant 0 : i32
    %c0_i32_1 = arith.constant 0 : i32
    return %c0_i32, %c0_i32_0 : i32, i32
  }
  func.func @transform_17(%arg0: i32) -> (i32, i32) {
    %c0_i32 = arith.constant 0 : i32
    %c0_i32_0 = arith.constant 0 : i32
    %c0_i32_1 = arith.constant 0 : i32
    return %c0_i32, %c0_i32_0 : i32, i32
  }
  func.func @transform_18(%arg0: i32) -> (i32, i32) {
    %c0_i32 = arith.constant 0 : i32
    %c0_i32_0 = arith.constant 0 : i32
    %c0_i32_1 = arith.constant 0 : i32
    return %c0_i32, %c0_i32_0 : i32, i32
  }
  func.func @transform_19(%arg0: i32) -> (i32, i32) {
    %c0_i32 = arith.constant 0 : i32
    %c0_i32_0 = arith.constant 0 : i32
    %c0_i32_1 = arith.constant 0 : i32
    return %c0_i32, %c0_i32_0 : i32, i32
  }
  func.func @transform_20(%arg0: i32) -> (i32, i32) {
    %c0_i32 = arith.constant 0 : i32
    %c0_i32_0 = arith.constant 0 : i32
    %c0_i32_1 = arith.constant 0 : i32
    return %c0_i32, %c0_i32_0 : i32, i32
  }
  func.func @transform_21(%arg0: i32) -> (i32, i32, i32) {
    %c0_i32 = arith.constant 0 : i32
    %c0_i32_0 = arith.constant 0 : i32
    %c0_i32_1 = arith.constant 0 : i32
    return %arg0, %c0_i32, %c0_i32_0 : i32, i32, i32
  }
}

</mosaic_0001>

<bundles_post_ra>
// kernel: tpu_custom_call.1
= control target key start
LH: loop header
LB: loop body
LE: loop exit
PB: predicated region body
PF: predicated region fallthrough
CT: control target
= control target key end

     0   :  { %s4713_s0 = inlined_call_operand.hbm [shape: f32[2,16,128], index: 0, kind: input, shape index: {}]   ;;  %s4714_s1 = inlined_call_operand.hbm [shape: f32[128,128], index: 1, kind: input, shape index: {}]   ;;  %s4715_s2 = inlined_call_operand.vmem [shape: f32[1,128], index: 2, kind: input, shape index: {}]   ;;  %s4716_s3 = inlined_call_operand.hbm [shape: f32[384,128], index: 3, kind: input, shape index: {}]   ;;  %s4717_s4 = inlined_call_operand.vmem [shape: f32[1,128], index: 4, kind: input, shape index: {}]   ;;  %s4718_s5 = inlined_call_operand.hbm [shape: f32[384,128], index: 5, kind: input, shape index: {}]   ;;  %s4719_s6 = inlined_call_operand.vmem [shape: f32[1,128], index: 6, kind: input, shape index: {}]   ;;  %s4720_s7 = inlined_call_operand.hbm [shape: f32[384,128], index: 7, kind: input, shape index: {}]   ;;  %s4721_s8 = inlined_call_operand.vmem [shape: f32[1,128], index: 8, kind: input, shape index: {}]   ;;  %s4722_s9 = inlined_call_operand.hbm [shape: f32[384,128], index: 9, kind: input, shape index: {}]   ;;  %s4723_s10 = inlined_call_operand.vmem [shape: f32[1,128], index: 10, kind: input, shape index: {}]   ;;  %s4724_s11 = inlined_call_operand.hbm [shape: f32[384,128], index: 11, kind: input, shape index: {}]   ;;  %s4725_s12 = inlined_call_operand.vmem [shape: f32[1,128], index: 12, kind: input, shape index: {}]   ;;  %s4726_s13 = inlined_call_operand.hbm [shape: f32[384,128], index: 13, kind: input, shape index: {}]   ;;  %s4727_s14 = inlined_call_operand.vmem [shape: f32[1,128], index: 14, kind: input, shape index: {}]   ;;  %s4728_s15 = inlined_call_operand.hbm [shape: f32[384,128], index: 15, kind: input, shape index: {}]   ;;  %s4729_s16 = inlined_call_operand.vmem [shape: f32[1,128], index: 16, kind: input, shape index: {}]   ;;  %s4730_s17 = inlined_call_operand.hbm [shape: f32[384,128], index: 17, kind: input, shape index: {}]   ;;  %s4731_s18 = inlined_call_operand.vmem [shape: f32[1,128], index: 18, kind: input, shape index: {}]   ;;  %s4732_s19 = inlined_call_operand.hbm [shape: f32[128,128], index: 19, kind: input, shape index: {}]   ;;  %s4733_s20 = inlined_call_operand.vmem [shape: f32[1,128], index: 20, kind: input, shape index: {}]   ;;  %s4734_s21 = inlined_call_operand.hbm [shape: f32[2,16,128], index: 21, kind: output, shape index: {}]  }
   0x1   :  { %4746 = sst [smem:[#allocation30_spill]] %s4713_s0 }
   0x2   :  { %4747 = sst [smem:[#allocation31_spill]] %s4714_s1 }
   0x3   :  { %4748 = sst [smem:[#allocation32_spill]] %s4715_s2 }
   0x4   :  { %4749 = sst [smem:[#allocation33_spill]] %s4716_s3 }
   0x5   :  { %4750 = sst [smem:[#allocation34_spill]] %s4717_s4 }
   0x6   :  { %4751 = sst [smem:[#allocation35_spill]] %s4718_s5 }
   0x7   :  { %4752 = sst [smem:[#allocation36_spill]] %s4719_s6 }
   0x8   :  { %4753 = sst [smem:[#allocation37_spill]] %s4721_s8 }
   0x9   :  { %4754 = sst [smem:[#allocation38_spill]] %s4722_s9 }
   0xa   :  { %4755 = sst [smem:[#allocation39_spill]] %s4723_s10 }
   0xb   :  { %4756 = sst [smem:[#allocation40_spill]] %s4725_s12 }
   0xc   :  { %4757 = sst [smem:[#allocation41_spill]] %s4727_s14 }
   0xd   :  { %4758 = sst [smem:[#allocation42_spill]] %s4729_s16 }
   0xe   :  { %4759 = sst [smem:[#allocation43_spill]] %s4731_s18 }
   0xf   :  { %4760 = sst [smem:[#allocation44_spill]] %s4733_s20 }
  0x10   :  { %4761 = sst [smem:[#allocation45_spill]] %s4734_s21 }
  0x11   :  { %26 = vsyncpa [#allocation5], 0 }
  0x12   :  { %28 = vsyncpa [#allocation5 + $0x1], 0 }
  0x13   :  { %29 = vsyncpa [#allocation8], 0 }
  0x14   :  { %30 = vsyncpa [#allocation11], 0 }
  0x15   :  { %31 = vsyncpa [#allocation14], 0 }
  0x16   :  { %32 = vsyncpa [#allocation17], 0 }
  0x17   :  { %33 = vsyncpa [#allocation20], 0 }
  0x18   :  { %34 = vsyncpa [#allocation6], 0 }
  0x19   :  { %36 = vsyncpa [#allocation6 + $0x1], 0  ;;  %s4050_s2 = smov 0   ;;  %s4052_s25 = smov 0  }
  0x1a   :  { %s4054_s26 = smov 0   ;;  %s4056_s27 = smov 0  }
  0x1b LB: > { %s3922_s3 = smov [#allocation7]   ;;  %s4071_s29 = sadd.s32 4294967295, %s3920_s27   ;;  %s3920_s27 = sphi %s4056_s27, %s4806_s27   ;;  %s3916_s26 = sphi %s4054_s26, %s4805_s26   ;;  %s3912_s25 = sphi %s4052_s25, %s4804_s25   ;;  %s3908_s2 = sphi %s4050_s2, %s4803_s2  }
  0x1c   : > { %s531_s28 = sshll.u32 %s3922_s3, 4  ;;  %p2771_p0 = scmp.ge.s32.totalorder %s3920_s27, 1  ;;  %s4076_s28 = int_to_ptr.vmem [resolvable:$true] %s531_s28 }
  0x1d   : > { %p4741_p1 = scmp.eq.s32.totalorder %s4071_s29, 0  ;;  %p519_p2 = scmp.lt.s32.totalorder %s3920_s27, 3 }
  0x1e   : > { %s3923_s4 = smov [#allocation10]   ;;  %s3924_s22 = smov [#allocation13]  }
  0x1f   : > { %p4078_p3 = pnand %p2771_p0, %p519_p2  ;;  %s563_s30 = sshll.u32 %s3923_s4, 4  ;;  %s4091_s30 = int_to_ptr.vmem [resolvable:$true] %s563_s30 }
  0x20   : > { %s595_s23 = sshll.u32 %s3924_s22, 4  ;;  %s4764_s3 = sld [smem:[#allocation31_spill]]  ;;  %s4093_s23 = int_to_ptr.vmem [resolvable:$true] %s595_s23 }
  0x21   : > { %s4762_s0 = scalar_select %p4078_p3, 1, 0 }
  0x22   : > { %p3367_p5 = pneg %p4078_p3 }
  0x24   : > { %p4087_p6 = pnand %p3367_p5, %p4741_p1 }
  0x26   : > { %s3524_s21 = scalar_lea.hbm %s4764_s3, 2048  ;;  %p4103_p8 = pneg %p4087_p6 }
  0x27   : > { %p3525_p7 = scmp.ne.s32.totalorder %s4764_s3, %s3524_s21  ;;  %p3531_p11 = scmp.lt.u32.totalorder %s3524_s21, %s4764_s3 }
  0x29   : > { %p3527_p9 = pnand %p4103_p8, %p3525_p7 }
  0x2b   : > { %p3528_p10 = pneg %p3527_p9 }
  0x2d   : > { %p3533_p12 = pnand %p3531_p11, %p3528_p10 }
  0x2f   : > { %3536 = shalt.err (!%p3533_p12)
}
  0x30   : > { %s3537_s18 = scalar_lea.vmem %s4076_s28, 2048  ;;  %p3545_p5 = scmp.lt.s32.totalorder %s4076_s28, %s4076_s28 }
  0x31   : > { %p3538_p13 = scmp.ne.s32.totalorder %s4076_s28, %s3537_s18  ;;  %p3546_p4 = scmp.lt.s32.totalorder %s3537_s18, %s3537_s18 }
  0x33   : > { %p3540_p0 = pnand %p3538_p13, %p4103_p8  ;;  %p3547_p7 = por %p3546_p4, %p3545_p5 }
  0x35   : > { %p3541_p2 = pneg %p3540_p0 }
  0x37   : > { %p3548_p9 = pnand %p3547_p7, %p3541_p2 }
  0x39   : > { %3551 = shalt.err (!%p3548_p9)
}
  0x3a   : > { %s4743_s20 = smov 128   ;;  %s4744_s16 = smov 8  }
  0x3b   : > { %3370 = dma.hbm_to_vmem [thread:$0]  (!%p4087_p6), %s4764_s3, 2048, %s4076_s28, [#allocation8], %s4743_s20, %s4743_s20, %s4744_s16  }
  0x3c   : > { %s4766_s14 = sld [smem:[#allocation35_spill]] }
  0x42   : > { %s3552_s18 = scalar_lea.hbm %s4766_s14, 6144 }
  0x43   : > { %p3553_p4 = scmp.ne.s32.totalorder %s4766_s14, %s3552_s18  ;;  %p3559_p12 = scmp.lt.u32.totalorder %s3552_s18, %s4766_s14 }
  0x45   : > { %p3555_p10 = pnand %p3553_p4, %p4103_p8 }
  0x47   : > { %p3556_p11 = pneg %p3555_p10 }
  0x49   : > { %p3561_p13 = pnand %p3559_p12, %p3556_p11 }
  0x4b   : > { %3564 = shalt.err (!%p3561_p13)
}
  0x4c   : > { %s3565_s28 = scalar_lea.vmem %s4091_s30, 6144  ;;  %p3573_p7 = scmp.lt.s32.totalorder %s4091_s30, %s4091_s30 }
  0x4d   : > { %p3566_p0 = scmp.ne.s32.totalorder %s4091_s30, %s3565_s28  ;;  %p3574_p9 = scmp.lt.s32.totalorder %s3565_s28, %s3565_s28 }
  0x4f   : > { %p3568_p2 = pnand %p3566_p0, %p4103_p8  ;;  %p3575_p4 = por %p3574_p9, %p3573_p7 }
  0x51   : > { %p3569_p5 = pneg %p3568_p2 }
  0x53   : > { %p3576_p10 = pnand %p3575_p4, %p3569_p5 }
  0x55   : > { %3579 = shalt.err (!%p3576_p10)
}
  0x56   : > { %3376 = dma.hbm_to_vmem [thread:$0]  (!%p4087_p6), %s4766_s14, 6144, %s4091_s30, [#allocation11], %s4743_s20, %s4743_s20, %s4744_s16  }
  0x57   : > { %s4767_s9 = sld [smem:[#allocation38_spill]] }
  0x5d   : > { %s3580_s21 = scalar_lea.hbm %s4767_s9, 6144 }
  0x5e   : > { %p3581_p11 = scmp.ne.s32.totalorder %s4767_s9, %s3580_s21  ;;  %p3587_p0 = scmp.lt.u32.totalorder %s3580_s21, %s4767_s9 }
  0x60   : > { %p3583_p12 = pnand %p3581_p11, %p4103_p8 }
  0x62   : > { %p3584_p13 = pneg %p3583_p12 }
  0x64   : > { %p3589_p2 = pnand %p3587_p0, %p3584_p13 }
  0x66   : > { %3592 = shalt.err (!%p3589_p2)
}
  0x67   : > { %s3593_s30 = scalar_lea.vmem %s4093_s23, 6144  ;;  %p3601_p4 = scmp.lt.s32.totalorder %s4093_s23, %s4093_s23 }
  0x68   : > { %p3594_p5 = scmp.ne.s32.totalorder %s4093_s23, %s3593_s30  ;;  %p3602_p10 = scmp.lt.s32.totalorder %s3593_s30, %s3593_s30 }
  0x6a   : > { %p3596_p7 = pnand %p3594_p5, %p4103_p8  ;;  %p3603_p11 = por %p3602_p10, %p3601_p4 }
  0x6c   : > { %p3597_p9 = pneg %p3596_p7 }
  0x6e   : > { %p3604_p12 = pnand %p3603_p11, %p3597_p9 }
  0x70   : > { %3607 = shalt.err (!%p3604_p12)
}
  0x71   : > { %3382 = dma.hbm_to_vmem [thread:$0]  (!%p4087_p6), %s4767_s9, 6144, %s4093_s23, [#allocation14], %s4743_s20, %s4743_s20, %s4744_s16  }
  0x72   : > { %s3927_s8 = smov [#allocation16]   ;;  %s3928_s12 = smov [#allocation19]  }
  0x73   : > { %s627_s10 = sshll.u32 %s3927_s8, 4  ;;  %s659_s21 = sshll.u32 %s3928_s12, 4  ;;  %s628_s10 = int_to_ptr.vmem [resolvable:$true] %s627_s10  ;;  %s660_s21 = int_to_ptr.vmem [resolvable:$true] %s659_s21 }
  0x74   : > { %s3608_s22 = scalar_lea.hbm %s4726_s13, 6144 }
  0x75   : > { %p3609_p13 = scmp.ne.s32.totalorder %s4726_s13, %s3608_s22  ;;  %p3615_p5 = scmp.lt.u32.totalorder %s3608_s22, %s4726_s13 }
  0x77   : > { %p3611_p0 = pnand %p3609_p13, %p4103_p8 }
  0x79   : > { %p3612_p2 = pneg %p3611_p0 }
  0x7b   : > { %p3617_p7 = pnand %p3615_p5, %p3612_p2 }
  0x7d   : > { %3620 = shalt.err (!%p3617_p7)
}
  0x7e   : > { %s3621_s23 = scalar_lea.vmem %s628_s10, 6144  ;;  %p3629_p11 = scmp.lt.s32.totalorder %s628_s10, %s628_s10 }
  0x7f   : > { %p3622_p9 = scmp.ne.s32.totalorder %s628_s10, %s3621_s23  ;;  %p3630_p12 = scmp.lt.s32.totalorder %s3621_s23, %s3621_s23 }
  0x81   : > { %p3624_p4 = pnand %p3622_p9, %p4103_p8  ;;  %p3631_p1 = por %p3630_p12, %p3629_p11 }
  0x83   : > { %p3625_p10 = pneg %p3624_p4 }
  0x85   : > { %p3632_p3 = pnand %p3631_p1, %p3625_p10 }
  0x87   : > { %3635 = shalt.err (!%p3632_p3)
}
  0x88   : > { %3388 = dma.hbm_to_vmem [thread:$0]  (!%p4087_p6), %s4726_s13, 6144, %s628_s10, [#allocation17], %s4743_s20, %s4743_s20, %s4744_s16  }
  0x89   : > { %s3636_s1 = scalar_lea.hbm %s4730_s17, 6144 }
  0x8a   : > { %p3637_p1 = scmp.ne.s32.totalorder %s4730_s17, %s3636_s1  ;;  %p3643_p0 = scmp.lt.u32.totalorder %s3636_s1, %s4730_s17 }
  0x8c   : > { %p3639_p3 = pnand %p3637_p1, %p4103_p8 }
  0x8e   : > { %p3640_p13 = pneg %p3639_p3 }
  0x90   : > { %p3645_p2 = pnand %p3643_p0, %p3640_p13 }
  0x92   : > { %3648 = shalt.err (!%p3645_p2)
}
  0x93   : > { %s3649_s28 = scalar_lea.vmem %s660_s21, 6144  ;;  %p3657_p4 = scmp.lt.s32.totalorder %s660_s21, %s660_s21 }
  0x94   : > { %p3650_p5 = scmp.ne.s32.totalorder %s660_s21, %s3649_s28  ;;  %p3658_p10 = scmp.lt.s32.totalorder %s3649_s28, %s3649_s28 }
  0x96   : > { %p3652_p7 = pnand %p3650_p5, %p4103_p8  ;;  %p3659_p11 = por %p3658_p10, %p3657_p4 }
  0x98   : > { %p3653_p9 = pneg %p3652_p7 }
  0x9a   : > { %p3660_p12 = pnand %p3659_p11, %p3653_p9 }
  0x9c   : > { %3663 = shalt.err (!%p3660_p12)
}
  0x9d   : > { %3394 = dma.hbm_to_vmem [thread:$0]  (!%p4087_p6), %s4730_s17, 6144, %s660_s21, [#allocation20], %s4743_s20, %s4743_s20, %s4744_s16  }
  0x9e   : > { %s3929_s3 = smov [#allocation9]   ;;  %s3930_s8 = smov [#allocation12]  }
  0x9f   : > { %s547_s6 = sshll.u32 %s3929_s3, 4  ;;  %s579_s12 = sshll.u32 %s3930_s8, 4  ;;  %s548_s6 = int_to_ptr.vmem [resolvable:$true] %s547_s6  ;;  %s580_s12 = int_to_ptr.vmem [resolvable:$true] %s579_s12 }
  0xa0   : > { %s4768_s22 = sld [smem:[#allocation33_spill]] }
  0xa6   : > { %s3664_s18 = scalar_lea.hbm %s4768_s22, 6144 }
  0xa7   : > { %p3665_p1 = scmp.ne.s32.totalorder %s4768_s22, %s3664_s18  ;;  %p3671_p0 = scmp.lt.u32.totalorder %s3664_s18, %s4768_s22 }
  0xa9   : > { %p3667_p3 = pnand %p3665_p1, %p4103_p8 }
  0xab   : > { %p3668_p13 = pneg %p3667_p3 }
  0xad   : > { %p3673_p2 = pnand %p3671_p0, %p3668_p13 }
  0xaf   : > { %3676 = shalt.err (!%p3673_p2)
}
  0xb0   : > { %s3677_s21 = scalar_lea.vmem %s548_s6, 6144  ;;  %p3685_p4 = scmp.lt.s32.totalorder %s548_s6, %s548_s6 }
  0xb1   : > { %p3678_p5 = scmp.ne.s32.totalorder %s548_s6, %s3677_s21  ;;  %p3686_p10 = scmp.lt.s32.totalorder %s3677_s21, %s3677_s21 }
  0xb3   : > { %p3680_p7 = pnand %p3678_p5, %p4103_p8  ;;  %p3687_p11 = por %p3686_p10, %p3685_p4 }
  0xb5   : > { %p3681_p9 = pneg %p3680_p7 }
  0xb7   : > { %p3688_p12 = pnand %p3687_p11, %p3681_p9 }
  0xb9   : > { %3691 = shalt.err (!%p3688_p12)
}
  0xba   : > { %3373 = dma.hbm_to_vmem [thread:$0]  (!%p4087_p6), %s4768_s22, 6144, %s548_s6, [#allocation8], %s4743_s20, %s4743_s20, %s4744_s16  }
  0xbb   : > { %s3692_s1 = scalar_lea.hbm %s4720_s7, 6144 }
  0xbc   : > { %p3693_p1 = scmp.ne.s32.totalorder %s4720_s7, %s3692_s1  ;;  %p3699_p0 = scmp.lt.u32.totalorder %s3692_s1, %s4720_s7 }
  0xbe   : > { %p3695_p3 = pnand %p3693_p1, %p4103_p8 }
  0xc0   : > { %p3696_p13 = pneg %p3695_p3 }
  0xc2   : > { %p3701_p2 = pnand %p3699_p0, %p3696_p13 }
  0xc4   : > { %3704 = shalt.err (!%p3701_p2)
}
  0xc5   : > { %s3705_s10 = scalar_lea.vmem %s580_s12, 6144  ;;  %p3713_p4 = scmp.lt.s32.totalorder %s580_s12, %s580_s12 }
  0xc6   : > { %p3706_p5 = scmp.ne.s32.totalorder %s580_s12, %s3705_s10  ;;  %p3714_p10 = scmp.lt.s32.totalorder %s3705_s10, %s3705_s10 }
  0xc8   : > { %p3708_p7 = pnand %p3706_p5, %p4103_p8  ;;  %p3715_p11 = por %p3714_p10, %p3713_p4 }
  0xca   : > { %p3709_p9 = pneg %p3708_p7 }
  0xcc   : > { %p3716_p12 = pnand %p3715_p11, %p3709_p9 }
  0xce   : > { %3719 = shalt.err (!%p3716_p12)
}
  0xcf   : > { %3379 = dma.hbm_to_vmem [thread:$0]  (!%p4087_p6), %s4720_s7, 6144, %s580_s12, [#allocation11], %s4743_s20, %s4743_s20, %s4744_s16  }
  0xd0   : > { %s3931_s9 = smov [#allocation15]   ;;  %s3932_s3 = smov [#allocation18]  }
  0xd1   : > { %s611_s23 = sshll.u32 %s3931_s9, 4  ;;  %s643_s8 = sshll.u32 %s3932_s3, 4  ;;  %s612_s23 = int_to_ptr.vmem [resolvable:$true] %s611_s23  ;;  %s644_s8 = int_to_ptr.vmem [resolvable:$true] %s643_s8 }
  0xd2   : > { %s3720_s18 = scalar_lea.hbm %s4724_s11, 6144 }
  0xd3   : > { %p3721_p1 = scmp.ne.s32.totalorder %s4724_s11, %s3720_s18  ;;  %p3727_p0 = scmp.lt.u32.totalorder %s3720_s18, %s4724_s11 }
  0xd5   : > { %p3723_p3 = pnand %p3721_p1, %p4103_p8 }
  0xd7   : > { %p3724_p13 = pneg %p3723_p3 }
  0xd9   : > { %p3729_p2 = pnand %p3727_p0, %p3724_p13 }
  0xdb   : > { %3732 = shalt.err (!%p3729_p2)
}
  0xdc   : > { %s3733_s12 = scalar_lea.vmem %s612_s23, 6144  ;;  %p3741_p4 = scmp.lt.s32.totalorder %s612_s23, %s612_s23 }
  0xdd   : > { %p3734_p5 = scmp.ne.s32.totalorder %s612_s23, %s3733_s12  ;;  %p3742_p10 = scmp.lt.s32.totalorder %s3733_s12, %s3733_s12 }
  0xdf   : > { %p3736_p7 = pnand %p3734_p5, %p4103_p8  ;;  %p3743_p11 = por %p3742_p10, %p3741_p4 }
  0xe1   : > { %p3737_p9 = pneg %p3736_p7 }
  0xe3   : > { %p3744_p12 = pnand %p3743_p11, %p3737_p9 }
  0xe5   : > { %3747 = shalt.err (!%p3744_p12)
}
  0xe6   : > { %3385 = dma.hbm_to_vmem [thread:$0]  (!%p4087_p6), %s4724_s11, 6144, %s612_s23, [#allocation14], %s4743_s20, %s4743_s20, %s4744_s16  }
  0xe7   : > { %s3748_s24 = scalar_lea.hbm %s4728_s15, 6144 }
  0xe8   : > { %p3749_p1 = scmp.ne.s32.totalorder %s4728_s15, %s3748_s24  ;;  %p3755_p0 = scmp.lt.u32.totalorder %s3748_s24, %s4728_s15 }
  0xea   : > { %p3751_p3 = pnand %p3749_p1, %p4103_p8 }
  0xec   : > { %p3752_p13 = pneg %p3751_p3 }
  0xee   : > { %p3757_p2 = pnand %p3755_p0, %p3752_p13 }
  0xf0   : > { %3760 = shalt.err (!%p3757_p2)
}
  0xf1   : > { %s3761_s6 = scalar_lea.vmem %s644_s8, 6144  ;;  %p3769_p4 = scmp.lt.s32.totalorder %s644_s8, %s644_s8 }
  0xf2   : > { %p3762_p5 = scmp.ne.s32.totalorder %s644_s8, %s3761_s6  ;;  %p3770_p10 = scmp.lt.s32.totalorder %s3761_s6, %s3761_s6 }
  0xf4   : > { %p3764_p7 = pnand %p3762_p5, %p4103_p8  ;;  %p3771_p11 = por %p3770_p10, %p3769_p4 }
  0xf6   : > { %p3765_p9 = pneg %p3764_p7 }
  0xf8   : > { %p3772_p12 = pnand %p3771_p11, %p3765_p9 }
  0xfa   : > { %3775 = shalt.err (!%p3772_p12)
}
  0xfb   : > { %3391 = dma.hbm_to_vmem [thread:$0]  (!%p4087_p6), %s4728_s15, 6144, %s644_s8, [#allocation17], %s4743_s20, %s4743_s20, %s4744_s16  }
  0xfc   : > { %s3933_s21 = smov [#allocation21]   ;;  %s3776_s24 = scalar_lea.hbm %s4732_s19, 2048 }
  0xfd   : > { %s675_s9 = sshll.u32 %s3933_s21, 4  ;;  %p3777_p1 = scmp.ne.s32.totalorder %s4732_s19, %s3776_s24  ;;  %s676_s9 = int_to_ptr.vmem [resolvable:$true] %s675_s9 }
  0xfe   : > { %p3783_p0 = scmp.lt.u32.totalorder %s3776_s24, %s4732_s19 }
  0xff   : > { %p3779_p3 = pnand %p3777_p1, %p4103_p8 }
 0x101   : > { %p3780_p13 = pneg %p3779_p3 }
 0x103   : > { %p3785_p2 = pnand %p3783_p0, %p3780_p13 }
 0x105   : > { %3788 = shalt.err (!%p3785_p2)
}
 0x106   : > { %s3789_s8 = scalar_lea.vmem %s676_s9, 2048  ;;  %p3797_p4 = scmp.lt.s32.totalorder %s676_s9, %s676_s9 }
 0x107   : > { %p3790_p5 = scmp.ne.s32.totalorder %s676_s9, %s3789_s8  ;;  %p3798_p10 = scmp.lt.s32.totalorder %s3789_s8, %s3789_s8 }
 0x109   : > { %p3792_p7 = pnand %p3790_p5, %p4103_p8  ;;  %p3799_p11 = por %p3798_p10, %p3797_p4 }
 0x10b   : > { %p3793_p9 = pneg %p3792_p7 }
 0x10d   : > { %p3800_p12 = pnand %p3799_p11, %p3793_p9 }
 0x10f   : > { %3803 = shalt.err (!%p3800_p12)
}
 0x110   : > { %3397 = dma.hbm_to_vmem [thread:$0]  (!%p4087_p6), %s4732_s19, 2048, %s676_s9, [#allocation20], %s4743_s20, %s4743_s20, %s4744_s16  }
 0x111   : > { %s2770_s5 = sadd.s32 4294967294, %s3920_s27   ;;  %s4328_s4 = sadd.s32 1, %s3920_s27  }
 0x112   : > { %s46_s12 = ssub.s32 %s3920_s27, %s4328_s4  ;;  %s49_s21 = sadd.s32 1, %s3916_s26 }
 0x113   : > { %p47_p8 = scmp.eq.s32.totalorder %s46_s12, 0  ;;  %p56_p1 = scmp.ne.s32.totalorder %s3916_s26, %s3912_s25 }
 0x114   : > { %p57_p3 = scmp.eq.s32.totalorder %s3920_s27, 0  ;;  %p62_p13 = scmp.ne.s32.totalorder %s3912_s25, %s3908_s2 }
 0x115   : > { %s4339_s3 = scalar_select %p47_p8, %s3916_s26, %s49_s21  }
 0x116   : > { %p4341_p0 = por %p57_p3, %p56_p1  ;;  %p4770_p2 = scmp.eq.s32.totalorder %s4071_s29, 0 }
 0x117   : > { %p506_p5 = scmp.eq.s32.totalorder %s4071_s29, 1  ;;  %p512_p7 = scmp.eq.s32.totalorder %s2770_s5, 1 }
 0x118   : > { %p4347_p6 = por %p4770_p2, %p62_p13  ;;  %p3416_p9 = scmp.lt.s32.totalorder %s3920_s27, 2 }
 0x119   : > { %s692_s24 = sand.u32 1, %s3916_s26   ;;  %p4354_p4 = por %p506_p5, %p56_p1 }
 0x11a   : > { %p4358_p10 = por %p512_p7, %p62_p13  ;;  %s2783_s28 = sshll.u32 %s692_s24, 4 }
 0x11b   : > { %s4772_s18 = scalar_select %p4354_p4, 1, 0 }
 0x11c   : > { %s4773_s30 = scalar_select %p4358_p10, 1, 0 }
 0x11d   : > { %s2819_s10 = sshll.u32 %s3920_s27, 8  ;;  %s4774_s23 = sld [smem:[#allocation30_spill]] }
 0x11e   : > { %s696_s5 = scalar_lea.vmem [#allocation4], %s2783_s28  ;;  %p4372_p11 = pnand %p3416_p9, %p4341_p0 }
 0x11f   : > { %s703_s21 = sshll.u32 %s696_s5, 4  ;;  %s4376_s16 = scalar_lea.sflag [#allocation5], %s692_s24  ;;  %s4368_s21 = int_to_ptr.vmem [resolvable:$true] %s703_s21 }
 0x120   : > { %p3806_p8 = pneg %p4372_p11 }
 0x123   : > { %s4366_s12 = scalar_lea.hbm %s4774_s23, %s2819_s10  ;;  %s3809_s1 = scalar_lea.hbm %s4774_s23, 512 }
 0x124   : > { %s3804_s8 = scalar_lea.hbm %s4366_s12, 256  ;;  %p3810_p13 = scmp.lt.u32.totalorder %s4366_s12, %s4774_s23 }
 0x125   : > { %p3805_p12 = scmp.ne.s32.totalorder %s4366_s12, %s3804_s8  ;;  %p3811_p0 = scmp.lt.u32.totalorder %s3809_s1, %s3804_s8 }
 0x126   : > { %p3813_p5 = scmp.lt.u32.totalorder %s3804_s8, %s4366_s12 }
 0x127   : > { %p3807_p1 = pnand %p3806_p8, %p3805_p12  ;;  %p3812_p2 = por %p3811_p0, %p3810_p13 }
 0x129   : > { %p3808_p3 = pneg %p3807_p1  ;;  %p3814_p7 = por %p3813_p5, %p3812_p2 }
 0x12b   : > { %p3815_p9 = pnand %p3814_p7, %p3808_p3 }
 0x12d   : > { %3818 = shalt.err (!%p3815_p9)
}
 0x12e   : > { %s3819_s24 = scalar_lea.vmem %s4368_s21, 256  ;;  %s3934_s28 = smov [#allocation4]  }
 0x12f   : > { %p3820_p12 = scmp.ne.s32.totalorder %s4368_s21, %s3819_s24  ;;  %s3824_s10 = sshll.u32 %s3934_s28, 4  ;;  %s3825_s10 = int_to_ptr.vmem [resolvable:$false] %s3824_s10 }
 0x130   : > { %s3826_s6 = scalar_lea.vmem %s3825_s10, 512  ;;  %p3827_p4 = scmp.lt.s32.totalorder %s4368_s21, %s3825_s10 }
 0x131   : > { %p3822_p1 = pnand %p3820_p12, %p3806_p8  ;;  %p3828_p13 = scmp.lt.s32.totalorder %s3826_s6, %s3819_s24 }
 0x133   : > { %p3823_p10 = pneg %p3822_p1  ;;  %p3829_p0 = por %p3828_p13, %p3827_p4 }
 0x135   : > { %p3830_p2 = pnand %p3829_p0, %p3823_p10 }
 0x137   : > { %3833 = shalt.err (!%p3830_p2)
}
 0x138   : > { %s4776_s8 = smov 8   ;;  %s4777_s1 = smov 128  }
 0x139   : > { %3401 = dma.hbm_to_vmem [thread:$0]  (!%p4372_p11), %s4366_s12, 256, %s4368_s21, %s4376_s16, %s4777_s1, %s4777_s1, %s4776_s8  }
 0x13a   : > { %p4778_p8 = scmp.ne.s32.totalorder %s4762_s0, 0 }
 0x13b   : > { %s4410_s5 = sand.u32 (!%p4778_p8), 1, %s3912_s25  }
 0x13c   : > { %715 = sbr.rel (%p4778_p8) target bundleno = 2752 (0xac0), region = 104  ;;  %s2787_s24 = sshll.u32 (!%p4778_p8), %s4410_s5, 4 }
 0x13d   : > { %s718_s28 = scalar_lea.sflag (!%p4778_p8), [#allocation5], %s4410_s5  ;;  %s721_s20 = scalar_lea.vmem (!%p4778_p8), [#allocation4], %s2787_s24 }
 0x143   : > { %3879 = dma.done.wait (%p4347_p6), %s718_s28, 256  }
 0x144   : > { %3881 = vsyncadd (%p4347_p6), %s718_s28, 4294967040  ;;  %p4779_p4 = scmp.eq.s32.totalorder %s4071_s29, 0 }
 0x146   : > { %3883 = dma.done.wait (%p4779_p4), [#allocation8], 8192   ;;  %p4780_p10 = pmov %p4779_p4 }
 0x147   : > { %p4781_p11 = pmov %p4779_p4 }
 0x148   : > { %3885 = vsyncadd (%p4780_p10), [#allocation8], 4294959104 }
 0x149   : > { %3887 = dma.done.wait (%p4781_p11), [#allocation11], 12288   ;;  %p4782_p3 = pmov %p4779_p4 }
 0x14b   : > { %3889 = vsyncadd (%p4782_p3), [#allocation11], 4294955008  ;;  %p4783_p5 = pmov %p4782_p3 }
 0x14c   : > { %p4784_p7 = pmov %p4782_p3 }
 0x14d   : > { %3891 = dma.done.wait (%p4783_p5), [#allocation14], 12288  }
 0x14e   : > { %3893 = vsyncadd (%p4784_p7), [#allocation14], 4294955008  ;;  %p4785_p6 = pmov %p4782_p3 }
 0x14f   : > { %p4786_p9 = pmov %p4782_p3 }
 0x150   : > { %3895 = dma.done.wait (%p4785_p6), [#allocation17], 12288  }
 0x151   : > { %3897 = vsyncadd (%p4786_p9), [#allocation17], 4294955008  ;;  %p4787_p12 = pmov %p4782_p3 }
 0x152   : > { %p4788_p1 = pmov %p4782_p3 }
 0x153   : > { %3899 = dma.done.wait (%p4787_p12), [#allocation20], 8192  }
 0x154   : > { %3901 = vsyncadd (%p4788_p1), [#allocation20], 4294959104  ;;  %v3935_v0 = vmov 0.0   ;;  %v829_v1 = vld [vmem:[%s721_s20] sm:$0xff]  ;;  %v830_v2 = vld [vmem:[%s721_s20 + $0x8] sm:$0xff]  ;;  %vm3936_vm2 = vmmov 0  }
 0x155   : > { %821 = vst [vmem:[#allocation2] sm:$0xff] %v3935_v0  ;;  %824 = vst [vmem:[#allocation2 + $0x18] sm:$0xff] %v3935_v0  ;;  %3087 = vmatprep.subr.bf16.mxu1 %v3935_v0  ;;  %3107 = vmatprep.subr.bf16.mxu0 %v3935_v0  ;;  %v847_v3 = vld [vmem:[#allocation7] sm:$0xff]  ;;  %vm831_vm0 = vcmp.ne.f32.partialorder %v829_v1, %v829_v1  ;;  %vm832_vm1 = vcmp.ne.f32.partialorder %v830_v2, %v830_v2  ;;  %v848_v5 = vld [vmem:[#allocation7 + $0x8] sm:$0xff]  ;;  %s4789_s9 = sld [smem:[#allocation32_spill]]  ;;  %vm947_vm8 = vcmask 1046528  }
 0x156   : > { %825 = vst [vmem:[#allocation3] sm:$0xff] %v3935_v0  ;;  %828 = vst [vmem:[#allocation3 + $0x18] sm:$0xff] %v3935_v0  ;;  %v2803_v4 = vpack.c.bf16 %v830_v2, %v829_v1  ;;  %v849_v6 = vld [vmem:[#allocation7 + $0x10] sm:$0xff]  ;;  %v850_v7 = vld [vmem:[#allocation7 + $0x18] sm:$0xff]  ;;  %v833_v8 = vsel %vm831_vm0, 1.0, %v3935_v0  ;;  %v864_v9 = vpack.c.bf16 %v848_v5, %v847_v3  ;;  %v834_v10 = vsel %vm832_vm1, 1.0, %v3935_v0  ;;  %3103 = vmatprep.mubr.msk.bf16.mxu1 %vm3936_vm2, %v3935_v0 }
 0x157   : > { %835 = vmax.xlane.f32.xlu0 %v833_v8  ;;  %v865_v11 = vpack.c.bf16 %v850_v7, %v849_v6  ;;  %v851_v12 = vld [vmem:[#allocation7 + $0x20] sm:$0xff]  ;;  %v852_v13 = vld [vmem:[#allocation7 + $0x28] sm:$0xff]  ;;  %v853_v15 = vld [vmem:[#allocation7 + $0x30] sm:$0xff]  ;;  %3123 = vmatprep.mubr.msk.bf16.mxu0 %vm3936_vm2, %v3935_v0  ;;  %vm955_vm9 = vcmask 1045504   ;;  %s4790_s10 = sld [smem:[#allocation34_spill]]  ;;  %s4791_s1 = sld [smem:[#allocation36_spill]] }
 0x158   : > { %3088 = vmatpush3.bf16.msra.mxu1 %v864_v9  ;;  %v866_v14 = vpack.c.bf16 %v852_v13, %v851_v12  ;;  %v854_v16 = vld [vmem:[#allocation7 + $0x38] sm:$0xff]  ;;  %v855_v18 = vld [vmem:[#allocation7 + $0x40] sm:$0xff]  ;;  %v856_v19 = vld [vmem:[#allocation7 + $0x48] sm:$0xff]  ;;  %vm1362_vm10 = vcmask 1043456   ;;  %s4792_s0 = sld [smem:[#allocation37_spill]]  ;;  %s4793_s12 = sld [smem:[#allocation39_spill]] }
 0x159   : > { %3089 = vmatprep.subr.bf16.mxu1 %v3935_v0  ;;  %v867_v17 = vpack.c.bf16 %v854_v16, %v853_v15  ;;  %v868_v20 = vpack.c.bf16 %v856_v19, %v855_v18  ;;  %v857_v21 = vld [vmem:[#allocation7 + $0x50] sm:$0xff]  ;;  %v858_v22 = vld [vmem:[#allocation7 + $0x58] sm:$0xff]  ;;  %v859_v24 = vld [vmem:[#allocation7 + $0x60] sm:$0xff]  ;;  %s4794_s6 = sld [smem:[#allocation40_spill]]  ;;  %s4795_s28 = sld [smem:[#allocation41_spill]] }
 0x15a   : > { %v869_v23 = vpack.c.bf16 %v858_v22, %v857_v21  ;;  %v860_v25 = vld [vmem:[#allocation7 + $0x68] sm:$0xff]  ;;  %v861_v27 = vld [vmem:[#allocation7 + $0x70] sm:$0xff]  ;;  %v862_v28 = vld [vmem:[#allocation7 + $0x78] sm:$0xff]  ;;  %s4796_s16 = sld [smem:[#allocation42_spill]]  ;;  %s4797_s21 = sld [smem:[#allocation43_spill]] }
 0x15b   : > { %837 = vmax.xlane.f32.xlu0 %v834_v10  ;;  %v870_v26 = vpack.c.bf16 %v860_v25, %v859_v24  ;;  %v871_v29 = vpack.c.bf16 %v862_v28, %v861_v27  ;;  %v979_v32 = vld [vmem:[#allocation9 + $0x80] sm:$0xff]  ;;  %v980_v33 = vld [vmem:[#allocation9 + $0x88] sm:$0xff]  ;;  %v981_v41 = vld [vmem:[#allocation9 + $0x90] sm:$0xff]  ;;  %s4798_s8 = sld [smem:[#allocation44_spill]]  ;;  %s2820_s20 = sshll.u32 %s4071_s29, 8 }
 0x15c   : > { %3090 = vmatpush3.bf16.msra.mxu1 %v865_v11  ;;  %v995_v34 = vld [vmem:[#allocation9 + $0x100] sm:$0xff]  ;;  %v1022_v35 = vpack.c.bf16 %v980_v33, %v979_v32  ;;  %v996_v36 = vld [vmem:[#allocation9 + $0x108] sm:$0xff]  ;;  %v982_v42 = vld [vmem:[#allocation9 + $0x98] sm:$0xff]  ;;  %s2589_s29 = scalar_lea.sflag [#allocation6], %s4410_s5  ;;  %p4800_p0 = scmp.ne.s32.totalorder %s4772_s18, 0 }
 0x15d   : > { %3091 = vmatprep.subr.bf16.mxu1 %v3935_v0  ;;  %v963_v37 = vld [vmem:[#allocation9] sm:$0xff]  ;;  %v964_v38 = vld [vmem:[#allocation9 + $0x8] sm:$0xff]  ;;  %v1030_v39 = vpack.c.bf16 %v996_v36, %v995_v34  ;;  %v997_v43 = vld [vmem:[#allocation9 + $0x110] sm:$0xff]  ;;  %v1023_v44 = vpack.c.bf16 %v982_v42, %v981_v41 }
 0x15e   : > { %v1014_v40 = vpack.c.bf16 %v964_v38, %v963_v37  ;;  %v998_v45 = vld [vmem:[#allocation9 + $0x118] sm:$0xff]  ;;  %v965_v46 = vld [vmem:[#allocation9 + $0x10] sm:$0xff]  ;;  %v983_v50 = vld [vmem:[#allocation9 + $0xa0] sm:$0xff] }
 0x15f   : > { %3108 = vmatpush3.bf16.msra.mxu0 %v1030_v39  ;;  %v966_v47 = vld [vmem:[#allocation9 + $0x18] sm:$0xff]  ;;  %v1031_v48 = vpack.c.bf16 %v998_v45, %v997_v43  ;;  %v984_v51 = vld [vmem:[#allocation9 + $0xa8] sm:$0xff]  ;;  %v999_v52 = vld [vmem:[#allocation9 + $0x120] sm:$0xff] }
 0x160   : > { %3092 = vmatpush3.bf16.msra.mxu1 %v866_v14  ;;  %3109 = vmatprep.subr.bf16.mxu0 %v3935_v0  ;;  %v1015_v49 = vpack.c.bf16 %v966_v47, %v965_v46  ;;  %v1024_v53 = vpack.c.bf16 %v984_v51, %v983_v50  ;;  %v1000_v54 = vld [vmem:[#allocation9 + $0x128] sm:$0xff]  ;;  %v967_v55 = vld [vmem:[#allocation9 + $0x20] sm:$0xff]  ;;  %v985_v59 = vld [vmem:[#allocation9 + $0xb0] sm:$0xff] }
 0x161   : > { %3093 = vmatprep.subr.bf16.mxu1 %v3935_v0  ;;  %v968_v56 = vld [vmem:[#allocation9 + $0x28] sm:$0xff]  ;;  %v1032_v57 = vpack.c.bf16 %v1000_v54, %v999_v52  ;;  %v986_v60 = vld [vmem:[#allocation9 + $0xb8] sm:$0xff]  ;;  %v1001_v61 = vld [vmem:[#allocation9 + $0x130] sm:$0xff] }
 0x162   : > { %v1016_v58 = vpack.c.bf16 %v968_v56, %v967_v55  ;;  %v1025_v62 = vpack.c.bf16 %v986_v60, %v985_v59  ;;  %v1002_v63 = vld [vmem:[#allocation9 + $0x138] sm:$0xff]  ;;  %v969_v1 = vld [vmem:[#allocation9 + $0x30] sm:$0xff]  ;;  %v987_v5 = vld [vmem:[#allocation9 + $0xc0] sm:$0xff] }
 0x163   : > { %3110 = vmatpush3.bf16.msra.mxu0 %v1031_v48  ;;  %v970_v2 = vld [vmem:[#allocation9 + $0x38] sm:$0xff]  ;;  %v1033_v3 = vpack.c.bf16 %v1002_v63, %v1001_v61  ;;  %v988_v6 = vld [vmem:[#allocation9 + $0xc8] sm:$0xff]  ;;  %v1003_v7 = vld [vmem:[#allocation9 + $0x140] sm:$0xff] }
 0x164   : > { %3094 = vmatpush3.bf16.msra.mxu1 %v867_v17  ;;  %3111 = vmatprep.subr.bf16.mxu0 %v3935_v0  ;;  %v1026_v8 = vpack.c.bf16 %v988_v6, %v987_v5  ;;  %v1004_v9 = vld [vmem:[#allocation9 + $0x148] sm:$0xff]  ;;  %v971_v10 = vld [vmem:[#allocation9 + $0x40] sm:$0xff]  ;;  %v989_v12 = vld [vmem:[#allocation9 + $0xd0] sm:$0xff] }
 0x165   : > { %3095 = vmatprep.subr.bf16.mxu1 %v3935_v0  ;;  %v972_v11 = vld [vmem:[#allocation9 + $0x48] sm:$0xff]  ;;  %v990_v13 = vld [vmem:[#allocation9 + $0xd8] sm:$0xff]  ;;  %v1034_v14 = vpack.c.bf16 %v1004_v9, %v1003_v7  ;;  %v1005_v16 = vld [vmem:[#allocation9 + $0x150] sm:$0xff] }
 0x166   : > { %v1018_v15 = vpack.c.bf16 %v972_v11, %v971_v10  ;;  %v1027_v17 = vpack.c.bf16 %v990_v13, %v989_v12  ;;  %v1006_v18 = vld [vmem:[#allocation9 + $0x158] sm:$0xff]  ;;  %v973_v19 = vld [vmem:[#allocation9 + $0x50] sm:$0xff]  ;;  %v991_v21 = vld [vmem:[#allocation9 + $0xe0] sm:$0xff] }
 0x167   : > { %3112 = vmatpush3.bf16.msra.mxu0 %v1032_v57  ;;  %v992_v22 = vld [vmem:[#allocation9 + $0xe8] sm:$0xff]  ;;  %v1007_v25 = vld [vmem:[#allocation9 + $0x160] sm:$0xff]  ;;  %v993_v32 = vld [vmem:[#allocation9 + $0xf0] sm:$0xff] }
 0x168   : > { %3096 = vmatpush3.bf16.msra.mxu1 %v868_v20  ;;  %3113 = vmatprep.subr.bf16.mxu0 %v3935_v0  ;;  %v974_v20 = vld [vmem:[#allocation9 + $0x58] sm:$0xff]  ;;  %v1008_v27 = vld [vmem:[#allocation9 + $0x168] sm:$0xff]  ;;  %v975_v28 = vld [vmem:[#allocation9 + $0x60] sm:$0xff] }
 0x169   : > { %3097 = vmatprep.subr.bf16.mxu1 %v3935_v0  ;;  %v1019_v24 = vpack.c.bf16 %v974_v20, %v973_v19  ;;  %v994_v33 = vld [vmem:[#allocation9 + $0xf8] sm:$0xff]  ;;  %v1036_v34 = vpack.c.bf16 %v1008_v27, %v1007_v25  ;;  %v1009_v36 = vld [vmem:[#allocation9 + $0x170] sm:$0xff]  ;;  %v2799_v43 = vld [vmem:[%s4789_s9] ss:$0 sm:$0xff]  ;;  %s4799_s9 = sld [smem:[#allocation45_spill]] }
 0x16a   : > { %v1029_v37 = vpack.c.bf16 %v994_v33, %v993_v32  ;;  %v1010_v38 = vld [vmem:[#allocation9 + $0x178] sm:$0xff]  ;;  %v977_v39 = vld [vmem:[#allocation9 + $0x70] sm:$0xff]  ;;  %v1181_v19 = vld [vmem:[#allocation10 + $0x88] sm:$0xff] }
 0x16b   : > { %3114 = vmatpush3.bf16.msra.mxu0 %v1033_v3  ;;  %v1037_v41 = vpack.c.bf16 %v1010_v38, %v1009_v36  ;;  %v1196_v20 = vld [vmem:[#allocation10 + $0x100] sm:$0xff]  ;;  %v1182_v27 = vld [vmem:[#allocation10 + $0x90] sm:$0xff]  ;;  %v1199_v33 = vld [vmem:[#allocation10 + $0x118] sm:$0xff] }
 0x16c   : > { %3098 = vmatpush3.bf16.msra.mxu1 %v869_v23  ;;  %3115 = vmatprep.subr.bf16.mxu0 %v3935_v0  ;;  %v1035_v23 = vpack.c.bf16 %v1006_v18, %v1005_v16  ;;  %v1180_v18 = vld [vmem:[#allocation10 + $0x80] sm:$0xff] }
 0x16d   : > { %3099 = vmatprep.subr.bf16.mxu1 %v3935_v0  ;;  %v1184_v38 = vld [vmem:[#allocation10 + $0xa0] sm:$0xff] }
 0x16f   : > { %3116 = vmatpush3.bf16.msra.mxu0 %v1034_v14 }
 0x170   : > { %3100 = vmatpush3.bf16.msra.mxu1 %v870_v26  ;;  %3117 = vmatprep.subr.bf16.mxu0 %v3935_v0  ;;  %v1028_v26 = vpack.c.bf16 %v992_v22, %v991_v21  ;;  %v1223_v21 = vpack.c.bf16 %v1181_v19, %v1180_v18  ;;  %v1197_v22 = vld [vmem:[#allocation10 + $0x108] sm:$0xff]  ;;  %v1194_v18 = vld [vmem:[#allocation10 + $0xf0] sm:$0xff]  ;;  %v1195_v19 = vld [vmem:[#allocation10 + $0xf8] sm:$0xff] }
 0x171   : > { %3101 = vmatprep.subr.bf16.mxu1 %v3935_v0  ;;  %v1231_v25 = vpack.c.bf16 %v1197_v22, %v1196_v20  ;;  %v1210_v22 = vld [vmem:[#allocation10 + $0x170] sm:$0xff] }
 0x173   : > { %3118 = vmatpush3.bf16.msra.mxu0 %v1035_v23  ;;  %v1164_v23 = vld [vmem:[#allocation10] sm:$0xff] }
 0x174   : > { %3102 = vmatpush3.bf16.msra.mxu1 %v871_v29  ;;  %v976_v29 = vld [vmem:[#allocation9 + $0x68] sm:$0xff]  ;;  %3119 = vmatprep.subr.bf16.mxu0 %v3935_v0 }
 0x175   : > { %2830 = vmatprep.subr.bf16.mxu1 %v1022_v35  ;;  %v1020_v35 = vpack.c.bf16 %v976_v29, %v975_v28  ;;  %v1183_v28 = vld [vmem:[#allocation10 + $0x98] sm:$0xff]  ;;  %v1198_v29 = vld [vmem:[#allocation10 + $0x110] sm:$0xff] }
 0x176   : > { %v1224_v32 = vpack.c.bf16 %v1183_v28, %v1182_v27  ;;  %v1232_v36 = vpack.c.bf16 %v1199_v33, %v1198_v29 }
 0x177   : > { %3120 = vmatpush3.bf16.msra.mxu0 %v1036_v34  ;;  %v1166_v34 = vld [vmem:[#allocation10 + $0x10] sm:$0xff] }
 0x178   : > { %3121 = vmatprep.subr.bf16.mxu0 %v3935_v0 }
 0x17b   : > { %3122 = vmatpush3.bf16.msra.mxu0 %v1037_v41 }
 0x17c   : > { %3127 = vmatprep.subr.bf16.mxu0 %v3935_v0 }
 0x1e4   : > { %v4459_v30 = vpop.xlane.xlu0 %835 }
 0x1e5   : > { %vm839_vm3 = vcmp.gt.f32.partialorder %v4459_v30, 0.0 }
 0x1e6   : > { %vm2801_vm4 = vmneg %vm839_vm3 }
 0x1e8   : > { %v4462_v31 = vpop.xlane.xlu0 %837 }
 0x1e9   : > { %vm840_vm5 = vcmp.gt.f32.partialorder %v4462_v31, 0.0 }
 0x1ea   : > { %vm2800_vm6 = vmneg %vm840_vm5 }
 0x1eb   : > { %vm2802_vm7 = vmpackc.low %vm2800_vm6, %vm2801_vm4 }
 0x1ec   : > { %3104 = vmatmul.mubr.msk.bf16.vlgmr.msra.gmra.mrb[0].mxu1 %vm2802_vm7, %v2803_v4  ;;  %v1017_v4 = vpack.c.bf16 %v970_v2, %v969_v1 }
 0x1ed   : > { %2831 = vmatpush3.bf16.msra.mxu1 %v1014_v40  ;;  %v978_v40 = vld [vmem:[#allocation9 + $0x78] sm:$0xff] }
 0x1ee   : > { %2832 = vmatprep.subr.bf16.mxu1 %v1023_v44  ;;  %v1021_v42 = vpack.c.bf16 %v978_v40, %v977_v39  ;;  %v1185_v39 = vld [vmem:[#allocation10 + $0xa8] sm:$0xff]  ;;  %v1200_v40 = vld [vmem:[#allocation10 + $0x120] sm:$0xff] }
 0x1ef   : > { %v1225_v41 = vpack.c.bf16 %v1185_v39, %v1184_v38 }
 0x1f1   : > { %2833 = vmatpush3.bf16.msra.mxu1 %v1015_v49 }
 0x1f2   : > { %2834 = vmatprep.subr.bf16.mxu1 %v1024_v53 }
 0x1f5   : > { %2835 = vmatpush3.bf16.msra.mxu1 %v1016_v58 }
 0x1f6   : > { %2836 = vmatprep.subr.bf16.mxu1 %v1025_v62 }
 0x1f9   : > { %2837 = vmatpush3.bf16.msra.mxu1 %v1017_v4 }
 0x1fa   : > { %2838 = vmatprep.subr.bf16.mxu1 %v1026_v8 }
 0x1fd   : > { %2839 = vmatpush3.bf16.msra.mxu1 %v1018_v15 }
 0x1fe   : > { %2840 = vmatprep.subr.bf16.mxu1 %v1027_v17 }
 0x201   : > { %2841 = vmatpush3.bf16.msra.mxu1 %v1019_v24  ;;  %v1165_v24 = vld [vmem:[#allocation10 + $0x8] sm:$0xff] }
 0x202   : > { %2842 = vmatprep.subr.bf16.mxu1 %v1028_v26  ;;  %v1215_v26 = vpack.c.bf16 %v1165_v24, %v1164_v23  ;;  %v1230_v23 = vpack.c.bf16 %v1195_v19, %v1194_v18  ;;  %v1211_v24 = vld [vmem:[#allocation10 + $0x178] sm:$0xff]  ;;  %v1403_v18 = vld [vmem:[#allocation12 + $0x108] sm:$0xff]  ;;  %v1370_v19 = vld [vmem:[#allocation12] sm:$0xff] }
 0x203   : > { %v1238_v27 = vpack.c.bf16 %v1211_v24, %v1210_v22  ;;  %v1389_v24 = vld [vmem:[#allocation12 + $0x98] sm:$0xff] }
 0x205   : > { %2843 = vmatpush3.bf16.msra.mxu1 %v1020_v35  ;;  %v1167_v35 = vld [vmem:[#allocation10 + $0x18] sm:$0xff] }
 0x206   : > { %2844 = vmatprep.subr.bf16.mxu1 %v1029_v37  ;;  %v1216_v37 = vpack.c.bf16 %v1167_v35, %v1166_v34  ;;  %v2805_v34 = vld [vmem:[%s4790_s10] ss:$0 sm:$0xff] }
 0x209   : > { %2845 = vmatpush3.bf16.msra.mxu1 %v1021_v42  ;;  %v1201_v42 = vld [vmem:[#allocation10 + $0x128] sm:$0xff] }
 0x20a   : > { %2861 = vmatprep.subr.bf16.mxu1 %v1223_v21 }
 0x2bf   : > { %v913_v44 = vpop.f32.mrb[0].mxu1 }
 0x2c0   : > { %v914_v45 = vadd.f32 %v2799_v43, %v913_v44  ;;  %v3105_v46 = vpop.f32.mrb[1].mxu1  ;;  %v1169_v44 = vld [vmem:[#allocation10 + $0x28] sm:$0xff] }
 0x2c1   : > { %v916_v47 = vpop.f32.mrb[2].mxu1 }
 0x2c2   : > { %v4482_v48 = vsel %vm839_vm3, 0.0, %v914_v45  ;;  %v917_v49 = vadd.f32 %v2799_v43, %v916_v47  ;;  %v3106_v50 = vpop.f32.mrb[3].mxu1  ;;  %v1168_v43 = vld [vmem:[#allocation10 + $0x20] sm:$0xff]  ;;  %v1233_v45 = vpack.c.bf16 %v1201_v42, %v1200_v40  ;;  %v1186_v47 = vld [vmem:[#allocation10 + $0xb0] sm:$0xff] }
 0x2c3   : > { %922 = vst [vmem:[#allocation2 + $0x8] sm:$0xff] %v4482_v48  ;;  %v1217_v46 = vpack.c.bf16 %v1169_v44, %v1168_v43  ;;  %v1202_v50 = vld [vmem:[#allocation10 + $0x130] sm:$0xff] }
 0x2c4   : > { %v4487_v51 = vsel %vm840_vm5, 0.0, %v917_v49  ;;  %v1187_v49 = vld [vmem:[#allocation10 + $0xb8] sm:$0xff] }
 0x2c5   : > { %923 = vst [vmem:[#allocation2 + $0x10] sm:$0xff] %v4487_v51 }
 0x2ca   : > { %v926_v52 = vld [vmem:[#allocation2 + $0x7] sm:$0xff] }
 0x2cb   : > { %v932_v53 = vmul.f32 0.70710677, %v926_v52  ;;  %v929_v59 = vmul.f32 0.5, %v926_v52  ;;  %v1226_v52 = vpack.c.bf16 %v1187_v49, %v1186_v47 }
 0x2cc   : > { %v927_v54 = vld [vmem:[#allocation2 + $0xf] sm:$0xff]  ;;  %v928_v55 = vld [vmem:[#allocation2 + $0x17] sm:$0x3] }
 0x2cd   : > { %v933_v56 = vmul.f32 0.70710677, %v927_v54  ;;  %v934_v57 = vmul.f32 0.70710677, %v928_v55  ;;  %3476 = verf.f32 %v932_v53  ;;  %v930_v62 = vmul.f32 0.5, %v927_v54  ;;  %v1203_v53 = vld [vmem:[#allocation10 + $0x138] sm:$0xff] }
 0x2ce   : > { %v931_v63 = vmul.f32 0.5, %v928_v55  ;;  %v1170_v54 = vld [vmem:[#allocation10 + $0x30] sm:$0xff]  ;;  %v1171_v55 = vld [vmem:[#allocation10 + $0x38] sm:$0xff] }
 0x2cf   : > { %3478 = verf.f32 %v933_v56  ;;  %v1188_v56 = vld [vmem:[#allocation10 + $0xc0] sm:$0xff] }
 0x2d0   : > { %3480 = verf.f32 %v934_v57  ;;  %v1189_v57 = vld [vmem:[#allocation10 + $0xc8] sm:$0xff] }
 0x2d7   : > { %v3477_v30 = vpop.eup %3476 }
 0x2d8   : > { %v938_v60 = vadd.f32 1.0, %v3477_v30  ;;  %v1234_v30 = vpack.c.bf16 %v1203_v53, %v1202_v50 }
 0x2d9   : > { %v3479_v58 = vpop.eup %3478 }
 0x2da   : > { %v3481_v61 = vpop.eup %3480  ;;  %v939_v31 = vadd.f32 1.0, %v3479_v58  ;;  %v941_v2 = vmul.f32 %v938_v60, %v929_v59  ;;  %v1218_v58 = vpack.c.bf16 %v1171_v55, %v1170_v54  ;;  %v1204_v59 = vld [vmem:[#allocation10 + $0x140] sm:$0xff]  ;;  %v1227_v60 = vpack.c.bf16 %v1189_v57, %v1188_v56 }
 0x2db   : > { %v940_v1 = vadd.f32 1.0, %v3481_v61  ;;  %v1205_v61 = vld [vmem:[#allocation10 + $0x148] sm:$0xff] }
 0x2dc   : > { %v942_v3 = vmul.f32 %v939_v31, %v930_v62  ;;  %v948_v5 = vrot.slane %v941_v2, 1  ;;  %v956_v7 = vrot.slane %v941_v2, 2  ;;  %v1172_v62 = vld [vmem:[#allocation10 + $0x40] sm:$0xff]  ;;  %v1173_v31 = vld [vmem:[#allocation10 + $0x48] sm:$0xff] }
 0x2dd   : > { %v943_v4 = vmul.f32 %v940_v1, %v931_v63  ;;  %v1190_v63 = vld [vmem:[#allocation10 + $0xd0] sm:$0xff]  ;;  %v1191_v1 = vld [vmem:[#allocation10 + $0xd8] sm:$0xff] }
 0x2de   : > { %v949_v6 = vrot.slane %v942_v3, 1  ;;  %v957_v8 = vrot.slane %v942_v3, 2  ;;  %v1011_v17 = vpack.c.bf16 %v942_v3, %v941_v2  ;;  %v1235_v2 = vpack.c.bf16 %v1205_v61, %v1204_v59 }
 0x2df   : > { %v951_v9 = vrot.slane %v943_v4, 1  ;;  %v959_v10 = vrot.slane %v943_v4, 2  ;;  %v1219_v3 = vpack.c.bf16 %v1173_v31, %v1172_v62  ;;  %v1206_v4 = vld [vmem:[#allocation10 + $0x150] sm:$0xff] }
 0x2e0   : > { %v950_v11 = vsel %vm947_vm8, %v948_v5, %v949_v6  ;;  %v958_v12 = vsel %vm955_vm9, %v956_v7, %v957_v8  ;;  %v1228_v5 = vpack.c.bf16 %v1191_v1, %v1190_v63  ;;  %v1174_v7 = vld [vmem:[#allocation10 + $0x50] sm:$0xff] }
 0x2e1   : > { %v952_v13 = vsel %vm947_vm8, %v949_v6, %v951_v9  ;;  %v960_v14 = vsel %vm955_vm9, %v957_v8, %v959_v10  ;;  %v1207_v6 = vld [vmem:[#allocation10 + $0x158] sm:$0xff]  ;;  %v1192_v9 = vld [vmem:[#allocation10 + $0xe0] sm:$0xff]  ;;  %v1193_v10 = vld [vmem:[#allocation10 + $0xe8] sm:$0xff] }
 0x2e2   : > { %v1012_v15 = vpack.c.bf16 %v952_v13, %v950_v11  ;;  %v1013_v16 = vpack.c.bf16 %v960_v14, %v958_v12  ;;  %v1175_v8 = vld [vmem:[#allocation10 + $0x58] sm:$0xff]  ;;  %v1236_v11 = vpack.c.bf16 %v1207_v6, %v1206_v4  ;;  %v1208_v13 = vld [vmem:[#allocation10 + $0x160] sm:$0xff]  ;;  %v1229_v14 = vpack.c.bf16 %v1193_v10, %v1192_v9 }
 0x2e3   : > { %v1220_v12 = vpack.c.bf16 %v1175_v8, %v1174_v7 }
 0x2e4   : > { %1077 = vmatprep.mubr.bf16.mxu1 %v1012_v15  ;;  %3124 = vmatmul.mubr.bf16.vlgmr.msra.gmra.mrb[0].mxu0 %v1013_v16  ;;  %v1209_v15 = vld [vmem:[#allocation10 + $0x168] sm:$0xff]  ;;  %v1176_v16 = vld [vmem:[#allocation10 + $0x60] sm:$0xff] }
 0x2e5   : > { %1078 = vmatmul.mubr.bf16.vlgmr.msra.gmra.mrb[4].mxu1 %v1011_v17  ;;  %3143 = vmatprep.mubr.msk.bf16.mxu0 %vm3936_vm2, %v3935_v0  ;;  %v1177_v17 = vld [vmem:[#allocation10 + $0x68] sm:$0xff]  ;;  %v1237_v20 = vpack.c.bf16 %v1209_v15, %v1208_v13 }
 0x2e6   : > { %3128 = vmatpush3.bf16.msra.mxu0 %v1231_v25  ;;  %2862 = vmatpush3.bf16.msra.mxu1 %v1215_v26  ;;  %v1221_v21 = vpack.c.bf16 %v1177_v17, %v1176_v16  ;;  %v1178_v25 = vld [vmem:[#allocation10 + $0x70] sm:$0xff]  ;;  %v1179_v26 = vld [vmem:[#allocation10 + $0x78] sm:$0xff]  ;;  %v1387_v15 = vld [vmem:[#allocation12 + $0x88] sm:$0xff] }
 0x2e7   : > { %3129 = vmatprep.subr.bf16.mxu0 %v3935_v0  ;;  %2863 = vmatprep.subr.bf16.mxu1 %v1224_v32  ;;  %v1222_v28 = vpack.c.bf16 %v1179_v26, %v1178_v25  ;;  %v1402_v16 = vld [vmem:[#allocation12 + $0x100] sm:$0xff]  ;;  %v1404_v25 = vld [vmem:[#allocation12 + $0x110] sm:$0xff] }
 0x2ea   : > { %3130 = vmatpush3.bf16.msra.mxu0 %v1232_v36  ;;  %2864 = vmatpush3.bf16.msra.mxu1 %v1216_v37 }
 0x2eb   : > { %3131 = vmatprep.subr.bf16.mxu0 %v3935_v0  ;;  %2865 = vmatprep.subr.bf16.mxu1 %v1225_v41 }
 0x2ee   : > { %3132 = vmatpush3.bf16.msra.mxu0 %v1233_v45  ;;  %2866 = vmatpush3.bf16.msra.mxu1 %v1217_v46 }
 0x2ef   : > { %3133 = vmatprep.subr.bf16.mxu0 %v3935_v0  ;;  %2867 = vmatprep.subr.bf16.mxu1 %v1226_v52 }
 0x2f2   : > { %3134 = vmatpush3.bf16.msra.mxu0 %v1234_v30  ;;  %2868 = vmatpush3.bf16.msra.mxu1 %v1218_v58 }
 0x2f3   : > { %3135 = vmatprep.subr.bf16.mxu0 %v3935_v0  ;;  %2869 = vmatprep.subr.bf16.mxu1 %v1227_v60 }
 0x2f6   : > { %3136 = vmatpush3.bf16.msra.mxu0 %v1235_v2  ;;  %2870 = vmatpush3.bf16.msra.mxu1 %v1219_v3 }
 0x2f7   : > { %3137 = vmatprep.subr.bf16.mxu0 %v3935_v0  ;;  %2871 = vmatprep.subr.bf16.mxu1 %v1228_v5 }
 0x2fa   : > { %3138 = vmatpush3.bf16.msra.mxu0 %v1236_v11  ;;  %2872 = vmatpush3.bf16.msra.mxu1 %v1220_v12 }
 0x2fb   : > { %3139 = vmatprep.subr.bf16.mxu0 %v3935_v0  ;;  %2873 = vmatprep.subr.bf16.mxu1 %v1229_v14  ;;  %v1386_v14 = vld [vmem:[#allocation12 + $0x80] sm:$0xff] }
 0x2fc   : > { %v1429_v17 = vpack.c.bf16 %v1387_v15, %v1386_v14  ;;  %v1400_v14 = vld [vmem:[#allocation12 + $0xf0] sm:$0xff]  ;;  %v1401_v15 = vld [vmem:[#allocation12 + $0xf8] sm:$0xff] }
 0x2fe   : > { %3140 = vmatpush3.bf16.msra.mxu0 %v1237_v20  ;;  %2874 = vmatpush3.bf16.msra.mxu1 %v1221_v21  ;;  %v1371_v20 = vld [vmem:[#allocation12 + $0x8] sm:$0xff]  ;;  %v1437_v21 = vpack.c.bf16 %v1403_v18, %v1402_v16  ;;  %v1416_v18 = vld [vmem:[#allocation12 + $0x170] sm:$0xff] }
 0x2ff   : > { %3141 = vmatprep.subr.bf16.mxu0 %v3935_v0  ;;  %2875 = vmatprep.subr.bf16.mxu1 %v1230_v23  ;;  %v1421_v22 = vpack.c.bf16 %v1371_v20, %v1370_v19  ;;  %v1388_v23 = vld [vmem:[#allocation12 + $0x90] sm:$0xff]  ;;  %v1436_v19 = vpack.c.bf16 %v1401_v15, %v1400_v14  ;;  %v1417_v20 = vld [vmem:[#allocation12 + $0x178] sm:$0xff] }
 0x300   : > { %v1430_v26 = vpack.c.bf16 %v1389_v24, %v1388_v23  ;;  %v1444_v23 = vpack.c.bf16 %v1417_v20, %v1416_v18  ;;  %v1590_v14 = vld [vmem:[#allocation13 + $0x98] sm:$0xff]  ;;  %v1605_v15 = vld [vmem:[#allocation13 + $0x110] sm:$0xff] }
 0x301   : > { %v1573_v18 = vld [vmem:[#allocation13 + $0x10] sm:$0xff] }
 0x302   : > { %3142 = vmatpush3.bf16.msra.mxu0 %v1238_v27  ;;  %2876 = vmatpush3.bf16.msra.mxu1 %v1222_v28  ;;  %v1405_v27 = vld [vmem:[#allocation12 + $0x118] sm:$0xff]  ;;  %v1372_v28 = vld [vmem:[#allocation12 + $0x10] sm:$0xff] }
 0x303   : > { %3147 = vmatprep.subr.bf16.mxu0 %v3935_v0  ;;  %2892 = vmatprep.subr.bf16.mxu1 %v1429_v17 }
 0x3b7   : > { %v1120_v29 = vpop.f32.mrb[0].mxu0 }
 0x3b8   : > { %v2846_v32 = vpop.f32.mrb[4].mxu1  ;;  %v3125_v33 = vpop.f32.mrb[1].mxu0 }
 0x3b9   : > { %v2847_v35 = vpop.f32.mrb[5].mxu1  ;;  %v1123_v36 = vpop.f32.mrb[2].mxu0 }
 0x3ba   : > { %v2848_v37 = vadd.f32 %v2847_v35, %v2846_v32  ;;  %v2849_v38 = vpop.f32.mrb[6].mxu1  ;;  %v3126_v39 = vpop.f32.mrb[3].mxu0  ;;  %v1438_v32 = vpack.c.bf16 %v1405_v27, %v1404_v25  ;;  %v1391_v35 = vld [vmem:[#allocation12 + $0xa8] sm:$0xff] }
 0x3bb   : > { %v2850_v40 = vpop.f32.mrb[7].mxu1  ;;  %v1374_v39 = vld [vmem:[#allocation12 + $0x20] sm:$0xff] }
 0x3bc   : > { %v1080_v41 = vadd.f32 %v2848_v37, %v2805_v34  ;;  %v2851_v42 = vadd.f32 %v2850_v40, %v2849_v38  ;;  %v1407_v38 = vld [vmem:[#allocation12 + $0x128] sm:$0xff] }
 0x3bd   : > { %v1375_v40 = vld [vmem:[#allocation12 + $0x28] sm:$0xff] }
 0x3be   : > { %v1121_v43 = vadd.f32 %v1120_v29, %v1080_v41  ;;  %v1083_v44 = vadd.f32 %v2851_v42, %v2805_v34  ;;  %v1373_v29 = vld [vmem:[#allocation12 + $0x18] sm:$0xff]  ;;  %v1390_v34 = vld [vmem:[#allocation12 + $0xa0] sm:$0xff]  ;;  %v1423_v42 = vpack.c.bf16 %v1375_v40, %v1374_v39 }
 0x3bf   : > { %v1422_v33 = vpack.c.bf16 %v1373_v29, %v1372_v28  ;;  %v1431_v37 = vpack.c.bf16 %v1391_v35, %v1390_v34 }
 0x3c0   : > { %1127 = vst [vmem:[#allocation3 + $0x8] sm:$0xff] %v1121_v43  ;;  %v1124_v45 = vadd.f32 %v1123_v36, %v1083_v44  ;;  %v1406_v36 = vld [vmem:[#allocation12 + $0x120] sm:$0xff]  ;;  %v1392_v43 = vld [vmem:[#allocation12 + $0xb0] sm:$0xff]  ;;  %v1393_v44 = vld [vmem:[#allocation12 + $0xb8] sm:$0xff] }
 0x3c1   : > { %v1439_v41 = vpack.c.bf16 %v1407_v38, %v1406_v36 }
 0x3c2   : > { %1128 = vst [vmem:[#allocation3 + $0x10] sm:$0xff] %v1124_v45  ;;  %v1408_v45 = vld [vmem:[#allocation12 + $0x130] sm:$0xff] }
 0x3c7   : > { %v1129_v46 = vld [vmem:[#allocation3 + $0x7] sm:$0xff] }
 0x3c8   : > { %v1135_v47 = vmul.f32 0.70710677, %v1129_v46  ;;  %v1132_v56 = vmul.f32 0.5, %v1129_v46  ;;  %v1432_v46 = vpack.c.bf16 %v1393_v44, %v1392_v43 }
 0x3c9   : > { %v1130_v49 = vld [vmem:[#allocation3 + $0xf] sm:$0xff]  ;;  %v1131_v50 = vld [vmem:[#allocation3 + $0x17] sm:$0x3] }
 0x3ca   : > { %v1136_v52 = vmul.f32 0.70710677, %v1130_v49  ;;  %v1137_v53 = vmul.f32 0.70710677, %v1131_v50  ;;  %3482 = verf.f32 %v1135_v47  ;;  %v1133_v58 = vmul.f32 0.5, %v1130_v49  ;;  %v1409_v47 = vld [vmem:[#allocation12 + $0x138] sm:$0xff] }
 0x3cb   : > { %v1134_v60 = vmul.f32 0.5, %v1131_v50  ;;  %v1376_v49 = vld [vmem:[#allocation12 + $0x30] sm:$0xff]  ;;  %v1377_v50 = vld [vmem:[#allocation12 + $0x38] sm:$0xff] }
 0x3cc   : > { %3484 = verf.f32 %v1136_v52  ;;  %v1394_v52 = vld [vmem:[#allocation12 + $0xc0] sm:$0xff] }
 0x3cd   : > { %3486 = verf.f32 %v1137_v53  ;;  %v1395_v53 = vld [vmem:[#allocation12 + $0xc8] sm:$0xff] }
 0x3d4   : > { %v3483_v54 = vpop.eup %3482 }
 0x3d5   : > { %v1141_v57 = vadd.f32 1.0, %v3483_v54  ;;  %v1440_v54 = vpack.c.bf16 %v1409_v47, %v1408_v45 }
 0x3d6   : > { %v3485_v55 = vpop.eup %3484 }
 0x3d7   : > { %v3487_v30 = vpop.eup %3486  ;;  %v1142_v59 = vadd.f32 1.0, %v3485_v55  ;;  %v1144_v62 = vmul.f32 %v1141_v57, %v1132_v56  ;;  %v1424_v55 = vpack.c.bf16 %v1377_v50, %v1376_v49  ;;  %v1410_v56 = vld [vmem:[#allocation12 + $0x140] sm:$0xff]  ;;  %v1433_v57 = vpack.c.bf16 %v1395_v53, %v1394_v52 }
 0x3d8   : > { %v1143_v61 = vadd.f32 1.0, %v3487_v30  ;;  %v1411_v30 = vld [vmem:[#allocation12 + $0x148] sm:$0xff] }
 0x3d9   : > { %v1145_v31 = vmul.f32 %v1142_v59, %v1133_v58  ;;  %v1150_v1 = vrot.slane %v1144_v62, 1  ;;  %v1157_v3 = vrot.slane %v1144_v62, 2  ;;  %v1378_v58 = vld [vmem:[#allocation12 + $0x40] sm:$0xff]  ;;  %v1379_v59 = vld [vmem:[#allocation12 + $0x48] sm:$0xff] }
 0x3da   : > { %v1146_v63 = vmul.f32 %v1143_v61, %v1134_v60  ;;  %v1396_v60 = vld [vmem:[#allocation12 + $0xd0] sm:$0xff]  ;;  %v1397_v61 = vld [vmem:[#allocation12 + $0xd8] sm:$0xff] }
 0x3db   : > { %v1151_v2 = vrot.slane %v1145_v31, 1  ;;  %v1158_v4 = vrot.slane %v1145_v31, 2  ;;  %v1212_v13 = vpack.c.bf16 %v1145_v31, %v1144_v62  ;;  %v1441_v62 = vpack.c.bf16 %v1411_v30, %v1410_v56 }
 0x3dc   : > { %v1153_v5 = vrot.slane %v1146_v63, 1  ;;  %v1160_v6 = vrot.slane %v1146_v63, 2  ;;  %v1425_v31 = vpack.c.bf16 %v1379_v59, %v1378_v58  ;;  %v1412_v63 = vld [vmem:[#allocation12 + $0x150] sm:$0xff] }
 0x3dd   : > { %v1152_v7 = vsel %vm947_vm8, %v1150_v1, %v1151_v2  ;;  %v1159_v8 = vsel %vm955_vm9, %v1157_v3, %v1158_v4  ;;  %v1434_v1 = vpack.c.bf16 %v1397_v61, %v1396_v60  ;;  %v1380_v3 = vld [vmem:[#allocation12 + $0x50] sm:$0xff] }
 0x3de   : > { %v1154_v9 = vsel %vm947_vm8, %v1151_v2, %v1153_v5  ;;  %v1161_v10 = vsel %vm955_vm9, %v1158_v4, %v1160_v6  ;;  %v1413_v2 = vld [vmem:[#allocation12 + $0x158] sm:$0xff]  ;;  %v1398_v5 = vld [vmem:[#allocation12 + $0xe0] sm:$0xff]  ;;  %v1399_v6 = vld [vmem:[#allocation12 + $0xe8] sm:$0xff] }
 0x3df   : > { %v1213_v11 = vpack.c.bf16 %v1154_v9, %v1152_v7  ;;  %v1214_v12 = vpack.c.bf16 %v1161_v10, %v1159_v8  ;;  %v1381_v4 = vld [vmem:[#allocation12 + $0x58] sm:$0xff]  ;;  %v1442_v7 = vpack.c.bf16 %v1413_v2, %v1412_v63  ;;  %v1414_v9 = vld [vmem:[#allocation12 + $0x160] sm:$0xff]  ;;  %v1435_v10 = vpack.c.bf16 %v1399_v6, %v1398_v5  ;;  %v1588_v5 = vld [vmem:[#allocation13 + $0x88] sm:$0xff] }
 0x3e0   : > { %v1426_v8 = vpack.c.bf16 %v1381_v4, %v1380_v3  ;;  %v4536_v3 = vld [vmem:[#allocation2] sm:$0xff] }
 0x3e1   : > { %1278 = vmatprep.mubr.bf16.mxu1 %v1213_v11  ;;  %3144 = vmatmul.mubr.bf16.vlgmr.msra.gmra.mrb[4].mxu0 %v1214_v12  ;;  %v1415_v11 = vld [vmem:[#allocation12 + $0x168] sm:$0xff]  ;;  %v1382_v12 = vld [vmem:[#allocation12 + $0x60] sm:$0xff] }
 0x3e2   : > { %1279 = vmatmul.mubr.bf16.vlgmr.msra.gmra.mrb[8].mxu1 %v1212_v13  ;;  %3163 = vmatprep.mubr.msk.bf16.mxu0 %vm3936_vm2, %v3935_v0  ;;  %v1383_v13 = vld [vmem:[#allocation12 + $0x68] sm:$0xff]  ;;  %v1443_v16 = vpack.c.bf16 %v1415_v11, %v1414_v9  ;;  %v1587_v4 = vld [vmem:[#allocation13 + $0x80] sm:$0xff] }
 0x3e3   : > { %3148 = vmatpush3.bf16.msra.mxu0 %v1437_v21  ;;  %2893 = vmatpush3.bf16.msra.mxu1 %v1421_v22  ;;  %v1427_v17 = vpack.c.bf16 %v1383_v13, %v1382_v12  ;;  %v1384_v21 = vld [vmem:[#allocation12 + $0x70] sm:$0xff]  ;;  %v1385_v22 = vld [vmem:[#allocation12 + $0x78] sm:$0xff]  ;;  %v1603_v6 = vld [vmem:[#allocation13 + $0x100] sm:$0xff] }
 0x3e4   : > { %3149 = vmatprep.subr.bf16.mxu0 %v3935_v0  ;;  %2894 = vmatprep.subr.bf16.mxu1 %v1430_v26  ;;  %v1428_v24 = vpack.c.bf16 %v1385_v22, %v1384_v21  ;;  %v2806_v26 = vld [vmem:[%s4791_s1] ss:$0 sm:$0xff]  ;;  %v1589_v13 = vld [vmem:[#allocation13 + $0x90] sm:$0xff]  ;;  %s819_s1 = scalar_lea.vmem [#allocation22], %s2787_s24 }
 0x3e5   : > { %v1571_v9 = vld [vmem:[#allocation13] sm:$0xff] }
 0x3e6   : > { %v1591_v22 = vld [vmem:[#allocation13 + $0xa0] sm:$0xff] }
 0x3e7   : > { %3150 = vmatpush3.bf16.msra.mxu0 %v1438_v32  ;;  %2895 = vmatpush3.bf16.msra.mxu1 %v1422_v33 }
 0x3e8   : > { %3151 = vmatprep.subr.bf16.mxu0 %v3935_v0  ;;  %2896 = vmatprep.subr.bf16.mxu1 %v1431_v37 }
 0x3eb   : > { %3152 = vmatpush3.bf16.msra.mxu0 %v1439_v41  ;;  %2897 = vmatpush3.bf16.msra.mxu1 %v1423_v42 }
 0x3ec   : > { %3153 = vmatprep.subr.bf16.mxu0 %v3935_v0  ;;  %2898 = vmatprep.subr.bf16.mxu1 %v1432_v46 }
 0x3ef   : > { %3154 = vmatpush3.bf16.msra.mxu0 %v1440_v54  ;;  %2899 = vmatpush3.bf16.msra.mxu1 %v1424_v55 }
 0x3f0   : > { %3155 = vmatprep.subr.bf16.mxu0 %v3935_v0  ;;  %2900 = vmatprep.subr.bf16.mxu1 %v1433_v57 }
 0x3f3   : > { %3156 = vmatpush3.bf16.msra.mxu0 %v1441_v62  ;;  %2901 = vmatpush3.bf16.msra.mxu1 %v1425_v31 }
 0x3f4   : > { %3157 = vmatprep.subr.bf16.mxu0 %v3935_v0  ;;  %2902 = vmatprep.subr.bf16.mxu1 %v1434_v1 }
 0x3f7   : > { %3158 = vmatpush3.bf16.msra.mxu0 %v1442_v7  ;;  %2903 = vmatpush3.bf16.msra.mxu1 %v1426_v8  ;;  %v1630_v7 = vpack.c.bf16 %v1588_v5, %v1587_v4  ;;  %v1604_v8 = vld [vmem:[#allocation13 + $0x108] sm:$0xff]  ;;  %v1601_v4 = vld [vmem:[#allocation13 + $0xf0] sm:$0xff]  ;;  %v1602_v5 = vld [vmem:[#allocation13 + $0xf8] sm:$0xff] }
 0x3f8   : > { %3159 = vmatprep.subr.bf16.mxu0 %v3935_v0  ;;  %2904 = vmatprep.subr.bf16.mxu1 %v1435_v10  ;;  %v1572_v10 = vld [vmem:[#allocation13 + $0x8] sm:$0xff]  ;;  %v1638_v11 = vpack.c.bf16 %v1604_v8, %v1603_v6  ;;  %v1617_v8 = vld [vmem:[#allocation13 + $0x170] sm:$0xff] }
 0x3f9   : > { %v1622_v12 = vpack.c.bf16 %v1572_v10, %v1571_v9  ;;  %v1637_v9 = vpack.c.bf16 %v1602_v5, %v1601_v4  ;;  %v1618_v10 = vld [vmem:[#allocation13 + $0x178] sm:$0xff]  ;;  %v1786_v4 = vld [vmem:[#allocation15 + $0x88] sm:$0xff] }
 0x3fb   : > { %3160 = vmatpush3.bf16.msra.mxu0 %v1443_v16  ;;  %2905 = vmatpush3.bf16.msra.mxu1 %v1427_v17  ;;  %v1631_v16 = vpack.c.bf16 %v1590_v14, %v1589_v13  ;;  %v1606_v17 = vld [vmem:[#allocation13 + $0x118] sm:$0xff]  ;;  %v1645_v13 = vpack.c.bf16 %v1618_v10, %v1617_v8  ;;  %v1803_v8 = vld [vmem:[#allocation15 + $0x110] sm:$0xff] }
 0x3fc   : > { %3161 = vmatprep.subr.bf16.mxu0 %v3935_v0  ;;  %2906 = vmatprep.subr.bf16.mxu1 %v1436_v19  ;;  %v1574_v19 = vld [vmem:[#allocation13 + $0x18] sm:$0xff]  ;;  %v1639_v20 = vpack.c.bf16 %v1606_v17, %v1605_v15 }
 0x3fd   : > { %v1623_v21 = vpack.c.bf16 %v1574_v19, %v1573_v18  ;;  %v2807_v18 = vld [vmem:[%s4792_s0] ss:$0 sm:$0xff]  ;;  %v1804_v10 = vld [vmem:[#allocation15 + $0x118] sm:$0xff] }
 0x3ff   : > { %3162 = vmatpush3.bf16.msra.mxu0 %v1444_v23  ;;  %2907 = vmatpush3.bf16.msra.mxu1 %v1428_v24  ;;  %v1592_v23 = vld [vmem:[#allocation13 + $0xa8] sm:$0xff]  ;;  %v1607_v24 = vld [vmem:[#allocation13 + $0x120] sm:$0xff] }
 0x400   : > { %3167 = vmatprep.subr.bf16.mxu0 %v3935_v0  ;;  %2923 = vmatprep.subr.bf16.mxu1 %v1630_v7 }
 0x4b5   : > { %v2877_v25 = vpop.f32.mrb[8].mxu1 }
 0x4b6   : > { %v2878_v27 = vpop.f32.mrb[9].mxu1 }
 0x4b7   : > { %v2879_v28 = vadd.f32 %v2878_v27, %v2877_v25  ;;  %v2880_v29 = vpop.f32.mrb[10].mxu1  ;;  %v1632_v25 = vpack.c.bf16 %v1592_v23, %v1591_v22  ;;  %v1575_v27 = vld [vmem:[#allocation13 + $0x20] sm:$0xff] }
 0x4b8   : > { %v2881_v32 = vpop.f32.mrb[11].mxu1 }
 0x4b9   : > { %v1281_v33 = vadd.f32 %v2879_v28, %v2806_v26  ;;  %v2882_v34 = vadd.f32 %v2881_v32, %v2880_v29  ;;  %v1576_v28 = vld [vmem:[#allocation13 + $0x28] sm:$0xff] }
 0x4ba   : > { %v1624_v32 = vpack.c.bf16 %v1576_v28, %v1575_v27 }
 0x4bb   : > { %v4525_v35 = vadd.f32 %v1281_v33, %v4482_v48  ;;  %v1284_v36 = vadd.f32 %v2882_v34, %v2806_v26  ;;  %v1608_v26 = vld [vmem:[#allocation13 + $0x128] sm:$0xff]  ;;  %v1593_v33 = vld [vmem:[#allocation13 + $0xb0] sm:$0xff]  ;;  %v1594_v34 = vld [vmem:[#allocation13 + $0xb8] sm:$0xff] }
 0x4bc   : > { %v1640_v29 = vpack.c.bf16 %v1608_v26, %v1607_v24 }
 0x4bd   : > { %3288 = vst [vmem:[#allocation2 + $0x8] sm:$0xff] %v4525_v35  ;;  %v4529_v37 = vadd.f32 %v1284_v36, %v4487_v51  ;;  %v1609_v36 = vld [vmem:[#allocation13 + $0x130] sm:$0xff] }
 0x4bf   : > { %3298 = vst [vmem:[#allocation2 + $0x10] sm:$0xff] %v4529_v37 }
 0x4c4   : > { %v1334_v0 = vld [vmem:[#allocation2 + $0x6] sm:$0xff] }
 0x4c5   : > { %v1340_v38 = vmul.f32 0.70710677, %v1334_v0  ;;  %v1337_v44 = vmul.f32 0.5, %v1334_v0  ;;  %v1633_v0 = vpack.c.bf16 %v1594_v34, %v1593_v33 }
 0x4c6   : > { %v1335_v39 = vld [vmem:[#allocation2 + $0xe] sm:$0xff]  ;;  %v1336_v40 = vld [vmem:[#allocation2 + $0x16] sm:$0xf] }
 0x4c7   : > { %v1341_v41 = vmul.f32 0.70710677, %v1335_v39  ;;  %v1342_v42 = vmul.f32 0.70710677, %v1336_v40  ;;  %3488 = verf.f32 %v1340_v38  ;;  %v1338_v47 = vmul.f32 0.5, %v1335_v39  ;;  %v1610_v38 = vld [vmem:[#allocation13 + $0x138] sm:$0xff] }
 0x4c8   : > { %v1339_v51 = vmul.f32 0.5, %v1336_v40  ;;  %v1577_v39 = vld [vmem:[#allocation13 + $0x30] sm:$0xff]  ;;  %v1578_v40 = vld [vmem:[#allocation13 + $0x38] sm:$0xff] }
 0x4c9   : > { %3490 = verf.f32 %v1341_v41  ;;  %v1595_v41 = vld [vmem:[#allocation13 + $0xc0] sm:$0xff] }
 0x4ca   : > { %3492 = verf.f32 %v1342_v42  ;;  %v1596_v42 = vld [vmem:[#allocation13 + $0xc8] sm:$0xff] }
 0x4d1   : > { %v3489_v43 = vpop.eup %3488 }
 0x4d2   : > { %v1346_v45 = vadd.f32 1.0, %v3489_v43  ;;  %v1641_v43 = vpack.c.bf16 %v1610_v38, %v1609_v36 }
 0x4d3   : > { %v3491_v48 = vpop.eup %3490 }
 0x4d4   : > { %v3493_v46 = vpop.eup %3492  ;;  %v1347_v49 = vadd.f32 1.0, %v3491_v48  ;;  %v1349_v52 = vmul.f32 %v1346_v45, %v1337_v44  ;;  %v1625_v48 = vpack.c.bf16 %v1578_v40, %v1577_v39  ;;  %v1611_v44 = vld [vmem:[#allocation13 + $0x140] sm:$0xff]  ;;  %v1634_v45 = vpack.c.bf16 %v1596_v42, %v1595_v41 }
 0x4d5   : > { %v1348_v50 = vadd.f32 1.0, %v3493_v46  ;;  %v1612_v46 = vld [vmem:[#allocation13 + $0x148] sm:$0xff] }
 0x4d6   : > { %v1350_v53 = vmul.f32 %v1347_v49, %v1338_v47  ;;  %v1355_v55 = vrot.slane %v1349_v52, 2  ;;  %v1363_v57 = vrot.slane %v1349_v52, 4  ;;  %v1579_v47 = vld [vmem:[#allocation13 + $0x40] sm:$0xff]  ;;  %v1580_v49 = vld [vmem:[#allocation13 + $0x48] sm:$0xff] }
 0x4d7   : > { %v1351_v54 = vmul.f32 %v1348_v50, %v1339_v51  ;;  %v1597_v51 = vld [vmem:[#allocation13 + $0xd0] sm:$0xff]  ;;  %v1598_v50 = vld [vmem:[#allocation13 + $0xd8] sm:$0xff] }
 0x4d8   : > { %v1356_v56 = vrot.slane %v1350_v53, 2  ;;  %v1364_v30 = vrot.slane %v1350_v53, 4  ;;  %v1418_v2 = vpack.c.bf16 %v1350_v53, %v1349_v52  ;;  %v1642_v52 = vpack.c.bf16 %v1612_v46, %v1611_v44 }
 0x4d9   : > { %v1358_v58 = vrot.slane %v1351_v54, 2  ;;  %v1366_v59 = vrot.slane %v1351_v54, 4  ;;  %v1626_v53 = vpack.c.bf16 %v1580_v49, %v1579_v47  ;;  %v1613_v54 = vld [vmem:[#allocation13 + $0x150] sm:$0xff] }
 0x4da   : > { %v1357_v60 = vsel %vm955_vm9, %v1355_v55, %v1356_v56  ;;  %v1365_v61 = vsel %vm1362_vm10, %v1363_v57, %v1364_v30  ;;  %v1635_v55 = vpack.c.bf16 %v1598_v50, %v1597_v51  ;;  %v1581_v57 = vld [vmem:[#allocation13 + $0x50] sm:$0xff] }
 0x4db   : > { %v1359_v62 = vsel %vm955_vm9, %v1356_v56, %v1358_v58  ;;  %v1367_v31 = vsel %vm1362_vm10, %v1364_v30, %v1366_v59  ;;  %v1614_v56 = vld [vmem:[#allocation13 + $0x158] sm:$0xff]  ;;  %v1599_v58 = vld [vmem:[#allocation13 + $0xe0] sm:$0xff]  ;;  %v1600_v59 = vld [vmem:[#allocation13 + $0xe8] sm:$0xff] }
 0x4dc   : > { %v1419_v63 = vpack.c.bf16 %v1359_v62, %v1357_v60  ;;  %v1420_v1 = vpack.c.bf16 %v1367_v31, %v1365_v61  ;;  %v1582_v30 = vld [vmem:[#allocation13 + $0x58] sm:$0xff]  ;;  %v1643_v60 = vpack.c.bf16 %v1614_v56, %v1613_v54  ;;  %v1615_v62 = vld [vmem:[#allocation13 + $0x160] sm:$0xff]  ;;  %v1636_v31 = vpack.c.bf16 %v1600_v59, %v1599_v58 }
 0x4dd   : > { %v1627_v61 = vpack.c.bf16 %v1582_v30, %v1581_v57 }
 0x4de   : > { %1484 = vmatprep.mubr.bf16.mxu1 %v1419_v63  ;;  %3164 = vmatmul.mubr.bf16.vlgmr.msra.gmra.mrb[8].mxu0 %v1420_v1  ;;  %v1616_v63 = vld [vmem:[#allocation13 + $0x168] sm:$0xff]  ;;  %v1583_v1 = vld [vmem:[#allocation13 + $0x60] sm:$0xff] }
 0x4df   : > { %1485 = vmatmul.mubr.bf16.vlgmr.msra.gmra.mrb[12].mxu1 %v1418_v2  ;;  %3183 = vmatprep.mubr.msk.bf16.mxu0 %vm3936_vm2, %v4536_v3  ;;  %v1584_v2 = vld [vmem:[#allocation13 + $0x68] sm:$0xff]  ;;  %v1644_v6 = vpack.c.bf16 %v1616_v63, %v1615_v62 }
 0x4e0   : > { %3168 = vmatpush3.bf16.msra.mxu0 %v1638_v11  ;;  %2924 = vmatpush3.bf16.msra.mxu1 %v1622_v12  ;;  %v1628_v7 = vpack.c.bf16 %v1584_v2, %v1583_v1  ;;  %v1585_v11 = vld [vmem:[#allocation13 + $0x70] sm:$0xff]  ;;  %v1586_v12 = vld [vmem:[#allocation13 + $0x78] sm:$0xff]  ;;  %v1802_v63 = vld [vmem:[#allocation15 + $0x108] sm:$0xff] }
 0x4e1   : > { %3169 = vmatprep.subr.bf16.mxu0 %v4536_v3  ;;  %2925 = vmatprep.subr.bf16.mxu1 %v1631_v16  ;;  %v1629_v14 = vpack.c.bf16 %v1586_v12, %v1585_v11  ;;  %v1785_v2 = vld [vmem:[#allocation15 + $0x80] sm:$0xff]  ;;  %v1837_v11 = vpack.c.bf16 %v1804_v10, %v1803_v8  ;;  %v1787_v12 = vld [vmem:[#allocation15 + $0x90] sm:$0xff] }
 0x4e2   : > { %v1828_v5 = vpack.c.bf16 %v1786_v4, %v1785_v2  ;;  %v1799_v2 = vld [vmem:[#allocation15 + $0xf0] sm:$0xff]  ;;  %v1800_v4 = vld [vmem:[#allocation15 + $0xf8] sm:$0xff] }
 0x4e3   : > { %v1783_v8 = vld [vmem:[#allocation15 + $0x70] sm:$0xff] }
 0x4e4   : > { %3170 = vmatpush3.bf16.msra.mxu0 %v1639_v20  ;;  %2926 = vmatpush3.bf16.msra.mxu1 %v1623_v21 }
 0x4e5   : > { %3171 = vmatprep.subr.bf16.mxu0 %v4536_v3  ;;  %2927 = vmatprep.subr.bf16.mxu1 %v1632_v25 }
 0x4e8   : > { %3172 = vmatpush3.bf16.msra.mxu0 %v1640_v29  ;;  %2928 = vmatpush3.bf16.msra.mxu1 %v1624_v32 }
 0x4e9   : > { %3173 = vmatprep.subr.bf16.mxu0 %v4536_v3  ;;  %2929 = vmatprep.subr.bf16.mxu1 %v1633_v0 }
 0x4ec   : > { %3174 = vmatpush3.bf16.msra.mxu0 %v1641_v43  ;;  %2930 = vmatpush3.bf16.msra.mxu1 %v1625_v48 }
 0x4ed   : > { %3175 = vmatprep.subr.bf16.mxu0 %v4536_v3  ;;  %2931 = vmatprep.subr.bf16.mxu1 %v1634_v45 }
 0x4f0   : > { %3176 = vmatpush3.bf16.msra.mxu0 %v1642_v52  ;;  %2932 = vmatpush3.bf16.msra.mxu1 %v1626_v53 }
 0x4f1   : > { %3177 = vmatprep.subr.bf16.mxu0 %v4536_v3  ;;  %2933 = vmatprep.subr.bf16.mxu1 %v1635_v55 }
 0x4f4   : > { %3178 = vmatpush3.bf16.msra.mxu0 %v1643_v60  ;;  %2934 = vmatpush3.bf16.msra.mxu1 %v1627_v61 }
 0x4f5   : > { %3179 = vmatprep.subr.bf16.mxu0 %v4536_v3  ;;  %2935 = vmatprep.subr.bf16.mxu1 %v1636_v31  ;;  %v1801_v31 = vld [vmem:[#allocation15 + $0x100] sm:$0xff] }
 0x4f6   : > { %v1836_v1 = vpack.c.bf16 %v1802_v63, %v1801_v31  ;;  %v1782_v31 = vld [vmem:[#allocation15 + $0x68] sm:$0xff]  ;;  %v1815_v63 = vld [vmem:[#allocation15 + $0x170] sm:$0xff] }
 0x4f8   : > { %3180 = vmatpush3.bf16.msra.mxu0 %v1644_v6  ;;  %2936 = vmatpush3.bf16.msra.mxu1 %v1628_v7  ;;  %v1769_v6 = vld [vmem:[#allocation15] sm:$0xff]  ;;  %v1770_v7 = vld [vmem:[#allocation15 + $0x8] sm:$0xff] }
 0x4f9   : > { %3181 = vmatprep.subr.bf16.mxu0 %v4536_v3  ;;  %2937 = vmatprep.subr.bf16.mxu1 %v1637_v9  ;;  %v1820_v9 = vpack.c.bf16 %v1770_v7, %v1769_v6  ;;  %v1835_v7 = vpack.c.bf16 %v1800_v4, %v1799_v2  ;;  %v2000_v2 = vld [vmem:[#allocation16 + $0x128] sm:$0xff] }
 0x4fc   : > { %3182 = vmatpush3.bf16.msra.mxu0 %v1645_v13  ;;  %2938 = vmatpush3.bf16.msra.mxu1 %v1629_v14  ;;  %v1788_v13 = vld [vmem:[#allocation15 + $0x98] sm:$0xff]  ;;  %v1771_v14 = vld [vmem:[#allocation15 + $0x10] sm:$0xff] }
 0x4fd   : > { %3187 = vmatprep.subr.bf16.mxu0 %v4536_v3  ;;  %2954 = vmatprep.subr.bf16.mxu1 %v1828_v5 }
 0x5b1   : > { %v1527_v15 = vpop.f32.mrb[8].mxu0 }
 0x5b2   : > { %v2908_v16 = vpop.f32.mrb[12].mxu1  ;;  %v3165_v17 = vpop.f32.mrb[9].mxu0 }
 0x5b3   : > { %v2909_v19 = vpop.f32.mrb[13].mxu1  ;;  %v1530_v20 = vpop.f32.mrb[10].mxu0  ;;  %v1805_v17 = vld [vmem:[#allocation15 + $0x120] sm:$0xff] }
 0x5b4   : > { %v2910_v21 = vadd.f32 %v2909_v19, %v2908_v16  ;;  %v2911_v22 = vpop.f32.mrb[14].mxu1  ;;  %v3166_v23 = vpop.f32.mrb[11].mxu0  ;;  %v1772_v16 = vld [vmem:[#allocation15 + $0x18] sm:$0xff] }
 0x5b5   : > { %v2912_v24 = vpop.f32.mrb[15].mxu1  ;;  %v1821_v19 = vpack.c.bf16 %v1772_v16, %v1771_v14  ;;  %v1773_v23 = vld [vmem:[#allocation15 + $0x20] sm:$0xff] }
 0x5b6   : > { %v1487_v25 = vadd.f32 %v2910_v21, %v2807_v18  ;;  %v2913_v26 = vadd.f32 %v2912_v24, %v2911_v22  ;;  %v1789_v21 = vld [vmem:[#allocation15 + $0xa0] sm:$0xff]  ;;  %v1790_v22 = vld [vmem:[#allocation15 + $0xa8] sm:$0xff] }
 0x5b7   : > { %v1830_v24 = vpack.c.bf16 %v1790_v22, %v1789_v21 }
 0x5b8   : > { %v1528_v27 = vadd.f32 %v1527_v15, %v1487_v25  ;;  %v1490_v28 = vadd.f32 %v2913_v26, %v2807_v18  ;;  %v1829_v15 = vpack.c.bf16 %v1788_v13, %v1787_v12  ;;  %v1806_v18 = vld [vmem:[#allocation15 + $0x128] sm:$0xff]  ;;  %v1807_v26 = vld [vmem:[#allocation15 + $0x130] sm:$0xff]  ;;  %v2808_v12 = vld [vmem:[%s4793_s12] ss:$0 sm:$0xff]  ;;  %s4669_s12 = scalar_lea.hbm %s4799_s9, %s2820_s20 }
 0x5b9   : > { %v1774_v25 = vld [vmem:[#allocation15 + $0x28] sm:$0xff] }
 0x5ba   : > { %1534 = vst [vmem:[#allocation3 + $0x8] sm:$0xff] %v1528_v27  ;;  %v1531_v29 = vadd.f32 %v1530_v20, %v1490_v28  ;;  %v1838_v20 = vpack.c.bf16 %v1806_v18, %v1805_v17  ;;  %v1808_v27 = vld [vmem:[#allocation15 + $0x138] sm:$0xff]  ;;  %v1822_v28 = vpack.c.bf16 %v1774_v25, %v1773_v23 }
 0x5bc   : > { %1535 = vst [vmem:[#allocation3 + $0x10] sm:$0xff] %v1531_v29  ;;  %v1791_v29 = vld [vmem:[#allocation15 + $0xb0] sm:$0xff] }
 0x5c1   : > { %v1536_v32 = vld [vmem:[#allocation3 + $0x6] sm:$0xff] }
 0x5c2   : > { %v1542_v33 = vmul.f32 0.70710677, %v1536_v32  ;;  %v1539_v41 = vmul.f32 0.5, %v1536_v32  ;;  %v1792_v32 = vld [vmem:[#allocation15 + $0xb8] sm:$0xff] }
 0x5c3   : > { %v1537_v34 = vld [vmem:[#allocation3 + $0xe] sm:$0xff]  ;;  %v1538_v36 = vld [vmem:[#allocation3 + $0x16] sm:$0xf] }
 0x5c4   : > { %v1543_v0 = vmul.f32 0.70710677, %v1537_v34  ;;  %v1544_v38 = vmul.f32 0.70710677, %v1538_v36  ;;  %3494 = verf.f32 %v1542_v33  ;;  %v1540_v48 = vmul.f32 0.5, %v1537_v34 }
 0x5c5   : > { %v1541_v45 = vmul.f32 0.5, %v1538_v36  ;;  %v1839_v33 = vpack.c.bf16 %v1808_v27, %v1807_v26  ;;  %v1831_v34 = vpack.c.bf16 %v1792_v32, %v1791_v29  ;;  %v1775_v36 = vld [vmem:[#allocation15 + $0x30] sm:$0xff] }
 0x5c6   : > { %3496 = verf.f32 %v1543_v0  ;;  %v1776_v0 = vld [vmem:[#allocation15 + $0x38] sm:$0xff] }
 0x5c7   : > { %3498 = verf.f32 %v1544_v38  ;;  %v1809_v38 = vld [vmem:[#allocation15 + $0x140] sm:$0xff] }
 0x5ce   : > { %v3495_v39 = vpop.eup %3494 }
 0x5cf   : > { %v1548_v42 = vadd.f32 1.0, %v3495_v39  ;;  %v1810_v39 = vld [vmem:[#allocation15 + $0x148] sm:$0xff] }
 0x5d0   : > { %v3497_v40 = vpop.eup %3496 }
 0x5d1   : > { %v3499_v43 = vpop.eup %3498  ;;  %v1549_v44 = vadd.f32 1.0, %v3497_v40  ;;  %v1551_v47 = vmul.f32 %v1548_v42, %v1539_v41  ;;  %v1793_v40 = vld [vmem:[#allocation15 + $0xc0] sm:$0xff]  ;;  %v1794_v41 = vld [vmem:[#allocation15 + $0xc8] sm:$0xff]  ;;  %v1823_v42 = vpack.c.bf16 %v1776_v0, %v1775_v36 }
 0x5d2   : > { %v1550_v46 = vadd.f32 1.0, %v3499_v43  ;;  %v1840_v43 = vpack.c.bf16 %v1810_v39, %v1809_v38 }
 0x5d3   : > { %v1552_v49 = vmul.f32 %v1549_v44, %v1540_v48  ;;  %v1557_v50 = vrot.slane %v1551_v47, 2  ;;  %v1564_v53 = vrot.slane %v1551_v47, 4  ;;  %v1832_v48 = vpack.c.bf16 %v1794_v41, %v1793_v40  ;;  %v1777_v44 = vld [vmem:[#allocation15 + $0x40] sm:$0xff] }
 0x5d4   : > { %v1553_v51 = vmul.f32 %v1550_v46, %v1541_v45  ;;  %v1778_v45 = vld [vmem:[#allocation15 + $0x48] sm:$0xff]  ;;  %v1811_v46 = vld [vmem:[#allocation15 + $0x150] sm:$0xff] }
 0x5d5   : > { %v1558_v52 = vrot.slane %v1552_v49, 2  ;;  %v1565_v54 = vrot.slane %v1552_v49, 4  ;;  %v1619_v62 = vpack.c.bf16 %v1552_v49, %v1551_v47  ;;  %v1812_v47 = vld [vmem:[#allocation15 + $0x158] sm:$0xff]  ;;  %v1795_v49 = vld [vmem:[#allocation15 + $0xd0] sm:$0xff] }
 0x5d6   : > { %v1560_v55 = vrot.slane %v1553_v51, 2  ;;  %v1567_v56 = vrot.slane %v1553_v51, 4  ;;  %v1796_v51 = vld [vmem:[#allocation15 + $0xd8] sm:$0xff] }
 0x5d7   : > { %v1559_v57 = vsel %vm955_vm9, %v1557_v50, %v1558_v52  ;;  %v1566_v30 = vsel %vm1362_vm10, %v1564_v53, %v1565_v54  ;;  %v1824_v50 = vpack.c.bf16 %v1778_v45, %v1777_v44  ;;  %v1833_v53 = vpack.c.bf16 %v1796_v51, %v1795_v49  ;;  %v1995_v49 = vld [vmem:[#allocation16 + $0x100] sm:$0xff]  ;;  %v1996_v51 = vld [vmem:[#allocation16 + $0x108] sm:$0xff] }
 0x5d8   : > { %v1561_v58 = vsel %vm955_vm9, %v1558_v52, %v1560_v55  ;;  %v1568_v59 = vsel %vm1362_vm10, %v1565_v54, %v1567_v56  ;;  %v1841_v52 = vpack.c.bf16 %v1812_v47, %v1811_v46  ;;  %v1779_v54 = vld [vmem:[#allocation15 + $0x50] sm:$0xff]  ;;  %v1780_v55 = vld [vmem:[#allocation15 + $0x58] sm:$0xff]  ;;  %v1813_v56 = vld [vmem:[#allocation15 + $0x160] sm:$0xff] }
 0x5d9   : > { %v1620_v60 = vpack.c.bf16 %v1561_v58, %v1559_v57  ;;  %v1621_v61 = vpack.c.bf16 %v1568_v59, %v1566_v30  ;;  %v1814_v57 = vld [vmem:[#allocation15 + $0x168] sm:$0xff]  ;;  %v1797_v30 = vld [vmem:[#allocation15 + $0xe0] sm:$0xff]  ;;  %v1825_v59 = vpack.c.bf16 %v1780_v55, %v1779_v54 }
 0x5da   : > { %v1798_v58 = vld [vmem:[#allocation15 + $0xe8] sm:$0xff]  ;;  %v1963_v55 = vld [vmem:[#allocation16] sm:$0xff] }
 0x5db   : > { %1685 = vmatprep.mubr.bf16.mxu1 %v1620_v60  ;;  %3184 = vmatmul.mubr.bf16.vlgmr.msra.gmra.mrb[4].mxu0 %v1621_v61  ;;  %v1842_v60 = vpack.c.bf16 %v1814_v57, %v1813_v56  ;;  %v1834_v61 = vpack.c.bf16 %v1798_v58, %v1797_v30  ;;  %v1964_v56 = vld [vmem:[#allocation16 + $0x8] sm:$0xff]  ;;  %v1997_v57 = vld [vmem:[#allocation16 + $0x110] sm:$0xff]  ;;  %v1998_v58 = vld [vmem:[#allocation16 + $0x118] sm:$0xff] }
 0x5dc   : > { %1686 = vmatmul.mubr.bf16.vlgmr.msra.gmra.mrb[16].mxu1 %v1619_v62  ;;  %3203 = vmatprep.mubr.msk.bf16.mxu0 %vm3936_vm2, %v4536_v3  ;;  %v1781_v62 = vld [vmem:[#allocation15 + $0x60] sm:$0xff]  ;;  %v2014_v30 = vpack.c.bf16 %v1964_v56, %v1963_v55 }
 0x5dd   : > { %3188 = vmatpush3.bf16.msra.mxu0 %v1836_v1  ;;  %2955 = vmatpush3.bf16.msra.mxu1 %v1820_v9  ;;  %v1816_v1 = vld [vmem:[#allocation15 + $0x178] sm:$0xff]  ;;  %v1826_v5 = vpack.c.bf16 %v1782_v31, %v1781_v62  ;;  %v1965_v62 = vld [vmem:[#allocation16 + $0x10] sm:$0xff] }
 0x5de   : > { %3189 = vmatprep.subr.bf16.mxu0 %v4536_v3  ;;  %2956 = vmatprep.subr.bf16.mxu1 %v1829_v15  ;;  %v1843_v6 = vpack.c.bf16 %v1816_v1, %v1815_v63  ;;  %v1784_v9 = vld [vmem:[#allocation15 + $0x78] sm:$0xff]  ;;  %v1999_v1 = vld [vmem:[#allocation16 + $0x120] sm:$0xff] }
 0x5df   : > { %v1827_v10 = vpack.c.bf16 %v1784_v9, %v1783_v8  ;;  %v1966_v63 = vld [vmem:[#allocation16 + $0x18] sm:$0xff]  ;;  %v1967_v8 = vld [vmem:[#allocation16 + $0x20] sm:$0xff] }
 0x5e0   : > { %v2015_v4 = vpack.c.bf16 %v1966_v63, %v1965_v62  ;;  %v2809_v63 = vld [vmem:[%s4794_s6] ss:$0 sm:$0xff] }
 0x5e1   : > { %3190 = vmatpush3.bf16.msra.mxu0 %v1837_v11  ;;  %2957 = vmatpush3.bf16.msra.mxu1 %v1821_v19 }
 0x5e2   : > { %3191 = vmatprep.subr.bf16.mxu0 %v4536_v3  ;;  %2958 = vmatprep.subr.bf16.mxu1 %v1830_v24 }
 0x5e5   : > { %3192 = vmatpush3.bf16.msra.mxu0 %v1838_v20  ;;  %2959 = vmatpush3.bf16.msra.mxu1 %v1822_v28 }
 0x5e6   : > { %3193 = vmatprep.subr.bf16.mxu0 %v4536_v3  ;;  %2960 = vmatprep.subr.bf16.mxu1 %v1831_v34 }
 0x5e9   : > { %3194 = vmatpush3.bf16.msra.mxu0 %v1839_v33  ;;  %2961 = vmatpush3.bf16.msra.mxu1 %v1823_v42 }
 0x5ea   : > { %3195 = vmatprep.subr.bf16.mxu0 %v4536_v3  ;;  %2962 = vmatprep.subr.bf16.mxu1 %v1832_v48 }
 0x5ed   : > { %3196 = vmatpush3.bf16.msra.mxu0 %v1840_v43  ;;  %2963 = vmatpush3.bf16.msra.mxu1 %v1824_v50  ;;  %v2030_v50 = vpack.c.bf16 %v1996_v51, %v1995_v49  ;;  %v1976_v49 = vld [vmem:[#allocation16 + $0x68] sm:$0xff]  ;;  %v2009_v51 = vld [vmem:[#allocation16 + $0x170] sm:$0xff] }
 0x5ee   : > { %3197 = vmatprep.subr.bf16.mxu0 %v4536_v3  ;;  %2964 = vmatprep.subr.bf16.mxu1 %v1833_v53  ;;  %v1980_v53 = vld [vmem:[#allocation16 + $0x88] sm:$0xff] }
 0x5f1   : > { %3198 = vmatpush3.bf16.msra.mxu0 %v1841_v52  ;;  %2965 = vmatpush3.bf16.msra.mxu1 %v1825_v59  ;;  %v1979_v52 = vld [vmem:[#allocation16 + $0x80] sm:$0xff]  ;;  %v2031_v59 = vpack.c.bf16 %v1998_v58, %v1997_v57  ;;  %v1977_v57 = vld [vmem:[#allocation16 + $0x70] sm:$0xff] }
 0x5f2   : > { %3199 = vmatprep.subr.bf16.mxu0 %v4536_v3  ;;  %2966 = vmatprep.subr.bf16.mxu1 %v1834_v61  ;;  %v2022_v54 = vpack.c.bf16 %v1980_v53, %v1979_v52  ;;  %v1982_v61 = vld [vmem:[#allocation16 + $0x98] sm:$0xff]  ;;  %v1993_v52 = vld [vmem:[#allocation16 + $0xf0] sm:$0xff] }
 0x5f3   : > { %v1994_v53 = vld [vmem:[#allocation16 + $0xf8] sm:$0xff] }
 0x5f4   : > { %v2029_v56 = vpack.c.bf16 %v1994_v53, %v1993_v52  ;;  %v2192_v53 = vld [vmem:[#allocation18 + $0x118] sm:$0xff] }
 0x5f5   : > { %3200 = vmatpush3.bf16.msra.mxu0 %v1842_v60  ;;  %2967 = vmatpush3.bf16.msra.mxu1 %v1826_v5  ;;  %v1981_v60 = vld [vmem:[#allocation16 + $0x90] sm:$0xff]  ;;  %v2032_v5 = vpack.c.bf16 %v2000_v2, %v1999_v1 }
 0x5f6   : > { %3201 = vmatprep.subr.bf16.mxu0 %v4536_v3  ;;  %2968 = vmatprep.subr.bf16.mxu1 %v1835_v7  ;;  %v2023_v31 = vpack.c.bf16 %v1982_v61, %v1981_v60  ;;  %v1984_v7 = vld [vmem:[#allocation16 + $0xa8] sm:$0xff] }
 0x5f9   : > { %3202 = vmatpush3.bf16.msra.mxu0 %v1843_v6  ;;  %2969 = vmatpush3.bf16.msra.mxu1 %v1827_v10  ;;  %v1983_v6 = vld [vmem:[#allocation16 + $0xa0] sm:$0xff]  ;;  %v1968_v10 = vld [vmem:[#allocation16 + $0x28] sm:$0xff] }
 0x5fa   : > { %3207 = vmatprep.subr.bf16.mxu0 %v4536_v3  ;;  %2985 = vmatprep.subr.bf16.mxu1 %v2022_v54  ;;  %v2024_v9 = vpack.c.bf16 %v1984_v7, %v1983_v6 }
 0x6af   : > { %v2939_v11 = vpop.f32.mrb[16].mxu1 }
 0x6b0   : > { %v2940_v13 = vpop.f32.mrb[17].mxu1 }
 0x6b1   : > { %v2941_v14 = vadd.f32 %v2940_v13, %v2939_v11  ;;  %v2942_v15 = vpop.f32.mrb[18].mxu1  ;;  %v2001_v11 = vld [vmem:[#allocation16 + $0x130] sm:$0xff]  ;;  %v2016_v13 = vpack.c.bf16 %v1968_v10, %v1967_v8 }
 0x6b2   : > { %v2943_v16 = vpop.f32.mrb[19].mxu1 }
 0x6b3   : > { %v1688_v17 = vadd.f32 %v2941_v14, %v2808_v12  ;;  %v2944_v18 = vadd.f32 %v2943_v16, %v2942_v15  ;;  %v1985_v14 = vld [vmem:[#allocation16 + $0xb0] sm:$0xff]  ;;  %v1986_v15 = vld [vmem:[#allocation16 + $0xb8] sm:$0xff] }
 0x6b5   : > { %v4569_v19 = vadd.f32 %v4525_v35, %v1688_v17  ;;  %v1691_v20 = vadd.f32 %v2944_v18, %v2808_v12  ;;  %v2002_v12 = vld [vmem:[#allocation16 + $0x138] sm:$0xff]  ;;  %v2025_v17 = vpack.c.bf16 %v1986_v15, %v1985_v14  ;;  %v1969_v18 = vld [vmem:[#allocation16 + $0x30] sm:$0xff] }
 0x6b6   : > { %v2033_v16 = vpack.c.bf16 %v2002_v12, %v2001_v11 }
 0x6b7   : > { %3291 = vst [vmem:[#allocation2 + $0x8] sm:$0xff] %v4569_v19  ;;  %v4573_v21 = vadd.f32 %v4529_v37, %v1691_v20  ;;  %v1970_v20 = vld [vmem:[#allocation16 + $0x38] sm:$0xff] }
 0x6b9   : > { %3301 = vst [vmem:[#allocation2 + $0x10] sm:$0xff] %v4573_v21 }
 0x6be   : > { %v1741_v22 = vld [vmem:[#allocation2 + $0x4] sm:$0xff] }
 0x6bf   : > { %v1747_v23 = vmul.f32 0.70710677, %v1741_v22  ;;  %v1744_v29 = vmul.f32 0.5, %v1741_v22  ;;  %v2003_v22 = vld [vmem:[#allocation16 + $0x140] sm:$0xff] }
 0x6c0   : > { %v1742_v24 = vld [vmem:[#allocation2 + $0xc] sm:$0xff]  ;;  %v1743_v25 = vld [vmem:[#allocation2 + $0x14] sm:$0xff] }
 0x6c1   : > { %v1748_v26 = vmul.f32 0.70710677, %v1742_v24  ;;  %v1749_v27 = vmul.f32 0.70710677, %v1743_v25  ;;  %3500 = verf.f32 %v1747_v23  ;;  %v1745_v34 = vmul.f32 0.5, %v1742_v24  ;;  %v2004_v23 = vld [vmem:[#allocation16 + $0x148] sm:$0xff] }
 0x6c2   : > { %v1746_v37 = vmul.f32 0.5, %v1743_v25  ;;  %v1987_v24 = vld [vmem:[#allocation16 + $0xc0] sm:$0xff]  ;;  %v1988_v25 = vld [vmem:[#allocation16 + $0xc8] sm:$0xff] }
 0x6c3   : > { %3502 = verf.f32 %v1748_v26  ;;  %v2017_v26 = vpack.c.bf16 %v1970_v20, %v1969_v18 }
 0x6c4   : > { %3504 = verf.f32 %v1749_v27  ;;  %v2034_v27 = vpack.c.bf16 %v2004_v23, %v2003_v22 }
 0x6cb   : > { %v3501_v28 = vpop.eup %3500 }
 0x6cc   : > { %v1753_v32 = vadd.f32 1.0, %v3501_v28  ;;  %v2026_v28 = vpack.c.bf16 %v1988_v25, %v1987_v24 }
 0x6cd   : > { %v3503_v35 = vpop.eup %3502 }
 0x6ce   : > { %v3505_v33 = vpop.eup %3504  ;;  %v1754_v36 = vadd.f32 1.0, %v3503_v35  ;;  %v1756_v38 = vmul.f32 %v1753_v32, %v1744_v29  ;;  %v1971_v35 = vld [vmem:[#allocation16 + $0x40] sm:$0xff]  ;;  %v1972_v29 = vld [vmem:[#allocation16 + $0x48] sm:$0xff]  ;;  %v2005_v32 = vld [vmem:[#allocation16 + $0x150] sm:$0xff] }
 0x6cf   : > { %v1755_v0 = vadd.f32 1.0, %v3505_v33  ;;  %v2006_v33 = vld [vmem:[#allocation16 + $0x158] sm:$0xff] }
 0x6d0   : > { %v1757_v39 = vmul.f32 %v1754_v36, %v1745_v34  ;;  %v1762_v41 = vrot.slane %v1756_v38, 4  ;;  %v1989_v34 = vld [vmem:[#allocation16 + $0xd0] sm:$0xff]  ;;  %v1990_v36 = vld [vmem:[#allocation16 + $0xd8] sm:$0xff] }
 0x6d1   : > { %v1758_v40 = vmul.f32 %v1755_v0, %v1746_v37  ;;  %v2018_v37 = vpack.c.bf16 %v1972_v29, %v1971_v35  ;;  %v2035_v0 = vpack.c.bf16 %v2006_v33, %v2005_v32 }
 0x6d2   : > { %v1763_v42 = vrot.slane %v1757_v39, 4  ;;  %v1817_v47 = vpack.c.bf16 %v1757_v39, %v1756_v38  ;;  %v2027_v38 = vpack.c.bf16 %v1990_v36, %v1989_v34 }
 0x6d3   : > { %v1819_v43 = vpack.c.bf16 %v1758_v40, %v1757_v39  ;;  %v1765_v48 = vrot.slane %v1758_v40, 4  ;;  %v1973_v39 = vld [vmem:[#allocation16 + $0x50] sm:$0xff]  ;;  %v1974_v40 = vld [vmem:[#allocation16 + $0x58] sm:$0xff] }
 0x6d4   : > { %v1764_v44 = vsel %vm1362_vm10, %v1762_v41, %v1763_v42  ;;  %v2007_v41 = vld [vmem:[#allocation16 + $0x160] sm:$0xff] }
 0x6d5   : > { %3204 = vmatmul.mubr.bf16.vlgmr.msra.gmra.mrb[12].mxu0 %v1819_v43  ;;  %v1766_v45 = vsel %vm1362_vm10, %v1763_v42, %v1765_v48  ;;  %v2008_v42 = vld [vmem:[#allocation16 + $0x168] sm:$0xff]  ;;  %v1991_v43 = vld [vmem:[#allocation16 + $0xe0] sm:$0xff] }
 0x6d6   : > { %v1818_v46 = vpack.c.bf16 %v1766_v45, %v1764_v44  ;;  %3223 = vmatprep.mubr.msk.bf16.mxu0 %vm3936_vm2, %v4536_v3  ;;  %3208 = vmatpush3.bf16.msra.mxu0 %v2030_v50  ;;  %v1992_v48 = vld [vmem:[#allocation16 + $0xe8] sm:$0xff]  ;;  %v2019_v44 = vpack.c.bf16 %v1974_v40, %v1973_v39  ;;  %v2036_v45 = vpack.c.bf16 %v2008_v42, %v2007_v41  ;;  %v2010_v50 = vld [vmem:[#allocation16 + $0x178] sm:$0xff]  ;;  %v2173_v40 = vld [vmem:[#allocation18 + $0x80] sm:$0xff] }
 0x6d7   : > { %3209 = vmatprep.subr.bf16.mxu0 %v4536_v3  ;;  %v2037_v55 = vpack.c.bf16 %v2010_v50, %v2009_v51  ;;  %v2174_v41 = vld [vmem:[#allocation18 + $0x88] sm:$0xff]  ;;  %v2189_v42 = vld [vmem:[#allocation18 + $0x100] sm:$0xff]  ;;  %v2176_v51 = vld [vmem:[#allocation18 + $0x98] sm:$0xff] }
 0x6d8   : > { %1883 = vmatprep.mubr.bf16.mxu1 %v1818_v46  ;;  %v2028_v46 = vpack.c.bf16 %v1992_v48, %v1991_v43  ;;  %v2216_v43 = vpack.c.bf16 %v2174_v41, %v2173_v40  ;;  %v2190_v48 = vld [vmem:[#allocation18 + $0x108] sm:$0xff]  ;;  %v2191_v50 = vld [vmem:[#allocation18 + $0x110] sm:$0xff]  ;;  %v2188_v41 = vld [vmem:[#allocation18 + $0xf8] sm:$0xff] }
 0x6d9   : > { %1884 = vmatmul.mubr.bf16.vlgmr.msra.gmra.mrb[20].mxu1 %v1817_v47  ;;  %v1975_v47 = vld [vmem:[#allocation16 + $0x60] sm:$0xff]  ;;  %v2187_v40 = vld [vmem:[#allocation18 + $0xf0] sm:$0xff] }
 0x6da   : > { %2986 = vmatpush3.bf16.msra.mxu1 %v2014_v30  ;;  %3210 = vmatpush3.bf16.msra.mxu0 %v2031_v59  ;;  %v2020_v54 = vpack.c.bf16 %v1976_v49, %v1975_v47  ;;  %v1978_v30 = vld [vmem:[#allocation16 + $0x78] sm:$0xff]  ;;  %v2175_v49 = vld [vmem:[#allocation18 + $0x90] sm:$0xff] }
 0x6db   : > { %3211 = vmatprep.subr.bf16.mxu0 %v4536_v3  ;;  %2987 = vmatprep.subr.bf16.mxu1 %v2023_v31  ;;  %v2021_v58 = vpack.c.bf16 %v1978_v30, %v1977_v57  ;;  %v2217_v52 = vpack.c.bf16 %v2176_v51, %v2175_v49  ;;  %v2177_v30 = vld [vmem:[#allocation18 + $0xa0] sm:$0xff] }
 0x6de   : > { %2988 = vmatpush3.bf16.msra.mxu1 %v2015_v4  ;;  %3212 = vmatpush3.bf16.msra.mxu0 %v2032_v5 }
 0x6df   : > { %2989 = vmatprep.subr.bf16.mxu1 %v2024_v9  ;;  %3213 = vmatprep.subr.bf16.mxu0 %v4536_v3 }
 0x6e2   : > { %2990 = vmatpush3.bf16.msra.mxu1 %v2016_v13  ;;  %3214 = vmatpush3.bf16.msra.mxu0 %v2033_v16 }
 0x6e3   : > { %2991 = vmatprep.subr.bf16.mxu1 %v2025_v17  ;;  %3215 = vmatprep.subr.bf16.mxu0 %v4536_v3 }
 0x6e6   : > { %2992 = vmatpush3.bf16.msra.mxu1 %v2017_v26  ;;  %3216 = vmatpush3.bf16.msra.mxu0 %v2034_v27 }
 0x6e7   : > { %2993 = vmatprep.subr.bf16.mxu1 %v2026_v28  ;;  %3217 = vmatprep.subr.bf16.mxu0 %v4536_v3 }
 0x6ea   : > { %2994 = vmatpush3.bf16.msra.mxu1 %v2018_v37  ;;  %3218 = vmatpush3.bf16.msra.mxu0 %v2035_v0 }
 0x6eb   : > { %2995 = vmatprep.subr.bf16.mxu1 %v2027_v38  ;;  %3219 = vmatprep.subr.bf16.mxu0 %v4536_v3 }
 0x6ee   : > { %2996 = vmatpush3.bf16.msra.mxu1 %v2019_v44  ;;  %3220 = vmatpush3.bf16.msra.mxu0 %v2036_v45  ;;  %v2157_v44 = vld [vmem:[#allocation18] sm:$0xff]  ;;  %v2158_v45 = vld [vmem:[#allocation18 + $0x8] sm:$0xff] }
 0x6ef   : > { %2997 = vmatprep.subr.bf16.mxu1 %v2028_v46  ;;  %3221 = vmatprep.subr.bf16.mxu0 %v4536_v3  ;;  %v2224_v46 = vpack.c.bf16 %v2190_v48, %v2189_v42  ;;  %v2208_v47 = vpack.c.bf16 %v2158_v45, %v2157_v44  ;;  %v2203_v48 = vld [vmem:[#allocation18 + $0x170] sm:$0xff]  ;;  %v2223_v44 = vpack.c.bf16 %v2188_v41, %v2187_v40  ;;  %v2204_v45 = vld [vmem:[#allocation18 + $0x178] sm:$0xff] }
 0x6f0   : > { %v2231_v49 = vpack.c.bf16 %v2204_v45, %v2203_v48  ;;  %v2350_v40 = vld [vmem:[#allocation19 + $0x18] sm:$0xff]  ;;  %v2368_v45 = vld [vmem:[#allocation19 + $0xa8] sm:$0xff] }
 0x6f2   : > { %2998 = vmatpush3.bf16.msra.mxu1 %v2020_v54  ;;  %3222 = vmatpush3.bf16.msra.mxu0 %v2037_v55  ;;  %v2159_v54 = vld [vmem:[#allocation18 + $0x10] sm:$0xff]  ;;  %v2160_v55 = vld [vmem:[#allocation18 + $0x18] sm:$0xff] }
 0x6f3   : > { %2999 = vmatprep.subr.bf16.mxu1 %v2029_v56  ;;  %3227 = vmatprep.subr.bf16.mxu0 %v4536_v3  ;;  %v2225_v56 = vpack.c.bf16 %v2192_v53, %v2191_v50  ;;  %v2209_v57 = vpack.c.bf16 %v2160_v55, %v2159_v54 }
 0x6f6   : > { %3000 = vmatpush3.bf16.msra.mxu1 %v2021_v58  ;;  %v2178_v58 = vld [vmem:[#allocation18 + $0xa8] sm:$0xff] }
 0x6f7   : > { %3016 = vmatprep.subr.bf16.mxu1 %v2216_v43 }
 0x7a8   : > { %v1926_v59 = vpop.f32.mrb[12].mxu0 }
 0x7a9   : > { %v3205_v60 = vpop.f32.mrb[13].mxu0 }
 0x7aa   : > { %v1929_v61 = vpop.f32.mrb[14].mxu0  ;;  %v2218_v60 = vpack.c.bf16 %v2178_v58, %v2177_v30 }
 0x7ab   : > { %v3206_v62 = vpop.f32.mrb[15].mxu0 }
 0x7ac   : > { %v2970_v31 = vpop.f32.mrb[20].mxu1  ;;  %v2161_v62 = vld [vmem:[#allocation18 + $0x20] sm:$0xff] }
 0x7ad   : > { %v2971_v1 = vpop.f32.mrb[21].mxu1 }
 0x7ae   : > { %v2972_v2 = vadd.f32 %v2971_v1, %v2970_v31  ;;  %v2973_v4 = vpop.f32.mrb[22].mxu1  ;;  %v2162_v31 = vld [vmem:[#allocation18 + $0x28] sm:$0xff] }
 0x7af   : > { %v2974_v5 = vpop.f32.mrb[23].mxu1  ;;  %v2210_v1 = vpack.c.bf16 %v2162_v31, %v2161_v62 }
 0x7b0   : > { %v1886_v6 = vadd.f32 %v2972_v2, %v2809_v63  ;;  %v2975_v7 = vadd.f32 %v2974_v5, %v2973_v4  ;;  %v2179_v2 = vld [vmem:[#allocation18 + $0xb0] sm:$0xff]  ;;  %v2180_v4 = vld [vmem:[#allocation18 + $0xb8] sm:$0xff] }
 0x7b1   : > { %v2195_v5 = vld [vmem:[#allocation18 + $0x130] sm:$0xff] }
 0x7b2   : > { %v1927_v8 = vadd.f32 %v1926_v59, %v1886_v6  ;;  %v1889_v9 = vadd.f32 %v2975_v7, %v2809_v63  ;;  %v2193_v59 = vld [vmem:[#allocation18 + $0x120] sm:$0xff]  ;;  %v2219_v6 = vpack.c.bf16 %v2180_v4, %v2179_v2  ;;  %v2196_v7 = vld [vmem:[#allocation18 + $0x138] sm:$0xff] }
 0x7b4   : > { %1933 = vst [vmem:[#allocation3 + $0x8] sm:$0xff] %v1927_v8  ;;  %v1930_v10 = vadd.f32 %v1929_v61, %v1889_v9  ;;  %v2194_v61 = vld [vmem:[#allocation18 + $0x128] sm:$0xff]  ;;  %v2163_v8 = vld [vmem:[#allocation18 + $0x30] sm:$0xff]  ;;  %v2164_v9 = vld [vmem:[#allocation18 + $0x38] sm:$0xff] }
 0x7b5   : > { %v2226_v63 = vpack.c.bf16 %v2194_v61, %v2193_v59 }
 0x7b6   : > { %1934 = vst [vmem:[#allocation3 + $0x10] sm:$0xff] %v1930_v10  ;;  %v2227_v10 = vpack.c.bf16 %v2196_v7, %v2195_v5 }
 0x7bb   : > { %v1935_v11 = vld [vmem:[#allocation3 + $0x4] sm:$0xff] }
 0x7bc   : > { %v1941_v12 = vmul.f32 0.70710677, %v1935_v11  ;;  %v1938_v20 = vmul.f32 0.5, %v1935_v11  ;;  %v2211_v11 = vpack.c.bf16 %v2164_v9, %v2163_v8 }
 0x7bd   : > { %v1936_v13 = vld [vmem:[#allocation3 + $0xc] sm:$0xff]  ;;  %v1937_v14 = vld [vmem:[#allocation3 + $0x14] sm:$0xff] }
 0x7be   : > { %v1942_v15 = vmul.f32 0.70710677, %v1936_v13  ;;  %v1943_v16 = vmul.f32 0.70710677, %v1937_v14  ;;  %3506 = verf.f32 %v1941_v12  ;;  %v1939_v24 = vmul.f32 0.5, %v1936_v13  ;;  %v2181_v12 = vld [vmem:[#allocation18 + $0xc0] sm:$0xff] }
 0x7bf   : > { %v1940_v26 = vmul.f32 0.5, %v1937_v14  ;;  %v2182_v13 = vld [vmem:[#allocation18 + $0xc8] sm:$0xff]  ;;  %v2197_v14 = vld [vmem:[#allocation18 + $0x140] sm:$0xff] }
 0x7c0   : > { %3508 = verf.f32 %v1942_v15  ;;  %v2220_v15 = vpack.c.bf16 %v2182_v13, %v2181_v12 }
 0x7c1   : > { %3510 = verf.f32 %v1943_v16  ;;  %v2198_v16 = vld [vmem:[#allocation18 + $0x148] sm:$0xff] }
 0x7c8   : > { %v3507_v17 = vpop.eup %3506 }
 0x7c9   : > { %v1947_v22 = vadd.f32 1.0, %v3507_v17  ;;  %v2165_v17 = vld [vmem:[#allocation18 + $0x40] sm:$0xff] }
 0x7ca   : > { %v3509_v18 = vpop.eup %3508 }
 0x7cb   : > { %v3511_v23 = vpop.eup %3510  ;;  %v1948_v25 = vadd.f32 1.0, %v3509_v18  ;;  %v1950_v28 = vmul.f32 %v1947_v22, %v1938_v20  ;;  %v2166_v18 = vld [vmem:[#allocation18 + $0x48] sm:$0xff]  ;;  %v4598_v20 = vld [vmem:[#allocation2] sm:$0xff] }
 0x7cc   : > { %v1949_v27 = vadd.f32 1.0, %v3511_v23  ;;  %v2212_v22 = vpack.c.bf16 %v2166_v18, %v2165_v17  ;;  %v2183_v23 = vld [vmem:[#allocation18 + $0xd0] sm:$0xff]  ;;  %v2144_v62 = vmul.f32 0.70710677, %v4598_v20 }
 0x7cd   : > { %v1951_v35 = vmul.f32 %v1948_v25, %v1939_v24  ;;  %v1956_v32 = vrot.slane %v1950_v28, 4  ;;  %v2184_v24 = vld [vmem:[#allocation18 + $0xd8] sm:$0xff]  ;;  %v2199_v25 = vld [vmem:[#allocation18 + $0x150] sm:$0xff] }
 0x7ce   : > { %v1952_v29 = vmul.f32 %v1949_v27, %v1940_v26  ;;  %v2221_v26 = vpack.c.bf16 %v2184_v24, %v2183_v23  ;;  %v2200_v27 = vld [vmem:[#allocation18 + $0x158] sm:$0xff]  ;;  %3512 = verf.f32 %v2144_v62  ;;  %v2379_v23 = vld [vmem:[#allocation19 + $0x100] sm:$0xff]  ;;  %v2380_v24 = vld [vmem:[#allocation19 + $0x108] sm:$0xff] }
 0x7cf   : > { %v1957_v33 = vrot.slane %v1951_v35, 4  ;;  %v2011_v39 = vpack.c.bf16 %v1951_v35, %v1950_v28  ;;  %v2167_v28 = vld [vmem:[#allocation18 + $0x50] sm:$0xff] }
 0x7d0   : > { %v2013_v34 = vpack.c.bf16 %v1952_v29, %v1951_v35  ;;  %v1959_v36 = vrot.slane %v1952_v29, 4  ;;  %v2168_v35 = vld [vmem:[#allocation18 + $0x58] sm:$0xff]  ;;  %v2185_v29 = vld [vmem:[#allocation18 + $0xe0] sm:$0xff] }
 0x7d1   : > { %v1958_v37 = vsel %vm1362_vm10, %v1956_v32, %v1957_v33  ;;  %v2186_v32 = vld [vmem:[#allocation18 + $0xe8] sm:$0xff] }
 0x7d2   : > { %3224 = vmatmul.mubr.bf16.vlgmr.msra.gmra.mrb[4].mxu0 %v2013_v34  ;;  %v1960_v0 = vsel %vm1362_vm10, %v1957_v33, %v1959_v36  ;;  %v2229_v33 = vpack.c.bf16 %v2200_v27, %v2199_v25  ;;  %v2213_v34 = vpack.c.bf16 %v2168_v35, %v2167_v28  ;;  %v2201_v36 = vld [vmem:[#allocation18 + $0x160] sm:$0xff]  ;;  %v2414_v25 = vpack.c.bf16 %v2380_v24, %v2379_v23  ;;  %v2364_v27 = vld [vmem:[#allocation19 + $0x88] sm:$0xff] }
 0x7d3   : > { %v2012_v38 = vpack.c.bf16 %v1960_v0, %v1958_v37  ;;  %3243 = vmatprep.mubr.msk.bf16.mxu0 %vm3936_vm2, %v4536_v3  ;;  %3228 = vmatpush3.bf16.msra.mxu0 %v2224_v46  ;;  %v2222_v37 = vpack.c.bf16 %v2186_v32, %v2185_v29  ;;  %v2202_v0 = vld [vmem:[#allocation18 + $0x168] sm:$0xff]  ;;  %v2171_v46 = vld [vmem:[#allocation18 + $0x70] sm:$0xff]  ;;  %v2347_v35 = vld [vmem:[#allocation19] sm:$0xff] }
 0x7d4   : > { %3229 = vmatprep.subr.bf16.mxu0 %v4536_v3  ;;  %v2230_v42 = vpack.c.bf16 %v2202_v0, %v2201_v36  ;;  %v2348_v29 = vld [vmem:[#allocation19 + $0x8] sm:$0xff]  ;;  %v2366_v0 = vld [vmem:[#allocation19 + $0x98] sm:$0xff]  ;;  %v2359_v23 = vld [vmem:[#allocation19 + $0x60] sm:$0xff] }
 0x7d5   : > { %2077 = vmatprep.mubr.bf16.mxu1 %v2012_v38  ;;  %v2169_v38 = vld [vmem:[#allocation18 + $0x60] sm:$0xff]  ;;  %v2398_v32 = vpack.c.bf16 %v2348_v29, %v2347_v35  ;;  %v2360_v24 = vld [vmem:[#allocation19 + $0x68] sm:$0xff]  ;;  %v2394_v35 = vld [vmem:[#allocation19 + $0x178] sm:$0xff] }
 0x7d6   : > { %2078 = vmatmul.mubr.bf16.vlgmr.msra.gmra.mrb[24].mxu1 %v2011_v39  ;;  %v2170_v39 = vld [vmem:[#allocation18 + $0x68] sm:$0xff]  ;;  %v2404_v29 = vpack.c.bf16 %v2360_v24, %v2359_v23 }
 0x7d7   : > { %3017 = vmatpush3.bf16.msra.mxu1 %v2208_v47  ;;  %3230 = vmatpush3.bf16.msra.mxu0 %v2225_v56  ;;  %v2214_v43 = vpack.c.bf16 %v2170_v39, %v2169_v38  ;;  %v2172_v47 = vld [vmem:[#allocation18 + $0x78] sm:$0xff]  ;;  %v2810_v56 = vld [vmem:[%s4795_s28] ss:$0 sm:$0xff]  ;;  %v2349_v39 = vld [vmem:[#allocation19 + $0x10] sm:$0xff]  ;;  %s2602_s28 = sshll.u32 %s819_s1, 4  ;;  %s4664_s28 = int_to_ptr.vmem [resolvable:$true] %s2602_s28 }
 0x7d8   : > { %3018 = vmatprep.subr.bf16.mxu1 %v2217_v52  ;;  %3231 = vmatprep.subr.bf16.mxu0 %v4536_v3  ;;  %v2215_v51 = vpack.c.bf16 %v2172_v47, %v2171_v46  ;;  %v3513_v7 = vpop.eup %3512  ;;  %v2399_v41 = vpack.c.bf16 %v2350_v40, %v2349_v39  ;;  %v2351_v47 = vld [vmem:[#allocation19 + $0x20] sm:$0xff]  ;;  %v2524_v23 = vld [vmem:[#allocation21 + $0x68] sm:$0xff]  ;;  %s3834_s24 = scalar_lea.vmem %s4664_s28, 256 }
 0x7d9   : > { %v2152_v9 = vadd.f32 1.0, %v3513_v7  ;;  %v2389_v7 = vld [vmem:[#allocation19 + $0x150] sm:$0xff]  ;;  %v2811_v40 = vld [vmem:[%s4796_s16] ss:$0 sm:$0xff]  ;;  %p3835_p13 = scmp.ne.s32.totalorder %s4664_s28, %s3834_s24 }
 0x7db   : > { %3019 = vmatpush3.bf16.msra.mxu1 %v2209_v57  ;;  %3232 = vmatpush3.bf16.msra.mxu0 %v2226_v63  ;;  %p3836_p2 = pnand %p3835_p13, %p4800_p0 }
 0x7dc   : > { %3020 = vmatprep.subr.bf16.mxu1 %v2218_v60  ;;  %3233 = vmatprep.subr.bf16.mxu0 %v4536_v3  ;;  %v2228_v3 = vpack.c.bf16 %v2198_v16, %v2197_v14 }
 0x7dd   : > { %p3837_p8 = pneg %p3836_p2 }
 0x7df   : > { %3021 = vmatpush3.bf16.msra.mxu1 %v2210_v1  ;;  %3234 = vmatpush3.bf16.msra.mxu0 %v2227_v10 }
 0x7e0   : > { %3022 = vmatprep.subr.bf16.mxu1 %v2219_v6  ;;  %3235 = vmatprep.subr.bf16.mxu0 %v4598_v20 }
 0x7e3   : > { %3023 = vmatpush3.bf16.msra.mxu1 %v2211_v11  ;;  %3236 = vmatpush3.bf16.msra.mxu0 %v2228_v3 }
 0x7e4   : > { %3024 = vmatprep.subr.bf16.mxu1 %v2220_v15  ;;  %3237 = vmatprep.subr.bf16.mxu0 %v4598_v20 }
 0x7e7   : > { %3025 = vmatpush3.bf16.msra.mxu1 %v2212_v22  ;;  %3238 = vmatpush3.bf16.msra.mxu0 %v2229_v33  ;;  %v2381_v33 = vld [vmem:[#allocation19 + $0x110] sm:$0xff] }
 0x7e8   : > { %3026 = vmatprep.subr.bf16.mxu1 %v2221_v26  ;;  %3239 = vmatprep.subr.bf16.mxu0 %v4598_v20  ;;  %v2363_v26 = vld [vmem:[#allocation19 + $0x80] sm:$0xff] }
 0x7e9   : > { %v2406_v28 = vpack.c.bf16 %v2364_v27, %v2363_v26  ;;  %v2377_v26 = vld [vmem:[#allocation19 + $0xf0] sm:$0xff]  ;;  %v2378_v27 = vld [vmem:[#allocation19 + $0xf8] sm:$0xff] }
 0x7eb   : > { %3027 = vmatpush3.bf16.msra.mxu1 %v2213_v34  ;;  %3240 = vmatpush3.bf16.msra.mxu0 %v2230_v42  ;;  %v2382_v34 = vld [vmem:[#allocation19 + $0x118] sm:$0xff]  ;;  %v2383_v42 = vld [vmem:[#allocation19 + $0x120] sm:$0xff] }
 0x7ec   : > { %3028 = vmatprep.subr.bf16.mxu1 %v2222_v37  ;;  %3241 = vmatprep.subr.bf16.mxu0 %v4598_v20  ;;  %v2415_v36 = vpack.c.bf16 %v2382_v34, %v2381_v33  ;;  %v2365_v37 = vld [vmem:[#allocation19 + $0x90] sm:$0xff]  ;;  %v2362_v34 = vld [vmem:[#allocation19 + $0x78] sm:$0xff] }
 0x7ed   : > { %v2407_v38 = vpack.c.bf16 %v2366_v0, %v2365_v37  ;;  %v2361_v33 = vld [vmem:[#allocation19 + $0x70] sm:$0xff] }
 0x7ee   : > { %v2405_v37 = vpack.c.bf16 %v2362_v34, %v2361_v33 }
 0x7ef   : > { %3029 = vmatpush3.bf16.msra.mxu1 %v2214_v43  ;;  %3242 = vmatpush3.bf16.msra.mxu0 %v2231_v49  ;;  %v2384_v43 = vld [vmem:[#allocation19 + $0x128] sm:$0xff] }
 0x7f0   : > { %3030 = vmatprep.subr.bf16.mxu1 %v2223_v44  ;;  %3247 = vmatprep.subr.bf16.mxu0 %v4598_v20  ;;  %v2416_v48 = vpack.c.bf16 %v2384_v43, %v2383_v42  ;;  %v2367_v44 = vld [vmem:[#allocation19 + $0xa0] sm:$0xff]  ;;  %v2352_v49 = vld [vmem:[#allocation19 + $0x28] sm:$0xff] }
 0x7f1   : > { %v2408_v46 = vpack.c.bf16 %v2368_v45, %v2367_v44 }
 0x7f3   : > { %3031 = vmatpush3.bf16.msra.mxu1 %v2215_v51  ;;  %v2400_v51 = vpack.c.bf16 %v2352_v49, %v2351_v47 }
 0x7f4   : > { %3047 = vmatprep.subr.bf16.mxu1 %v2406_v28  ;;  %v2393_v28 = vld [vmem:[#allocation19 + $0x170] sm:$0xff] }
 0x8a5   : > { %v2120_v50 = vpop.f32.mrb[4].mxu0 }
 0x8a6   : > { %v3225_v52 = vpop.f32.mrb[5].mxu0 }
 0x8a7   : > { %v2123_v53 = vpop.f32.mrb[6].mxu0  ;;  %v2386_v52 = vld [vmem:[#allocation19 + $0x138] sm:$0xff] }
 0x8a8   : > { %v3226_v54 = vpop.f32.mrb[7].mxu0 }
 0x8a9   : > { %v3001_v55 = vpop.f32.mrb[24].mxu1  ;;  %v2369_v54 = vld [vmem:[#allocation19 + $0xb0] sm:$0xff] }
 0x8aa   : > { %v3002_v57 = vpop.f32.mrb[25].mxu1 }
 0x8ab   : > { %v3003_v30 = vadd.f32 %v3002_v57, %v3001_v55  ;;  %v3004_v58 = vpop.f32.mrb[26].mxu1  ;;  %v2370_v55 = vld [vmem:[#allocation19 + $0xb8] sm:$0xff]  ;;  %v2353_v57 = vld [vmem:[#allocation19 + $0x30] sm:$0xff] }
 0x8ac   : > { %v3005_v59 = vpop.f32.mrb[27].mxu1 }
 0x8ad   : > { %v2080_v60 = vadd.f32 %v3003_v30, %v2810_v56  ;;  %v3006_v61 = vadd.f32 %v3005_v59, %v3004_v58  ;;  %v2354_v30 = vld [vmem:[#allocation19 + $0x38] sm:$0xff]  ;;  %v2387_v59 = vld [vmem:[#allocation19 + $0x140] sm:$0xff] }
 0x8ae   : > { %v2401_v58 = vpack.c.bf16 %v2354_v30, %v2353_v57 }
 0x8af   : > { %v3293_v31 = vadd.f32 %v4569_v19, %v2080_v60  ;;  %v2083_v63 = vadd.f32 %v3006_v61, %v2810_v56  ;;  %v2409_v56 = vpack.c.bf16 %v2370_v55, %v2369_v54  ;;  %v2388_v60 = vld [vmem:[#allocation19 + $0x148] sm:$0xff]  ;;  %v2371_v61 = vld [vmem:[#allocation19 + $0xc0] sm:$0xff] }
 0x8b0   : > { %v2418_v62 = vpack.c.bf16 %v2388_v60, %v2387_v59  ;;  %v2511_v59 = vld [vmem:[#allocation21] sm:$0xff]  ;;  %v2512_v60 = vld [vmem:[#allocation21 + $0x8] sm:$0xff] }
 0x8b1   : > { %v4610_v1 = vadd.f32 %v3293_v31, %v2120_v50  ;;  %v3303_v2 = vadd.f32 %v4573_v21, %v2083_v63  ;;  %v2140_v21 = vmul.f32 0.5, %v4598_v20  ;;  %v2385_v50 = vld [vmem:[#allocation19 + $0x130] sm:$0xff]  ;;  %v2372_v31 = vld [vmem:[#allocation19 + $0xc8] sm:$0xff]  ;;  %v2355_v63 = vld [vmem:[#allocation19 + $0x40] sm:$0xff] }
 0x8b3   : > { %2129 = vst [vmem:[#allocation2 + $0x8] sm:$0xff] %v4610_v1  ;;  %v4614_v4 = vadd.f32 %v3303_v2, %v2123_v53  ;;  %v2142_v5 = vmul.f32 0.70710677, %v4610_v1  ;;  %v2138_v12 = vmul.f32 0.5, %v4610_v1  ;;  %v4624_v16 = vmul.f32 %v2152_v9, %v2140_v21  ;;  %v2356_v2 = vld [vmem:[#allocation19 + $0x48] sm:$0xff]  ;;  %v2373_v21 = vld [vmem:[#allocation19 + $0xd0] sm:$0xff] }
 0x8b4   : > { %v2417_v53 = vpack.c.bf16 %v2386_v52, %v2385_v50 }
 0x8b5   : > { %2130 = vst [vmem:[#allocation2 + $0x10] sm:$0xff] %v4614_v4  ;;  %v2143_v6 = vmul.f32 0.70710677, %v4614_v4  ;;  %3514 = verf.f32 %v2142_v5  ;;  %v2527_v19 = vpack.c.bf16 %v4614_v4, %v4610_v1  ;;  %v2139_v13 = vmul.f32 0.5, %v4614_v4 }
 0x8b6   : > { %v2410_v5 = vpack.c.bf16 %v2372_v31, %v2371_v61  ;;  %v2528_v31 = vpack.c.bf16 %v2512_v60, %v2511_v59 }
 0x8b7   : > { %3516 = verf.f32 %v2143_v6  ;;  %v2402_v6 = vpack.c.bf16 %v2356_v2, %v2355_v63 }
 0x8bf   : > { %v3515_v8 = vpop.eup %3514 }
 0x8c0   : > { %v2150_v10 = vadd.f32 1.0, %v3515_v8  ;;  %v2390_v8 = vld [vmem:[#allocation19 + $0x158] sm:$0xff] }
 0x8c1   : > { %v3517_v11 = vpop.eup %3516  ;;  %v2419_v9 = vpack.c.bf16 %v2390_v8, %v2389_v7 }
 0x8c2   : > { %v2151_v14 = vadd.f32 1.0, %v3517_v11  ;;  %v2154_v15 = vmul.f32 %v2150_v10, %v2138_v12  ;;  %v2374_v10 = vld [vmem:[#allocation19 + $0xd8] sm:$0xff]  ;;  %v2357_v11 = vld [vmem:[#allocation19 + $0x50] sm:$0xff] }
 0x8c3   : > { %v2358_v12 = vld [vmem:[#allocation19 + $0x58] sm:$0xff] }
 0x8c4   : > { %v2155_v17 = vmul.f32 %v2151_v14, %v2139_v13  ;;  %v2205_v22 = vpack.c.bf16 %v2154_v15, %v4624_v16  ;;  %v2411_v13 = vpack.c.bf16 %v2374_v10, %v2373_v21  ;;  %v2391_v14 = vld [vmem:[#allocation19 + $0x160] sm:$0xff] }
 0x8c5   : > { %v2515_v21 = vld [vmem:[#allocation21 + $0x20] sm:$0xff] }
 0x8c6   : > { %v2206_v18 = vpack.c.bf16 %v2155_v17, %v2154_v15  ;;  %v2207_v3 = vpack.c.bf16 %v4624_v16, %v2155_v17  ;;  %v2392_v15 = vld [vmem:[#allocation19 + $0x168] sm:$0xff]  ;;  %v2375_v17 = vld [vmem:[#allocation19 + $0xe0] sm:$0xff] }
 0x8c8   : > { %2271 = vmatprep.mubr.bf16.mxu1 %v2206_v18  ;;  %3244 = vmatmul.mubr.bf16.vlgmr.msra.gmra.mrb[16].mxu0 %v2207_v3  ;;  %v2403_v18 = vpack.c.bf16 %v2358_v12, %v2357_v11  ;;  %v2376_v3 = vld [vmem:[#allocation19 + $0xe8] sm:$0xff]  ;;  %v2517_v11 = vld [vmem:[#allocation21 + $0x30] sm:$0xff]  ;;  %v2518_v12 = vld [vmem:[#allocation21 + $0x38] sm:$0xff] }
 0x8c9   : > { %2272 = vmatmul.mubr.bf16.vlgmr.msra.gmra.mrb[28].mxu1 %v2205_v22  ;;  %3263 = vmatprep.mubr.msk.bf16.mxu0 %vm3936_vm2, %v4598_v20  ;;  %v2412_v22 = vpack.c.bf16 %v2376_v3, %v2375_v17  ;;  %v2521_v17 = vld [vmem:[#allocation21 + $0x50] sm:$0xff] }
 0x8ca   : > { %3248 = vmatpush3.bf16.msra.mxu0 %v2414_v25  ;;  %3048 = vmatpush3.bf16.msra.mxu1 %v2398_v32  ;;  %v2420_v25 = vpack.c.bf16 %v2392_v15, %v2391_v14  ;;  %v2413_v32 = vpack.c.bf16 %v2378_v27, %v2377_v26  ;;  %v2520_v14 = vld [vmem:[#allocation21 + $0x48] sm:$0xff]  ;;  %v2526_v26 = vld [vmem:[#allocation21 + $0x78] sm:$0xff] }
 0x8cb   : > { %3249 = vmatprep.subr.bf16.mxu0 %v4598_v20  ;;  %3049 = vmatprep.subr.bf16.mxu1 %v2407_v38 }
 0x8ce   : > { %3250 = vmatpush3.bf16.msra.mxu0 %v2415_v36  ;;  %3050 = vmatpush3.bf16.msra.mxu1 %v2399_v41  ;;  %v2421_v36 = vpack.c.bf16 %v2394_v35, %v2393_v28 }
 0x8cf   : > { %3251 = vmatprep.subr.bf16.mxu0 %v4598_v20  ;;  %3051 = vmatprep.subr.bf16.mxu1 %v2408_v46 }
 0x8d2   : > { %3252 = vmatpush3.bf16.msra.mxu0 %v2416_v48  ;;  %3052 = vmatpush3.bf16.msra.mxu1 %v2400_v51 }
 0x8d3   : > { %3253 = vmatprep.subr.bf16.mxu0 %v4598_v20  ;;  %3053 = vmatprep.subr.bf16.mxu1 %v2409_v56 }
 0x8d6   : > { %3254 = vmatpush3.bf16.msra.mxu0 %v2417_v53  ;;  %3054 = vmatpush3.bf16.msra.mxu1 %v2401_v58 }
 0x8d7   : > { %3255 = vmatprep.subr.bf16.mxu0 %v4598_v20  ;;  %3055 = vmatprep.subr.bf16.mxu1 %v2410_v5  ;;  %v2513_v5 = vld [vmem:[#allocation21 + $0x10] sm:$0xff] }
 0x8da   : > { %3256 = vmatpush3.bf16.msra.mxu0 %v2418_v62  ;;  %3056 = vmatpush3.bf16.msra.mxu1 %v2402_v6  ;;  %v2514_v6 = vld [vmem:[#allocation21 + $0x18] sm:$0xff] }
 0x8db   : > { %3257 = vmatprep.subr.bf16.mxu0 %v4598_v20  ;;  %3057 = vmatprep.subr.bf16.mxu1 %v2411_v13  ;;  %v2529_v8 = vpack.c.bf16 %v2514_v6, %v2513_v5  ;;  %v2519_v13 = vld [vmem:[#allocation21 + $0x40] sm:$0xff] }
 0x8dc   : > { %v2532_v15 = vpack.c.bf16 %v2520_v14, %v2519_v13 }
 0x8de   : > { %3258 = vmatpush3.bf16.msra.mxu0 %v2419_v9  ;;  %3058 = vmatpush3.bf16.msra.mxu1 %v2403_v18  ;;  %v2516_v9 = vld [vmem:[#allocation21 + $0x28] sm:$0xff]  ;;  %v2522_v18 = vld [vmem:[#allocation21 + $0x58] sm:$0xff] }
 0x8df   : > { %3259 = vmatprep.subr.bf16.mxu0 %v4598_v20  ;;  %3059 = vmatprep.subr.bf16.mxu1 %v2412_v22  ;;  %v2530_v10 = vpack.c.bf16 %v2516_v9, %v2515_v21  ;;  %v2533_v3 = vpack.c.bf16 %v2522_v18, %v2521_v17  ;;  %v2523_v22 = vld [vmem:[#allocation21 + $0x60] sm:$0xff] }
 0x8e0   : > { %v2534_v24 = vpack.c.bf16 %v2524_v23, %v2523_v22 }
 0x8e2   : > { %3260 = vmatpush3.bf16.msra.mxu0 %v2420_v25  ;;  %3060 = vmatpush3.bf16.msra.mxu1 %v2404_v29  ;;  %v2525_v25 = vld [vmem:[#allocation21 + $0x70] sm:$0xff] }
 0x8e3   : > { %3261 = vmatprep.subr.bf16.mxu0 %v4598_v20  ;;  %3061 = vmatprep.subr.bf16.mxu1 %v2413_v32  ;;  %v2535_v27 = vpack.c.bf16 %v2526_v26, %v2525_v25 }
 0x8e6   : > { %3262 = vmatpush3.bf16.msra.mxu0 %v2421_v36  ;;  %3062 = vmatpush3.bf16.msra.mxu1 %v2405_v37  ;;  %v2812_v36 = vld [vmem:[%s4797_s21] ss:$0 sm:$0xff]  ;;  %s3937_s21 = smov [#allocation22]  }
 0x8e7   : > { %3267 = vmatprep.subr.bf16.mxu0 %v4598_v20  ;;  %s3838_s10 = sshll.u32 %s3937_s21, 4  ;;  %s3839_s10 = int_to_ptr.vmem [resolvable:$false] %s3838_s10 }
 0x8e8   : > { %s3840_s6 = scalar_lea.vmem %s3839_s10, 512  ;;  %p3841_p4 = scmp.lt.s32.totalorder %s4664_s28, %s3839_s10 }
 0x8e9   : > { %p3842_p10 = scmp.lt.s32.totalorder %s3840_s6, %s3834_s24 }
 0x8eb   : > { %p3843_p11 = por %p3842_p10, %p3841_p4 }
 0x8ed   : > { %p3844_p3 = pnand %p3843_p11, %p3837_p8 }
 0x99b   : > { %v2314_v0 = vpop.f32.mrb[16].mxu0 }
 0x99c   : > { %v3032_v38 = vpop.f32.mrb[28].mxu1  ;;  %v3245_v39 = vpop.f32.mrb[17].mxu0 }
 0x99d   : > { %v3033_v41 = vpop.f32.mrb[29].mxu1  ;;  %v2317_v42 = vpop.f32.mrb[18].mxu0 }
 0x99e   : > { %v3034_v43 = vadd.f32 %v3033_v41, %v3032_v38  ;;  %v3035_v48 = vpop.f32.mrb[30].mxu1  ;;  %v3246_v44 = vpop.f32.mrb[19].mxu0 }
 0x99f   : > { %v3036_v45 = vpop.f32.mrb[31].mxu1 }
 0x9a0   : > { %v2274_v46 = vadd.f32 %v3034_v43, %v2811_v40  ;;  %v3037_v47 = vadd.f32 %v3036_v45, %v3035_v48 }
 0x9a2   : > { %v2315_v49 = vadd.f32 %v2314_v0, %v2274_v46  ;;  %v2277_v51 = vadd.f32 %v3037_v47, %v2811_v40 }
 0x9a4   : > { %2321 = vst [vmem:[#allocation3 + $0x8] sm:$0xff] %v2315_v49  ;;  %v2318_v50 = vadd.f32 %v2317_v42, %v2277_v51  ;;  %v2332_v52 = vmul.f32 0.70710677, %v2315_v49  ;;  %v2328_v57 = vmul.f32 0.5, %v2315_v49 }
 0x9a6   : > { %2322 = vst [vmem:[#allocation3 + $0x10] sm:$0xff] %v2318_v50  ;;  %v2333_v53 = vmul.f32 0.70710677, %v2318_v50  ;;  %3518 = verf.f32 %v2332_v52  ;;  %v2329_v30 = vmul.f32 0.5, %v2318_v50 }
 0x9a8   : > { %3520 = verf.f32 %v2333_v53 }
 0x9b0   : > { %v3519_v54 = vpop.eup %3518 }
 0x9b1   : > { %v2340_v55 = vadd.f32 1.0, %v3519_v54 }
 0x9b2   : > { %v3521_v56 = vpop.eup %3520 }
 0x9b3   : > { %v2341_v58 = vadd.f32 1.0, %v3521_v56  ;;  %v2344_v61 = vmul.f32 %v2340_v55, %v2328_v57 }
 0x9b5   : > { %v2345_v62 = vmul.f32 %v2341_v58, %v2329_v30  ;;  %v2395_v7 = vpack.c.bf16 %v2344_v61, %v4624_v16 }
 0x9b7   : > { %v2396_v63 = vpack.c.bf16 %v2345_v62, %v2344_v61  ;;  %v2397_v2 = vpack.c.bf16 %v4624_v16, %v2345_v62  ;;  %v2531_v16 = vpack.c.bf16 %v2518_v12, %v2517_v11 }
 0x9b9   : > { %2461 = vmatprep.mubr.bf16.mxu1 %v2396_v63  ;;  %3264 = vmatmul.mubr.bf16.vlgmr.msra.gmra.mrb[20].mxu0 %v2397_v2 }
 0x9ba   : > { %3268 = vmatpush3.bf16.msra.mxu0 %v2528_v31  ;;  %2462 = vmatmul.mubr.bf16.vlgmr.msra.gmra.mrb[32].mxu1 %v2395_v7 }
 0x9bb   : > { %3269 = vmatprep.subr.bf16.mxu0 %v4598_v20  ;;  %3283 = vmatprep.mubr.msk.bf16.mxu0 %vm3936_vm2, %v4598_v20 }
 0x9be   : > { %3270 = vmatpush3.bf16.msra.mxu0 %v2529_v8 }
 0x9bf   : > { %3271 = vmatprep.subr.bf16.mxu0 %v4598_v20 }
 0x9c2   : > { %3272 = vmatpush3.bf16.msra.mxu0 %v2530_v10 }
 0x9c3   : > { %3273 = vmatprep.subr.bf16.mxu0 %v4598_v20 }
 0x9c6   : > { %3274 = vmatpush3.bf16.msra.mxu0 %v2531_v16 }
 0x9c7   : > { %3275 = vmatprep.subr.bf16.mxu0 %v4598_v20 }
 0x9ca   : > { %3276 = vmatpush3.bf16.msra.mxu0 %v2532_v15 }
 0x9cb   : > { %3277 = vmatprep.subr.bf16.mxu0 %v4598_v20 }
 0x9ce   : > { %3278 = vmatpush3.bf16.msra.mxu0 %v2533_v3 }
 0x9cf   : > { %3279 = vmatprep.subr.bf16.mxu0 %v4598_v20 }
 0x9d2   : > { %3280 = vmatpush3.bf16.msra.mxu0 %v2534_v24 }
 0x9d3   : > { %3281 = vmatprep.subr.bf16.mxu0 %v4598_v20  ;;  %v2813_v20 = vld [vmem:[%s4798_s8] ss:$0 sm:$0xff] }
 0x9d6   : > { %3282 = vmatpush3.bf16.msra.mxu0 %v2535_v27 }
 0x9d9   : > { %3284 = vmatmul.mubr.bf16.vlgmr.msra.gmra.mrb[20].mxu0 %v2527_v19 }
 0xa8d   : > { %v3063_v28 = vpop.f32.mrb[32].mxu1 }
 0xa8e   : > { %v3064_v35 = vpop.f32.mrb[33].mxu1 }
 0xa8f   : > { %v3065_v29 = vadd.f32 %v3064_v35, %v3063_v28  ;;  %v3066_v32 = vpop.f32.mrb[34].mxu1 }
 0xa90   : > { %v3067_v33 = vpop.f32.mrb[35].mxu1 }
 0xa91   : > { %v3068_v34 = vadd.f32 %v3067_v33, %v3066_v32  ;;  %v2464_v37 = vadd.f32 %v3065_v29, %v2812_v36 }
 0xa93   : > { %v2467_v0 = vadd.f32 %v3068_v34, %v2812_v36  ;;  %v3307_v1 = vadd.f32 %v2813_v20, %v2464_v37 }
 0xa95   : > { %v3309_v39 = vadd.f32 %v2813_v20, %v2467_v0 }
 0xaac   : > { %v2577_v4 = vpop.f32.mrb[20].mxu0 }
 0xaad   : > { %v3308_v19 = vadd.f32 %v3307_v1, %v2577_v4  ;;  %v3285_v38 = vpop.f32.mrb[21].mxu0 }
 0xaae   : > { %v2580_v40 = vpop.f32.mrb[22].mxu0 }
 0xaaf   : > { %2586 = vst [vmem:[%s819_s1] sm:$0xff] %v3308_v19  ;;  %v3310_v41 = vadd.f32 %v3309_v39, %v2580_v40  ;;  %v3286_v42 = vpop.f32.mrb[23].mxu0 }
 0xab1   : > { %2587 = vst [vmem:[%s819_s1 + $0x8] sm:$0xff] %v3310_v41 }
 0xab2   : > { %3847 = shalt.err (!%p3844_p3)
}
 0xab3   : > { %s3848_s8 = scalar_lea.hbm %s4669_s12, 256  ;;  %s3852_s0 = scalar_lea.hbm %s4799_s9, 512 }
 0xab4   : > { %p3849_p5 = scmp.ne.s32.totalorder %s4669_s12, %s3848_s8  ;;  %p3853_p9 = scmp.lt.u32.totalorder %s4669_s12, %s4799_s9 }
 0xab5   : > { %p3854_p12 = scmp.lt.u32.totalorder %s3852_s0, %s3848_s8  ;;  %p3856_p13 = scmp.lt.u32.totalorder %s3848_s8, %s4669_s12 }
 0xab6   : > { %p3850_p7 = pnand %p3849_p5, %p4800_p0 }
 0xab7   : > { %p3855_p1 = por %p3854_p12, %p3853_p9 }
 0xab8   : > { %p3851_p6 = pneg %p3850_p7 }
 0xab9   : > { %p3857_p2 = por %p3856_p13, %p3855_p1 }
 0xabb   : > { %p3858_p8 = pnand %p3857_p2, %p3851_p6 }
 0xabd   : > { %3861 = shalt.err (!%p3858_p8)
}
 0xabe   : > { %s3938_s24 = smov 128   ;;  %s3939_s10 = smov 8  }
 0xabf   : > { %3365 = dma.vmem_to_hbm [thread:$0]  (%p4800_p0), %s4664_s28, 256, %s4669_s12, %s2589_s29, %s3938_s24, %s3938_s24, %s3939_s10  }
 0xac0 PF: > { %s2617_s6 = sand.u32 1, %s3908_s2   ;;  %p4801_p4 = scmp.ne.s32.totalorder %s4773_s30, 0 }
 0xac1   : > { %p4802_p10 = scmp.ge.s32.totalorder %s3920_s27, 2  ;;  %s2618_s8 = scalar_lea.sflag [#allocation6], %s2617_s6 }
 0xac3   : > { %p3403_p11 = pnand %p4802_p10, %p4801_p4 }
 0xac5   : > { %3903 = dma.done.wait (!%p3403_p11), %s2618_s8, 256  }
 0xac6   : > { %3905 = vsyncadd (!%p3403_p11), %s2618_s8, 4294967040  ;;  %p39_p3 = scmp.ge.s32.totalorder %s4328_s4, 4   ;;  %s4803_s2 = smov %s3912_s25 }
 0xac7   : > { %s4804_s25 = smov %s3916_s26  ;;  %s4805_s26 = smov %s4339_s3 }
 0xac8   : > { %s4806_s27 = smov %s4328_s4  ;;  %41 = sbr.rel (!%p39_p3) target bundleno = 27 (0x1b), region = 189 }
 0xacf   :  { %2623 = vsyncpa [#allocation5], 1 }
 0xad0   :  { %2625 = vsyncpa [#allocation5 + $0x1], 1 }
 0xad1   :  { %2626 = vsyncpa [#allocation8], 1 }
 0xad2   :  { %2627 = vsyncpa [#allocation11], 1 }
 0xad3   :  { %2628 = vsyncpa [#allocation14], 1 }
 0xad4   :  { %2629 = vsyncpa [#allocation17], 1 }
 0xad5   :  { %2630 = vsyncpa [#allocation20], 1 }
 0xad6   :  { %2631 = vsyncpa [#allocation6], 1 }
 0xad7   :  { %2633 = vsyncpa [#allocation6 + $0x1], 1 }

</bundles_post_ra>
